<compile_context>
chip_gen: v6e
topology: v6e:2x2x1
jax: 0.10.0
libtpu: 0.0.40
codegen_flags: <defaults>
</compile_context>

<pallas_src>
import jax
import jax.numpy as jnp
from jax import lax
from jax.experimental import pallas as pl
from jax.experimental.pallas import tpu as pltpu

# -----------------------------------------------------------------------------
# Small shapes consistent with the module's forward pass
# -----------------------------------------------------------------------------
B = 2                  # batch
C_IN = 4               # input_channels
L = 16                 # sequence length (<= max_seq_len)
K = 3                  # cnn_kernel_size
CNN_FILTERS = (8, 16, 32)
H1, H2 = 32, 16        # lstm_units
NUM_CLASSES = 4
PAD = K // 2
C3 = CNN_FILTERS[-1]   # d_model of the positional encoding
LB = L * B


# -----------------------------------------------------------------------------
# Pallas kernel: CNN base (3x Conv1d+ReLU) -> +pos-enc -> fused BiLSTM1 ->
#                fused BiLSTM2 -> (dropout = identity at inference) -> Linear
# -----------------------------------------------------------------------------
def segmenter_kernel(
    xp_ref, r_ref, pe_ref,
    w1_ref, b1_ref, w2_ref, b2_ref, w3_ref, b3_ref,
    wi1f_ref, wi1b_ref, wh1_ref, bg1_ref,
    w2s_ref, w2c_ref, wh2_ref, bg2_ref,
    wcs_ref, wcc_ref, bc_ref,
    out_ref,
    pad2_ref, pad3_ref, proj1_ref, o1_ref, proj2_ref, o2_ref,
):
    f32 = jnp.float32

    # ---- Conv1d ('same' padding) + ReLU: K accumulated (cin,cout) matmuls.
    #      No lane-axis im2col concat; MXU has large slack at these sizes.
    def conv_relu(hp, w_ref, b_ref):
        acc = jnp.dot(hp[0:LB, :], w_ref[0], preferred_element_type=f32)
        for k in range(1, K):
            acc = acc + jnp.dot(hp[k * B:k * B + LB, :], w_ref[k],
                                preferred_element_type=f32)
        return jnp.maximum(acc + b_ref[...], 0.0)

    # conv1: input already time-padded in the wrapper.
    h = conv_relu(xp_ref[...], w1_ref, b1_ref)                 # (LB, 8)

    # conv2/conv3: persistent zero-padded scratch (pad rows zeroed once, bulk).
    pad2_ref[...] = jnp.zeros_like(pad2_ref)
    pad2_ref[PAD * B:PAD * B + LB, :] = h
    h = conv_relu(pad2_ref[...], w2_ref, b2_ref)               # (LB, 16)

    pad3_ref[...] = jnp.zeros_like(pad3_ref)
    pad3_ref[PAD * B:PAD * B + LB, :] = h
    h = conv_relu(pad3_ref[...], w3_ref, b3_ref)               # (LB, C3)

    # ---- positional encoding (pre-broadcast over batch in the wrapper)
    h = h + pe_ref[...]

    # Time-reversal permutation (batch-preserving): row t*B+b -> (L-1-t)*B+b.
    # Applied as a tiny MXU matmul, always in bulk and off the serial chain.
    R = r_ref[...]

    # ---- merged fwd/bwd input projection for BiLSTM 1 (bulk):
    #      fwd-gate lanes get x(t), bwd-gate lanes get x(L-1-t); the direction
    #      select is folded into the column-disjoint weight split (wrapper).
    hrev = jnp.dot(R, h, preferred_element_type=f32)
    p1 = (jnp.dot(h, wi1f_ref[...], preferred_element_type=f32)
          + jnp.dot(hrev, wi1b_ref[...], preferred_element_type=f32)
          + bg1_ref[...])
    proj1_ref[...] = p1.reshape(L, B, 8 * H1)

    # ---- fused bidirectional LSTM recurrence (the serial latency chain).
    #      Per step: one aligned (B,8H) load, one (B,2H)@(2H,8H) matmul, one
    #      tanh pass over the fused gate vector (sigmoid = 0.5*tanh+0.5 with
    #      the 0.5 pre-scale folded into the packed weights), one tanh(c),
    #      and ONE full-width (B,2H) store.
    # TODO(synk): hold wh in the MXU across the unrolled loop
    #             (pltpu.matmul_push_rhs / matmul_acc_lhs / matmul_pop) and
    #             overlap the two 128-wide halves of the layer-1 gate matmul
    #             on v5e; kept on jnp.dot for portable, safe lowering.
    def run_bilstm(proj_ref, wh_ref, o_ref, H):
        wh = wh_ref[...]                                        # (2H, 8H) blockdiag

        def step(s, carry):
            hs, cs = carry                                      # (B, 2H) = [fwd | bwd]
            g = proj_ref[s] + jnp.dot(hs, wh, preferred_element_type=f32)
            t = jnp.tanh(g)                                     # single EUP pass
            i_g = t[:, 0:2 * H] * 0.5 + 0.5
            f_g = t[:, 2 * H:4 * H] * 0.5 + 0.5
            g_g = t[:, 4 * H:6 * H]
            o_g = t[:, 6 * H:8 * H] * 0.5 + 0.5
            c_new = f_g * cs + i_g * g_g
            h_new = o_g * jnp.tanh(c_new)
            o_ref[s] = h_new                                    # [h_f(s) | h_b(L-1-s)]
            return (h_new, c_new)

        z = jnp.zeros((B, 2 * H), f32)
        lax.fori_loop(0, L, step, (z, z), unroll=True)

    run_bilstm(proj1_ref, wh1_ref, o1_ref, H1)

    # ---- merged projection for BiLSTM 2 (bulk): the backward-half time
    #      reversal of layer-1's output is absorbed into R and the
    #      "same/cross" weight split prepared in the wrapper.
    o1 = o1_ref[...].reshape(LB, 2 * H1)
    o1rev = jnp.dot(R, o1, preferred_element_type=f32)
    p2 = (jnp.dot(o1, w2s_ref[...], preferred_element_type=f32)
          + jnp.dot(o1rev, w2c_ref[...], preferred_element_type=f32)
          + bg2_ref[...])
    proj2_ref[...] = p2.reshape(L, B, 8 * H2)

    run_bilstm(proj2_ref, wh2_ref, o2_ref, H2)

    # ---- dropout: identity at inference (eval mode)
    # ---- classifier: same/cross split absorbs the layer-2 bwd time reversal.
    o2 = o2_ref[...].reshape(LB, 2 * H2)
    o2rev = jnp.dot(R, o2, preferred_element_type=f32)
    out_ref[...] = (jnp.dot(o2, wcs_ref[...], preferred_element_type=f32)
                    + jnp.dot(o2rev, wcc_ref[...], preferred_element_type=f32)
                    + bc_ref[...])


# -----------------------------------------------------------------------------
# Wrapper: layout transforms, parameter packing, pallas_call
# -----------------------------------------------------------------------------
def _full_spec(shape):
    nd = len(shape)
    return pl.BlockSpec(shape, lambda i, _nd=nd: (0,) * _nd)


def _pack_conv(w, b):
    # PyTorch (cout, cin, K) -> (K, cin, cout): one (cin,cout) block per tap.
    return jnp.transpose(w, (2, 1, 0)), b.reshape(1, -1)


def _fwd_lane_mask(h):
    # 1.0 on forward-direction gate columns of the fused gate-grouped layout
    # [i_f, i_b, f_f, f_b, g_f, g_b, o_f, o_b], 0.0 on backward ones.
    blk = jnp.arange(8 * h) // h
    return ((blk % 2) == 0).astype(jnp.float32)


def _gate_tanh_scale(h):
    # Fold sigmoid(x) = 0.5*tanh(x/2) + 0.5 pre-scale into the weights:
    # 0.5 on i/f/o gate columns, 1.0 on the g (cell-candidate) columns.
    s = jnp.full((8 * h,), 0.5, jnp.float32)
    return s.at[4 * h:6 * h].set(1.0)


def _pack_bilstm(pf, pb):
    """Fuse fwd/bwd LSTM params into the gate-grouped layout
    [i_f, i_b, f_f, f_b, g_f, g_b, o_f, o_b] (each block width H), with the
    tanh-sigmoid 0.5 pre-scale folded into the i/f/o columns."""
    wih_f, whh_f, bih_f, bhh_f = pf
    wih_b, whh_b, bih_b, bhh_b = pb
    Hh = whh_f.shape[1]
    D = wih_f.shape[1]
    wi = jnp.stack([wih_f.T.reshape(D, 4, Hh),
                    wih_b.T.reshape(D, 4, Hh)], axis=2).reshape(D, 8 * Hh)
    zero = jnp.zeros((Hh, 4, Hh), jnp.float32)
    top = jnp.stack([whh_f.T.reshape(Hh, 4, Hh), zero], axis=2).reshape(Hh, 8 * Hh)
    bot = jnp.stack([zero, whh_b.T.reshape(Hh, 4, Hh)], axis=2).reshape(Hh, 8 * Hh)
    wh = jnp.concatenate([top, bot], axis=0)                    # (2H, 8H) blockdiag
    bg = jnp.stack([(bih_f + bhh_f).reshape(4, Hh),
                    (bih_b + bhh_b).reshape(4, Hh)], axis=1).reshape(1, 8 * Hh)
    sc = _gate_tanh_scale(Hh)
    return wi * sc, wh * sc, bg * sc


def segmenter_forward_pallas(x_ncl, params, pe):
    # PyTorch NCL (B, C_in, L) -> time-major 2D (L*B, C_in); pad time once.
    x2d = jnp.transpose(x_ncl, (2, 0, 1)).reshape(LB, C_IN).astype(jnp.float32)
    xp = jnp.pad(x2d, ((PAD * B, PAD * B), (0, 0)))
    pe2d = jnp.repeat(pe.astype(jnp.float32), B, axis=0)        # (L*B, C3)

    # Batch-preserving time-reversal permutation matrix (for in-kernel flips).
    idx = jnp.arange(LB)
    rev = (L - 1 - idx // B) * B + (idx % B)
    Rm = jax.nn.one_hot(rev, LB, dtype=jnp.float32)             # (LB, LB)

    w1, b1 = _pack_conv(*params["conv"][0])
    w2, b2 = _pack_conv(*params["conv"][1])
    w3, b3 = _pack_conv(*params["conv"][2])

    wi1, wh1, bg1 = _pack_bilstm(params["lstm1"]["f"], params["lstm1"]["b"])
    wi2, wh2, bg2 = _pack_bilstm(params["lstm2"]["f"], params["lstm2"]["b"])

    # Layer 1: column-disjoint split -> fwd-gate lanes from x(t), bwd-gate
    # lanes from x(L-1-t) (the flip is R @ x inside the kernel).
    m1 = _fwd_lane_mask(H1)
    wi1f = wi1 * m1
    wi1b = wi1 * (1.0 - m1)

    # Layer 2: the input arrives as the merged scratch o1[s]=[h_f(s)|h_b(L-1-s)];
    # "same" rows multiply o1[s], "cross" rows multiply o1[L-1-s] (= R @ o1).
    m2 = _fwd_lane_mask(H2)
    wi2f = wi2 * m2
    wi2b = wi2 * (1.0 - m2)
    w2s = jnp.concatenate([wi2f[:H1], wi2b[H1:]], axis=0)       # (2*H1, 8*H2)
    w2c = jnp.concatenate([wi2b[:H1], wi2f[H1:]], axis=0)

    # Classifier: same/cross split over the layer-2 merged scratch.
    wc, bc = params["cls"]
    wcT = wc.T.astype(jnp.float32)                              # (2*H2, NUM_CLASSES)
    zc = jnp.zeros((H2, NUM_CLASSES), jnp.float32)
    wcs = jnp.concatenate([wcT[:H2], zc], axis=0)
    wcc = jnp.concatenate([zc, wcT[H2:]], axis=0)
    bcr = bc.reshape(1, -1)

    args = [xp, Rm, pe2d, w1, b1, w2, b2, w3, b3,
            wi1f, wi1b, wh1, bg1, w2s, w2c, wh2, bg2, wcs, wcc, bcr]
    in_specs = [_full_spec(a.shape) for a in args]

    scratch_shapes = [
        pltpu.VMEM(((L + 2 * PAD) * B, CNN_FILTERS[0]), jnp.float32),  # conv2 pad
        pltpu.VMEM(((L + 2 * PAD) * B, CNN_FILTERS[1]), jnp.float32),  # conv3 pad
        pltpu.VMEM((L, B, 8 * H1), jnp.float32),   # BiLSTM1 merged input proj
        pltpu.VMEM((L, B, 2 * H1), jnp.float32),   # BiLSTM1 fused outputs
        pltpu.VMEM((L, B, 8 * H2), jnp.float32),   # BiLSTM2 merged input proj
        pltpu.VMEM((L, B, 2 * H2), jnp.float32),   # BiLSTM2 fused outputs
    ]

    # TODO(synk): on v7x, add a leading "parallel" batch grid axis (or
    #             pl.core_map over a 2-core mesh) once batch > 1 sequence per
    #             core; at B=2 a single serial recurrence is the latency floor.
    out2d = pl.pallas_call(
        segmenter_kernel,
        out_shape=jax.ShapeDtypeStruct((LB, NUM_CLASSES), jnp.float32),
        grid=(1,),
        in_specs=in_specs,
        out_specs=_full_spec((LB, NUM_CLASSES)),
        scratch_shapes=scratch_shapes,
        compiler_params=pltpu.CompilerParams(dimension_semantics=("arbitrary",)),
    )(*args)

    # back to PyTorch convention (B, L, num_classes)
    return jnp.transpose(out2d.reshape(L, B, NUM_CLASSES), (1, 0, 2))


# -----------------------------------------------------------------------------
# Deterministic parameter init (PyTorch-convention shapes) + pos. encoding
# -----------------------------------------------------------------------------
def init_params(key):
    keys = iter(jax.random.split(key, 32))
    scale = 0.1

    def rn(shape):
        return scale * jax.random.normal(next(keys), shape, dtype=jnp.float32)

    conv = []
    cin = C_IN
    for cout in CNN_FILTERS:
        conv.append((rn((cout, cin, K)), rn((cout,))))
        cin = cout

    def lstm(d_in, h):
        return (rn((4 * h, d_in)), rn((4 * h, h)), rn((4 * h,)), rn((4 * h,)))

    return {
        "conv": conv,
        "lstm1": {"f": lstm(C3, H1), "b": lstm(C3, H1)},
        "lstm2": {"f": lstm(2 * H1, H2), "b": lstm(2 * H1, H2)},
        "cls": (rn((NUM_CLASSES, 2 * H2)), rn((NUM_CLASSES,))),
    }


def make_pe(length, d_model):
    pos = jnp.arange(length, dtype=jnp.float32)[:, None]
    div = jnp.exp(jnp.arange(0, d_model, 2, dtype=jnp.float32)
                  * (-jnp.log(10000.0) / d_model))
    pe = jnp.zeros((length, d_model), jnp.float32)
    pe = pe.at[:, 0::2].set(jnp.sin(pos * div))
    pe = pe.at[:, 1::2].set(jnp.cos(pos * div))
    return pe


# -----------------------------------------------------------------------------
# Pure-JAX reference (mirrors the PyTorch forward) for correctness checking
# -----------------------------------------------------------------------------
def _lstm_single_ref(x, wih, whh, bih, bhh):
    Bx, _, _ = x.shape
    H = whh.shape[1]

    def step(carry, xt):
        h, c = carry
        g = xt @ wih.T + bih + h @ whh.T + bhh
        i = jax.nn.sigmoid(g[:, 0:H])
        f = jax.nn.sigmoid(g[:, H:2 * H])
        gg = jnp.tanh(g[:, 2 * H:3 * H])
        o = jax.nn.sigmoid(g[:, 3 * H:4 * H])
        c = f * c + i * gg
        h = o * jnp.tanh(c)
        return (h, c), h

    h0 = jnp.zeros((Bx, H), jnp.float32)
    _, ys = lax.scan(step, (h0, h0), jnp.swapaxes(x, 0, 1))
    return jnp.swapaxes(ys, 0, 1)


def _bilstm_ref(x, pf, pb):
    yf = _lstm_single_ref(x, *pf)
    yb = jnp.flip(_lstm_single_ref(jnp.flip(x, axis=1), *pb), axis=1)
    return jnp.concatenate([yf, yb], axis=-1)


def segmenter_forward_ref(x_ncl, params, pe):
    h = x_ncl
    for w, b in params["conv"]:
        h = lax.conv_general_dilated(h, w, window_strides=(1,),
                                     padding=((PAD, PAD),),
                                     dimension_numbers=("NCH", "OIH", "NCH"))
        h = jax.nn.relu(h + b[None, :, None])
    h = jnp.transpose(h, (0, 2, 1))            # (B, L, C3)
    h = h + pe[None, :, :]
    h = _bilstm_ref(h, params["lstm1"]["f"], params["lstm1"]["b"])
    h = _bilstm_ref(h, params["lstm2"]["f"], params["lstm2"]["b"])
    wc, bc = params["cls"]
    return h @ wc.T + bc                       # (B, L, NUM_CLASSES)


# -----------------------------------------------------------------------------
if __name__ == "__main__":
    key = jax.random.PRNGKey(0)
    kp, kx = jax.random.split(key)
    params = init_params(kp)
    pe = make_pe(L, C3)
    x = jax.random.normal(kx, (B, C_IN, L), dtype=jnp.float32)

    out = segmenter_forward_pallas(x, params, pe)
    out = jax.block_until_ready(out)

    ref = segmenter_forward_ref(x, params, pe)
    assert out.shape == (B, L, NUM_CLASSES), out.shape
    max_err = float(jnp.max(jnp.abs(out - ref)))
    assert max_err < 5e-3, f"max abs error too large: {max_err}"
    print("KERNEL_OK")
</pallas_src>

<mosaic_0001>
module attributes {stable_mosaic.version = 11 : i64} {
  func.func @segmenter_kernel(%arg0: i32, %arg1: memref<36x4xf32, #tpu.memory_space<vmem>>, %arg2: memref<32x32xf32, #tpu.memory_space<vmem>>, %arg3: memref<32x32xf32, #tpu.memory_space<vmem>>, %arg4: memref<3x4x8xf32, #tpu.memory_space<vmem>>, %arg5: memref<1x8xf32, #tpu.memory_space<vmem>>, %arg6: memref<3x8x16xf32, #tpu.memory_space<vmem>>, %arg7: memref<1x16xf32, #tpu.memory_space<vmem>>, %arg8: memref<3x16x32xf32, #tpu.memory_space<vmem>>, %arg9: memref<1x32xf32, #tpu.memory_space<vmem>>, %arg10: memref<32x256xf32, #tpu.memory_space<vmem>>, %arg11: memref<32x256xf32, #tpu.memory_space<vmem>>, %arg12: memref<64x256xf32, #tpu.memory_space<vmem>>, %arg13: memref<1x256xf32, #tpu.memory_space<vmem>>, %arg14: memref<64x128xf32, #tpu.memory_space<vmem>>, %arg15: memref<64x128xf32, #tpu.memory_space<vmem>>, %arg16: memref<32x128xf32, #tpu.memory_space<vmem>>, %arg17: memref<1x128xf32, #tpu.memory_space<vmem>>, %arg18: memref<32x4xf32, #tpu.memory_space<vmem>>, %arg19: memref<32x4xf32, #tpu.memory_space<vmem>>, %arg20: memref<1x4xf32, #tpu.memory_space<vmem>>, %arg21: memref<32x4xf32, #tpu.memory_space<vmem>>, %arg22: memref<36x8xf32, #tpu.memory_space<vmem>>, %arg23: memref<36x16xf32, #tpu.memory_space<vmem>>, %arg24: memref<16x2x256xf32, #tpu.memory_space<vmem>>, %arg25: memref<16x2x64xf32, #tpu.memory_space<vmem>>, %arg26: memref<16x2x128xf32, #tpu.memory_space<vmem>>, %arg27: memref<16x2x32xf32, #tpu.memory_space<vmem>>) attributes {dimension_semantics = [#tpu.dimension_semantics<arbitrary>], iteration_bounds = array<i64: 1>, scalar_prefetch = 0 : i64, scratch_operands = 6 : i64, tpu.core_type = #tpu.core_type<tc>, window_params = [{pipeline_mode = #tpu.pipeline_mode<synchronous>, transform_indices = @transform_0, window_bounds = array<i64: 36, 4>}, {pipeline_mode = #tpu.pipeline_mode<synchronous>, transform_indices = @transform_1, window_bounds = array<i64: 32, 32>}, {pipeline_mode = #tpu.pipeline_mode<synchronous>, transform_indices = @transform_2, window_bounds = array<i64: 32, 32>}, {pipeline_mode = #tpu.pipeline_mode<synchronous>, transform_indices = @transform_3, window_bounds = array<i64: 3, 4, 8>}, {pipeline_mode = #tpu.pipeline_mode<synchronous>, transform_indices = @transform_4, window_bounds = array<i64: 1, 8>}, {pipeline_mode = #tpu.pipeline_mode<synchronous>, transform_indices = @transform_5, window_bounds = array<i64: 3, 8, 16>}, {pipeline_mode = #tpu.pipeline_mode<synchronous>, transform_indices = @transform_6, window_bounds = array<i64: 1, 16>}, {pipeline_mode = #tpu.pipeline_mode<synchronous>, transform_indices = @transform_7, window_bounds = array<i64: 3, 16, 32>}, {pipeline_mode = #tpu.pipeline_mode<synchronous>, transform_indices = @transform_8, window_bounds = array<i64: 1, 32>}, {pipeline_mode = #tpu.pipeline_mode<synchronous>, transform_indices = @transform_9, window_bounds = array<i64: 32, 256>}, {pipeline_mode = #tpu.pipeline_mode<synchronous>, transform_indices = @transform_10, window_bounds = array<i64: 32, 256>}, {pipeline_mode = #tpu.pipeline_mode<synchronous>, transform_indices = @transform_11, window_bounds = array<i64: 64, 256>}, {pipeline_mode = #tpu.pipeline_mode<synchronous>, transform_indices = @transform_12, window_bounds = array<i64: 1, 256>}, {pipeline_mode = #tpu.pipeline_mode<synchronous>, transform_indices = @transform_13, window_bounds = array<i64: 64, 128>}, {pipeline_mode = #tpu.pipeline_mode<synchronous>, transform_indices = @transform_14, window_bounds = array<i64: 64, 128>}, {pipeline_mode = #tpu.pipeline_mode<synchronous>, transform_indices = @transform_15, window_bounds = array<i64: 32, 128>}, {pipeline_mode = #tpu.pipeline_mode<synchronous>, transform_indices = @transform_16, window_bounds = array<i64: 1, 128>}, {pipeline_mode = #tpu.pipeline_mode<synchronous>, transform_indices = @transform_17, window_bounds = array<i64: 32, 4>}, {pipeline_mode = #tpu.pipeline_mode<synchronous>, transform_indices = @transform_18, window_bounds = array<i64: 32, 4>}, {pipeline_mode = #tpu.pipeline_mode<synchronous>, transform_indices = @transform_19, window_bounds = array<i64: 1, 4>}, {pipeline_mode = #tpu.pipeline_mode<synchronous>, transform_indices = @transform_20, window_bounds = array<i64: 32, 4>}]} {
    %c0 = arith.constant 0 : index
    %c0_0 = arith.constant 0 : index
    %0 = vector.load %arg1[%c0, %c0_0] : memref<36x4xf32, #tpu.memory_space<vmem>>, vector<36x4xf32>
    %1 = vector.extract_strided_slice %0 {offsets = [0, 0], sizes = [32, 4], strides = [1, 1]} : vector<36x4xf32> to vector<32x4xf32>
    %c0_1 = arith.constant 0 : index
    %c0_2 = arith.constant 0 : index
    %c0_3 = arith.constant 0 : index
    %2 = vector.load %arg4[%c0_1, %c0_2, %c0_3] : memref<3x4x8xf32, #tpu.memory_space<vmem>>, vector<1x4x8xf32>
    %3 = vector.shape_cast %2 : vector<1x4x8xf32> to vector<4x8xf32>
    %cst = arith.constant dense<0.000000e+00> : vector<32x8xf32>
    %4 = tpu.matmul %1, %3, %cst {dimension_numbers = #tpu.dot_dimension_numbers<[1], [0], [0], [1], [0, 0, 1, 1], [], []>} : vector<32x4xf32>, vector<4x8xf32>, vector<32x8xf32> -> vector<32x8xf32>
    %5 = vector.extract_strided_slice %0 {offsets = [2, 0], sizes = [32, 4], strides = [1, 1]} : vector<36x4xf32> to vector<32x4xf32>
    %c1 = arith.constant 1 : index
    %c0_4 = arith.constant 0 : index
    %c0_5 = arith.constant 0 : index
    %6 = vector.load %arg4[%c1, %c0_4, %c0_5] : memref<3x4x8xf32, #tpu.memory_space<vmem>>, vector<1x4x8xf32>
    %7 = vector.shape_cast %6 : vector<1x4x8xf32> to vector<4x8xf32>
    %cst_6 = arith.constant dense<0.000000e+00> : vector<32x8xf32>
    %8 = tpu.matmul %5, %7, %cst_6 {dimension_numbers = #tpu.dot_dimension_numbers<[1], [0], [0], [1], [0, 0, 1, 1], [], []>} : vector<32x4xf32>, vector<4x8xf32>, vector<32x8xf32> -> vector<32x8xf32>
    %9 = arith.addf %4, %8 : vector<32x8xf32>
    %10 = vector.extract_strided_slice %0 {offsets = [4, 0], sizes = [32, 4], strides = [1, 1]} : vector<36x4xf32> to vector<32x4xf32>
    %c2 = arith.constant 2 : index
    %c0_7 = arith.constant 0 : index
    %c0_8 = arith.constant 0 : index
    %11 = vector.load %arg4[%c2, %c0_7, %c0_8] : memref<3x4x8xf32, #tpu.memory_space<vmem>>, vector<1x4x8xf32>
    %12 = vector.shape_cast %11 : vector<1x4x8xf32> to vector<4x8xf32>
    %cst_9 = arith.constant dense<0.000000e+00> : vector<32x8xf32>
    %13 = tpu.matmul %10, %12, %cst_9 {dimension_numbers = #tpu.dot_dimension_numbers<[1], [0], [0], [1], [0, 0, 1, 1], [], []>} : vector<32x4xf32>, vector<4x8xf32>, vector<32x8xf32> -> vector<32x8xf32>
    %14 = arith.addf %9, %13 : vector<32x8xf32>
    %c0_10 = arith.constant 0 : index
    %c0_11 = arith.constant 0 : index
    %15 = vector.load %arg5[%c0_10, %c0_11] : memref<1x8xf32, #tpu.memory_space<vmem>>, vector<1x8xf32>
    %16 = vector.broadcast %15 : vector<1x8xf32> to vector<32x8xf32>
    %17 = arith.addf %14, %16 : vector<32x8xf32>
    %cst_12 = arith.constant 0.000000e+00 : f32
    %18 = vector.broadcast %cst_12 : f32 to vector<32x8xf32>
    %19 = arith.maximumf %17, %18 : vector<32x8xf32>
    %cst_13 = arith.constant 0.000000e+00 : f32
    %20 = vector.broadcast %cst_13 : f32 to vector<36x8xf32>
    %c0_14 = arith.constant 0 : index
    %c0_15 = arith.constant 0 : index
    %21 = vector.load %arg22[%c0_14, %c0_15] : memref<36x8xf32, #tpu.memory_space<vmem>>, vector<36x8xf32>
    tpu.vector_store %arg22[%c0_14, %c0_15], %20 {strides = array<i32>} : memref<36x8xf32, #tpu.memory_space<vmem>>, vector<36x8xf32>,
    %c2_16 = arith.constant 2 : index
    %c0_17 = arith.constant 0 : index
    %22 = vector.load %arg22[%c2_16, %c0_17] : memref<36x8xf32, #tpu.memory_space<vmem>>, vector<32x8xf32>
    tpu.vector_store %arg22[%c2_16, %c0_17], %19 {strides = array<i32>} : memref<36x8xf32, #tpu.memory_space<vmem>>, vector<32x8xf32>,
    %c0_18 = arith.constant 0 : index
    %c0_19 = arith.constant 0 : index
    %23 = vector.load %arg22[%c0_18, %c0_19] : memref<36x8xf32, #tpu.memory_space<vmem>>, vector<36x8xf32>
    %24 = vector.extract_strided_slice %23 {offsets = [0, 0], sizes = [32, 8], strides = [1, 1]} : vector<36x8xf32> to vector<32x8xf32>
    %c0_20 = arith.constant 0 : index
    %c0_21 = arith.constant 0 : index
    %c0_22 = arith.constant 0 : index
    %25 = vector.load %arg6[%c0_20, %c0_21, %c0_22] : memref<3x8x16xf32, #tpu.memory_space<vmem>>, vector<1x8x16xf32>
    %26 = vector.shape_cast %25 : vector<1x8x16xf32> to vector<8x16xf32>
    %cst_23 = arith.constant dense<0.000000e+00> : vector<32x16xf32>
    %27 = tpu.matmul %24, %26, %cst_23 {dimension_numbers = #tpu.dot_dimension_numbers<[1], [0], [0], [1], [0, 0, 1, 1], [], []>} : vector<32x8xf32>, vector<8x16xf32>, vector<32x16xf32> -> vector<32x16xf32>
    %28 = vector.extract_strided_slice %23 {offsets = [2, 0], sizes = [32, 8], strides = [1, 1]} : vector<36x8xf32> to vector<32x8xf32>
    %c1_24 = arith.constant 1 : index
    %c0_25 = arith.constant 0 : index
    %c0_26 = arith.constant 0 : index
    %29 = vector.load %arg6[%c1_24, %c0_25, %c0_26] : memref<3x8x16xf32, #tpu.memory_space<vmem>>, vector<1x8x16xf32>
    %30 = vector.shape_cast %29 : vector<1x8x16xf32> to vector<8x16xf32>
    %cst_27 = arith.constant dense<0.000000e+00> : vector<32x16xf32>
    %31 = tpu.matmul %28, %30, %cst_27 {dimension_numbers = #tpu.dot_dimension_numbers<[1], [0], [0], [1], [0, 0, 1, 1], [], []>} : vector<32x8xf32>, vector<8x16xf32>, vector<32x16xf32> -> vector<32x16xf32>
    %32 = arith.addf %27, %31 : vector<32x16xf32>
    %33 = vector.extract_strided_slice %23 {offsets = [4, 0], sizes = [32, 8], strides = [1, 1]} : vector<36x8xf32> to vector<32x8xf32>
    %c2_28 = arith.constant 2 : index
    %c0_29 = arith.constant 0 : index
    %c0_30 = arith.constant 0 : index
    %34 = vector.load %arg6[%c2_28, %c0_29, %c0_30] : memref<3x8x16xf32, #tpu.memory_space<vmem>>, vector<1x8x16xf32>
    %35 = vector.shape_cast %34 : vector<1x8x16xf32> to vector<8x16xf32>
    %cst_31 = arith.constant dense<0.000000e+00> : vector<32x16xf32>
    %36 = tpu.matmul %33, %35, %cst_31 {dimension_numbers = #tpu.dot_dimension_numbers<[1], [0], [0], [1], [0, 0, 1, 1], [], []>} : vector<32x8xf32>, vector<8x16xf32>, vector<32x16xf32> -> vector<32x16xf32>
    %37 = arith.addf %32, %36 : vector<32x16xf32>
    %c0_32 = arith.constant 0 : index
    %c0_33 = arith.constant 0 : index
    %38 = vector.load %arg7[%c0_32, %c0_33] : memref<1x16xf32, #tpu.memory_space<vmem>>, vector<1x16xf32>
    %39 = vector.broadcast %38 : vector<1x16xf32> to vector<32x16xf32>
    %40 = arith.addf %37, %39 : vector<32x16xf32>
    %cst_34 = arith.constant 0.000000e+00 : f32
    %41 = vector.broadcast %cst_34 : f32 to vector<32x16xf32>
    %42 = arith.maximumf %40, %41 : vector<32x16xf32>
    %cst_35 = arith.constant 0.000000e+00 : f32
    %43 = vector.broadcast %cst_35 : f32 to vector<36x16xf32>
    %c0_36 = arith.constant 0 : index
    %c0_37 = arith.constant 0 : index
    %44 = vector.load %arg23[%c0_36, %c0_37] : memref<36x16xf32, #tpu.memory_space<vmem>>, vector<36x16xf32>
    tpu.vector_store %arg23[%c0_36, %c0_37], %43 {strides = array<i32>} : memref<36x16xf32, #tpu.memory_space<vmem>>, vector<36x16xf32>,
    %c2_38 = arith.constant 2 : index
    %c0_39 = arith.constant 0 : index
    %45 = vector.load %arg23[%c2_38, %c0_39] : memref<36x16xf32, #tpu.memory_space<vmem>>, vector<32x16xf32>
    tpu.vector_store %arg23[%c2_38, %c0_39], %42 {strides = array<i32>} : memref<36x16xf32, #tpu.memory_space<vmem>>, vector<32x16xf32>,
    %c0_40 = arith.constant 0 : index
    %c0_41 = arith.constant 0 : index
    %46 = vector.load %arg23[%c0_40, %c0_41] : memref<36x16xf32, #tpu.memory_space<vmem>>, vector<36x16xf32>
    %47 = vector.extract_strided_slice %46 {offsets = [0, 0], sizes = [32, 16], strides = [1, 1]} : vector<36x16xf32> to vector<32x16xf32>
    %c0_42 = arith.constant 0 : index
    %c0_43 = arith.constant 0 : index
    %c0_44 = arith.constant 0 : index
    %48 = vector.load %arg8[%c0_42, %c0_43, %c0_44] : memref<3x16x32xf32, #tpu.memory_space<vmem>>, vector<1x16x32xf32>
    %49 = vector.shape_cast %48 : vector<1x16x32xf32> to vector<16x32xf32>
    %cst_45 = arith.constant dense<0.000000e+00> : vector<32x32xf32>
    %50 = tpu.matmul %47, %49, %cst_45 {dimension_numbers = #tpu.dot_dimension_numbers<[1], [0], [0], [1], [0, 0, 1, 1], [], []>} : vector<32x16xf32>, vector<16x32xf32>, vector<32x32xf32> -> vector<32x32xf32>
    %51 = vector.extract_strided_slice %46 {offsets = [2, 0], sizes = [32, 16], strides = [1, 1]} : vector<36x16xf32> to vector<32x16xf32>
    %c1_46 = arith.constant 1 : index
    %c0_47 = arith.constant 0 : index
    %c0_48 = arith.constant 0 : index
    %52 = vector.load %arg8[%c1_46, %c0_47, %c0_48] : memref<3x16x32xf32, #tpu.memory_space<vmem>>, vector<1x16x32xf32>
    %53 = vector.shape_cast %52 : vector<1x16x32xf32> to vector<16x32xf32>
    %cst_49 = arith.constant dense<0.000000e+00> : vector<32x32xf32>
    %54 = tpu.matmul %51, %53, %cst_49 {dimension_numbers = #tpu.dot_dimension_numbers<[1], [0], [0], [1], [0, 0, 1, 1], [], []>} : vector<32x16xf32>, vector<16x32xf32>, vector<32x32xf32> -> vector<32x32xf32>
    %55 = arith.addf %50, %54 : vector<32x32xf32>
    %56 = vector.extract_strided_slice %46 {offsets = [4, 0], sizes = [32, 16], strides = [1, 1]} : vector<36x16xf32> to vector<32x16xf32>
    %c2_50 = arith.constant 2 : index
    %c0_51 = arith.constant 0 : index
    %c0_52 = arith.constant 0 : index
    %57 = vector.load %arg8[%c2_50, %c0_51, %c0_52] : memref<3x16x32xf32, #tpu.memory_space<vmem>>, vector<1x16x32xf32>
    %58 = vector.shape_cast %57 : vector<1x16x32xf32> to vector<16x32xf32>
    %cst_53 = arith.constant dense<0.000000e+00> : vector<32x32xf32>
    %59 = tpu.matmul %56, %58, %cst_53 {dimension_numbers = #tpu.dot_dimension_numbers<[1], [0], [0], [1], [0, 0, 1, 1], [], []>} : vector<32x16xf32>, vector<16x32xf32>, vector<32x32xf32> -> vector<32x32xf32>
    %60 = arith.addf %55, %59 : vector<32x32xf32>
    %c0_54 = arith.constant 0 : index
    %c0_55 = arith.constant 0 : index
    %61 = vector.load %arg9[%c0_54, %c0_55] : memref<1x32xf32, #tpu.memory_space<vmem>>, vector<1x32xf32>
    %62 = vector.broadcast %61 : vector<1x32xf32> to vector<32x32xf32>
    %63 = arith.addf %60, %62 : vector<32x32xf32>
    %cst_56 = arith.constant 0.000000e+00 : f32
    %64 = vector.broadcast %cst_56 : f32 to vector<32x32xf32>
    %65 = arith.maximumf %63, %64 : vector<32x32xf32>
    %c0_57 = arith.constant 0 : index
    %c0_58 = arith.constant 0 : index
    %66 = vector.load %arg3[%c0_57, %c0_58] : memref<32x32xf32, #tpu.memory_space<vmem>>, vector<32x32xf32>
    %67 = arith.addf %65, %66 : vector<32x32xf32>
    %c0_59 = arith.constant 0 : index
    %c0_60 = arith.constant 0 : index
    %68 = vector.load %arg2[%c0_59, %c0_60] : memref<32x32xf32, #tpu.memory_space<vmem>>, vector<32x32xf32>
    %cst_61 = arith.constant dense<0.000000e+00> : vector<32x32xf32>
    %69 = tpu.matmul %68, %67, %cst_61 {dimension_numbers = #tpu.dot_dimension_numbers<[1], [0], [0], [1], [0, 0, 1, 1], [], []>} : vector<32x32xf32>, vector<32x32xf32>, vector<32x32xf32> -> vector<32x32xf32>
    %c0_62 = arith.constant 0 : index
    %c0_63 = arith.constant 0 : index
    %70 = vector.load %arg10[%c0_62, %c0_63] : memref<32x256xf32, #tpu.memory_space<vmem>>, vector<32x256xf32>
    %cst_64 = arith.constant dense<0.000000e+00> : vector<32x256xf32>
    %71 = tpu.matmul %67, %70, %cst_64 {dimension_numbers = #tpu.dot_dimension_numbers<[1], [0], [0], [1], [0, 0, 1, 1], [], []>} : vector<32x32xf32>, vector<32x256xf32>, vector<32x256xf32> -> vector<32x256xf32>
    %c0_65 = arith.constant 0 : index
    %c0_66 = arith.constant 0 : index
    %72 = vector.load %arg11[%c0_65, %c0_66] : memref<32x256xf32, #tpu.memory_space<vmem>>, vector<32x256xf32>
    %cst_67 = arith.constant dense<0.000000e+00> : vector<32x256xf32>
    %73 = tpu.matmul %69, %72, %cst_67 {dimension_numbers = #tpu.dot_dimension_numbers<[1], [0], [0], [1], [0, 0, 1, 1], [], []>} : vector<32x32xf32>, vector<32x256xf32>, vector<32x256xf32> -> vector<32x256xf32>
    %74 = arith.addf %71, %73 : vector<32x256xf32>
    %c0_68 = arith.constant 0 : index
    %c0_69 = arith.constant 0 : index
    %75 = vector.load %arg13[%c0_68, %c0_69] : memref<1x256xf32, #tpu.memory_space<vmem>>, vector<1x256xf32>
    %76 = vector.broadcast %75 : vector<1x256xf32> to vector<32x256xf32>
    %77 = arith.addf %74, %76 : vector<32x256xf32>
    %78 = vector.shape_cast %77 : vector<32x256xf32> to vector<16x2x256xf32>
    %c0_70 = arith.constant 0 : index
    %c0_71 = arith.constant 0 : index
    %c0_72 = arith.constant 0 : index
    %79 = vector.load %arg24[%c0_70, %c0_71, %c0_72] : memref<16x2x256xf32, #tpu.memory_space<vmem>>, vector<16x2x256xf32>
    tpu.vector_store %arg24[%c0_70, %c0_71, %c0_72], %78 {strides = array<i32>} : memref<16x2x256xf32, #tpu.memory_space<vmem>>, vector<16x2x256xf32>,
    %c0_73 = arith.constant 0 : index
    %c0_74 = arith.constant 0 : index
    %80 = vector.load %arg12[%c0_73, %c0_74] : memref<64x256xf32, #tpu.memory_space<vmem>>, vector<64x256xf32>
    %cst_75 = arith.constant 0.000000e+00 : f32
    %81 = vector.broadcast %cst_75 : f32 to vector<2x64xf32>
    %c0_i32 = arith.constant 0 : i32
    %82 = arith.index_cast %c0_i32 : i32 to index
    %c0_76 = arith.constant 0 : index
    %c0_77 = arith.constant 0 : index
    %83 = vector.load %arg24[%82, %c0_76, %c0_77] : memref<16x2x256xf32, #tpu.memory_space<vmem>>, vector<1x2x256xf32>
    %84 = vector.shape_cast %83 : vector<1x2x256xf32> to vector<2x256xf32>
    %cst_78 = arith.constant dense<0.000000e+00> : vector<2x256xf32>
    %85 = tpu.matmul %81, %80, %cst_78 {dimension_numbers = #tpu.dot_dimension_numbers<[1], [0], [0], [1], [0, 0, 1, 1], [], []>} : vector<2x64xf32>, vector<64x256xf32>, vector<2x256xf32> -> vector<2x256xf32>
    %86 = arith.addf %84, %85 : vector<2x256xf32>
    %87 = math.tanh %86 : vector<2x256xf32>
    %88 = vector.extract_strided_slice %87 {offsets = [0, 0], sizes = [2, 64], strides = [1, 1]} : vector<2x256xf32> to vector<2x64xf32>
    %cst_79 = arith.constant 5.000000e-01 : f32
    %89 = vector.broadcast %cst_79 : f32 to vector<2x64xf32>
    %90 = arith.mulf %88, %89 : vector<2x64xf32>
    %cst_80 = arith.constant 5.000000e-01 : f32
    %91 = vector.broadcast %cst_80 : f32 to vector<2x64xf32>
    %92 = arith.addf %90, %91 : vector<2x64xf32>
    %93 = vector.extract_strided_slice %87 {offsets = [0, 64], sizes = [2, 64], strides = [1, 1]} : vector<2x256xf32> to vector<2x64xf32>
    %cst_81 = arith.constant 5.000000e-01 : f32
    %94 = vector.broadcast %cst_81 : f32 to vector<2x64xf32>
    %95 = arith.mulf %93, %94 : vector<2x64xf32>
    %cst_82 = arith.constant 5.000000e-01 : f32
    %96 = vector.broadcast %cst_82 : f32 to vector<2x64xf32>
    %97 = arith.addf %95, %96 : vector<2x64xf32>
    %98 = vector.extract_strided_slice %87 {offsets = [0, 128], sizes = [2, 64], strides = [1, 1]} : vector<2x256xf32> to vector<2x64xf32>
    %99 = vector.extract_strided_slice %87 {offsets = [0, 192], sizes = [2, 64], strides = [1, 1]} : vector<2x256xf32> to vector<2x64xf32>
    %cst_83 = arith.constant 5.000000e-01 : f32
    %100 = vector.broadcast %cst_83 : f32 to vector<2x64xf32>
    %101 = arith.mulf %99, %100 : vector<2x64xf32>
    %cst_84 = arith.constant 5.000000e-01 : f32
    %102 = vector.broadcast %cst_84 : f32 to vector<2x64xf32>
    %103 = arith.addf %101, %102 : vector<2x64xf32>
    %104 = arith.mulf %97, %81 : vector<2x64xf32>
    %105 = arith.mulf %92, %98 : vector<2x64xf32>
    %106 = arith.addf %104, %105 : vector<2x64xf32>
    %107 = math.tanh %106 : vector<2x64xf32>
    %108 = arith.mulf %103, %107 : vector<2x64xf32>
    %109 = arith.index_cast %c0_i32 : i32 to index
    %c0_85 = arith.constant 0 : index
    %c0_86 = arith.constant 0 : index
    %110 = vector.load %arg25[%109, %c0_85, %c0_86] : memref<16x2x64xf32, #tpu.memory_space<vmem>>, vector<1x2x64xf32>
    %111 = vector.shape_cast %110 : vector<1x2x64xf32> to vector<2x64xf32>
    %112 = vector.shape_cast %108 : vector<2x64xf32> to vector<1x2x64xf32>
    tpu.vector_store %arg25[%109, %c0_85, %c0_86], %112 {strides = array<i32>} : memref<16x2x64xf32, #tpu.memory_space<vmem>>, vector<1x2x64xf32>,
    %c1_i32 = arith.constant 1 : i32
    %113 = arith.index_cast %c1_i32 : i32 to index
    %c0_87 = arith.constant 0 : index
    %c0_88 = arith.constant 0 : index
    %114 = vector.load %arg24[%113, %c0_87, %c0_88] : memref<16x2x256xf32, #tpu.memory_space<vmem>>, vector<1x2x256xf32>
    %115 = vector.shape_cast %114 : vector<1x2x256xf32> to vector<2x256xf32>
    %cst_89 = arith.constant dense<0.000000e+00> : vector<2x256xf32>
    %116 = tpu.matmul %108, %80, %cst_89 {dimension_numbers = #tpu.dot_dimension_numbers<[1], [0], [0], [1], [0, 0, 1, 1], [], []>} : vector<2x64xf32>, vector<64x256xf32>, vector<2x256xf32> -> vector<2x256xf32>
    %117 = arith.addf %115, %116 : vector<2x256xf32>
    %118 = math.tanh %117 : vector<2x256xf32>
    %119 = vector.extract_strided_slice %118 {offsets = [0, 0], sizes = [2, 64], strides = [1, 1]} : vector<2x256xf32> to vector<2x64xf32>
    %cst_90 = arith.constant 5.000000e-01 : f32
    %120 = vector.broadcast %cst_90 : f32 to vector<2x64xf32>
    %121 = arith.mulf %119, %120 : vector<2x64xf32>
    %cst_91 = arith.constant 5.000000e-01 : f32
    %122 = vector.broadcast %cst_91 : f32 to vector<2x64xf32>
    %123 = arith.addf %121, %122 : vector<2x64xf32>
    %124 = vector.extract_strided_slice %118 {offsets = [0, 64], sizes = [2, 64], strides = [1, 1]} : vector<2x256xf32> to vector<2x64xf32>
    %cst_92 = arith.constant 5.000000e-01 : f32
    %125 = vector.broadcast %cst_92 : f32 to vector<2x64xf32>
    %126 = arith.mulf %124, %125 : vector<2x64xf32>
    %cst_93 = arith.constant 5.000000e-01 : f32
    %127 = vector.broadcast %cst_93 : f32 to vector<2x64xf32>
    %128 = arith.addf %126, %127 : vector<2x64xf32>
    %129 = vector.extract_strided_slice %118 {offsets = [0, 128], sizes = [2, 64], strides = [1, 1]} : vector<2x256xf32> to vector<2x64xf32>
    %130 = vector.extract_strided_slice %118 {offsets = [0, 192], sizes = [2, 64], strides = [1, 1]} : vector<2x256xf32> to vector<2x64xf32>
    %cst_94 = arith.constant 5.000000e-01 : f32
    %131 = vector.broadcast %cst_94 : f32 to vector<2x64xf32>
    %132 = arith.mulf %130, %131 : vector<2x64xf32>
    %cst_95 = arith.constant 5.000000e-01 : f32
    %133 = vector.broadcast %cst_95 : f32 to vector<2x64xf32>
    %134 = arith.addf %132, %133 : vector<2x64xf32>
    %135 = arith.mulf %128, %106 : vector<2x64xf32>
    %136 = arith.mulf %123, %129 : vector<2x64xf32>
    %137 = arith.addf %135, %136 : vector<2x64xf32>
    %138 = math.tanh %137 : vector<2x64xf32>
    %139 = arith.mulf %134, %138 : vector<2x64xf32>
    %140 = arith.index_cast %c1_i32 : i32 to index
    %c0_96 = arith.constant 0 : index
    %c0_97 = arith.constant 0 : index
    %141 = vector.load %arg25[%140, %c0_96, %c0_97] : memref<16x2x64xf32, #tpu.memory_space<vmem>>, vector<1x2x64xf32>
    %142 = vector.shape_cast %141 : vector<1x2x64xf32> to vector<2x64xf32>
    %143 = vector.shape_cast %139 : vector<2x64xf32> to vector<1x2x64xf32>
    tpu.vector_store %arg25[%140, %c0_96, %c0_97], %143 {strides = array<i32>} : memref<16x2x64xf32, #tpu.memory_space<vmem>>, vector<1x2x64xf32>,
    %c2_i32 = arith.constant 2 : i32
    %144 = arith.index_cast %c2_i32 : i32 to index
    %c0_98 = arith.constant 0 : index
    %c0_99 = arith.constant 0 : index
    %145 = vector.load %arg24[%144, %c0_98, %c0_99] : memref<16x2x256xf32, #tpu.memory_space<vmem>>, vector<1x2x256xf32>
    %146 = vector.shape_cast %145 : vector<1x2x256xf32> to vector<2x256xf32>
    %cst_100 = arith.constant dense<0.000000e+00> : vector<2x256xf32>
    %147 = tpu.matmul %139, %80, %cst_100 {dimension_numbers = #tpu.dot_dimension_numbers<[1], [0], [0], [1], [0, 0, 1, 1], [], []>} : vector<2x64xf32>, vector<64x256xf32>, vector<2x256xf32> -> vector<2x256xf32>
    %148 = arith.addf %146, %147 : vector<2x256xf32>
    %149 = math.tanh %148 : vector<2x256xf32>
    %150 = vector.extract_strided_slice %149 {offsets = [0, 0], sizes = [2, 64], strides = [1, 1]} : vector<2x256xf32> to vector<2x64xf32>
    %cst_101 = arith.constant 5.000000e-01 : f32
    %151 = vector.broadcast %cst_101 : f32 to vector<2x64xf32>
    %152 = arith.mulf %150, %151 : vector<2x64xf32>
    %cst_102 = arith.constant 5.000000e-01 : f32
    %153 = vector.broadcast %cst_102 : f32 to vector<2x64xf32>
    %154 = arith.addf %152, %153 : vector<2x64xf32>
    %155 = vector.extract_strided_slice %149 {offsets = [0, 64], sizes = [2, 64], strides = [1, 1]} : vector<2x256xf32> to vector<2x64xf32>
    %cst_103 = arith.constant 5.000000e-01 : f32
    %156 = vector.broadcast %cst_103 : f32 to vector<2x64xf32>
    %157 = arith.mulf %155, %156 : vector<2x64xf32>
    %cst_104 = arith.constant 5.000000e-01 : f32
    %158 = vector.broadcast %cst_104 : f32 to vector<2x64xf32>
    %159 = arith.addf %157, %158 : vector<2x64xf32>
    %160 = vector.extract_strided_slice %149 {offsets = [0, 128], sizes = [2, 64], strides = [1, 1]} : vector<2x256xf32> to vector<2x64xf32>
    %161 = vector.extract_strided_slice %149 {offsets = [0, 192], sizes = [2, 64], strides = [1, 1]} : vector<2x256xf32> to vector<2x64xf32>
    %cst_105 = arith.constant 5.000000e-01 : f32
    %162 = vector.broadcast %cst_105 : f32 to vector<2x64xf32>
    %163 = arith.mulf %161, %162 : vector<2x64xf32>
    %cst_106 = arith.constant 5.000000e-01 : f32
    %164 = vector.broadcast %cst_106 : f32 to vector<2x64xf32>
    %165 = arith.addf %163, %164 : vector<2x64xf32>
    %166 = arith.mulf %159, %137 : vector<2x64xf32>
    %167 = arith.mulf %154, %160 : vector<2x64xf32>
    %168 = arith.addf %166, %167 : vector<2x64xf32>
    %169 = math.tanh %168 : vector<2x64xf32>
    %170 = arith.mulf %165, %169 : vector<2x64xf32>
    %171 = arith.index_cast %c2_i32 : i32 to index
    %c0_107 = arith.constant 0 : index
    %c0_108 = arith.constant 0 : index
    %172 = vector.load %arg25[%171, %c0_107, %c0_108] : memref<16x2x64xf32, #tpu.memory_space<vmem>>, vector<1x2x64xf32>
    %173 = vector.shape_cast %172 : vector<1x2x64xf32> to vector<2x64xf32>
    %174 = vector.shape_cast %170 : vector<2x64xf32> to vector<1x2x64xf32>
    tpu.vector_store %arg25[%171, %c0_107, %c0_108], %174 {strides = array<i32>} : memref<16x2x64xf32, #tpu.memory_space<vmem>>, vector<1x2x64xf32>,
    %c3_i32 = arith.constant 3 : i32
    %175 = arith.index_cast %c3_i32 : i32 to index
    %c0_109 = arith.constant 0 : index
    %c0_110 = arith.constant 0 : index
    %176 = vector.load %arg24[%175, %c0_109, %c0_110] : memref<16x2x256xf32, #tpu.memory_space<vmem>>, vector<1x2x256xf32>
    %177 = vector.shape_cast %176 : vector<1x2x256xf32> to vector<2x256xf32>
    %cst_111 = arith.constant dense<0.000000e+00> : vector<2x256xf32>
    %178 = tpu.matmul %170, %80, %cst_111 {dimension_numbers = #tpu.dot_dimension_numbers<[1], [0], [0], [1], [0, 0, 1, 1], [], []>} : vector<2x64xf32>, vector<64x256xf32>, vector<2x256xf32> -> vector<2x256xf32>
    %179 = arith.addf %177, %178 : vector<2x256xf32>
    %180 = math.tanh %179 : vector<2x256xf32>
    %181 = vector.extract_strided_slice %180 {offsets = [0, 0], sizes = [2, 64], strides = [1, 1]} : vector<2x256xf32> to vector<2x64xf32>
    %cst_112 = arith.constant 5.000000e-01 : f32
    %182 = vector.broadcast %cst_112 : f32 to vector<2x64xf32>
    %183 = arith.mulf %181, %182 : vector<2x64xf32>
    %cst_113 = arith.constant 5.000000e-01 : f32
    %184 = vector.broadcast %cst_113 : f32 to vector<2x64xf32>
    %185 = arith.addf %183, %184 : vector<2x64xf32>
    %186 = vector.extract_strided_slice %180 {offsets = [0, 64], sizes = [2, 64], strides = [1, 1]} : vector<2x256xf32> to vector<2x64xf32>
    %cst_114 = arith.constant 5.000000e-01 : f32
    %187 = vector.broadcast %cst_114 : f32 to vector<2x64xf32>
    %188 = arith.mulf %186, %187 : vector<2x64xf32>
    %cst_115 = arith.constant 5.000000e-01 : f32
    %189 = vector.broadcast %cst_115 : f32 to vector<2x64xf32>
    %190 = arith.addf %188, %189 : vector<2x64xf32>
    %191 = vector.extract_strided_slice %180 {offsets = [0, 128], sizes = [2, 64], strides = [1, 1]} : vector<2x256xf32> to vector<2x64xf32>
    %192 = vector.extract_strided_slice %180 {offsets = [0, 192], sizes = [2, 64], strides = [1, 1]} : vector<2x256xf32> to vector<2x64xf32>
    %cst_116 = arith.constant 5.000000e-01 : f32
    %193 = vector.broadcast %cst_116 : f32 to vector<2x64xf32>
    %194 = arith.mulf %192, %193 : vector<2x64xf32>
    %cst_117 = arith.constant 5.000000e-01 : f32
    %195 = vector.broadcast %cst_117 : f32 to vector<2x64xf32>
    %196 = arith.addf %194, %195 : vector<2x64xf32>
    %197 = arith.mulf %190, %168 : vector<2x64xf32>
    %198 = arith.mulf %185, %191 : vector<2x64xf32>
    %199 = arith.addf %197, %198 : vector<2x64xf32>
    %200 = math.tanh %199 : vector<2x64xf32>
    %201 = arith.mulf %196, %200 : vector<2x64xf32>
    %202 = arith.index_cast %c3_i32 : i32 to index
    %c0_118 = arith.constant 0 : index
    %c0_119 = arith.constant 0 : index
    %203 = vector.load %arg25[%202, %c0_118, %c0_119] : memref<16x2x64xf32, #tpu.memory_space<vmem>>, vector<1x2x64xf32>
    %204 = vector.shape_cast %203 : vector<1x2x64xf32> to vector<2x64xf32>
    %205 = vector.shape_cast %201 : vector<2x64xf32> to vector<1x2x64xf32>
    tpu.vector_store %arg25[%202, %c0_118, %c0_119], %205 {strides = array<i32>} : memref<16x2x64xf32, #tpu.memory_space<vmem>>, vector<1x2x64xf32>,
    %c4_i32 = arith.constant 4 : i32
    %206 = arith.index_cast %c4_i32 : i32 to index
    %c0_120 = arith.constant 0 : index
    %c0_121 = arith.constant 0 : index
    %207 = vector.load %arg24[%206, %c0_120, %c0_121] : memref<16x2x256xf32, #tpu.memory_space<vmem>>, vector<1x2x256xf32>
    %208 = vector.shape_cast %207 : vector<1x2x256xf32> to vector<2x256xf32>
    %cst_122 = arith.constant dense<0.000000e+00> : vector<2x256xf32>
    %209 = tpu.matmul %201, %80, %cst_122 {dimension_numbers = #tpu.dot_dimension_numbers<[1], [0], [0], [1], [0, 0, 1, 1], [], []>} : vector<2x64xf32>, vector<64x256xf32>, vector<2x256xf32> -> vector<2x256xf32>
    %210 = arith.addf %208, %209 : vector<2x256xf32>
    %211 = math.tanh %210 : vector<2x256xf32>
    %212 = vector.extract_strided_slice %211 {offsets = [0, 0], sizes = [2, 64], strides = [1, 1]} : vector<2x256xf32> to vector<2x64xf32>
    %cst_123 = arith.constant 5.000000e-01 : f32
    %213 = vector.broadcast %cst_123 : f32 to vector<2x64xf32>
    %214 = arith.mulf %212, %213 : vector<2x64xf32>
    %cst_124 = arith.constant 5.000000e-01 : f32
    %215 = vector.broadcast %cst_124 : f32 to vector<2x64xf32>
    %216 = arith.addf %214, %215 : vector<2x64xf32>
    %217 = vector.extract_strided_slice %211 {offsets = [0, 64], sizes = [2, 64], strides = [1, 1]} : vector<2x256xf32> to vector<2x64xf32>
    %cst_125 = arith.constant 5.000000e-01 : f32
    %218 = vector.broadcast %cst_125 : f32 to vector<2x64xf32>
    %219 = arith.mulf %217, %218 : vector<2x64xf32>
    %cst_126 = arith.constant 5.000000e-01 : f32
    %220 = vector.broadcast %cst_126 : f32 to vector<2x64xf32>
    %221 = arith.addf %219, %220 : vector<2x64xf32>
    %222 = vector.extract_strided_slice %211 {offsets = [0, 128], sizes = [2, 64], strides = [1, 1]} : vector<2x256xf32> to vector<2x64xf32>
    %223 = vector.extract_strided_slice %211 {offsets = [0, 192], sizes = [2, 64], strides = [1, 1]} : vector<2x256xf32> to vector<2x64xf32>
    %cst_127 = arith.constant 5.000000e-01 : f32
    %224 = vector.broadcast %cst_127 : f32 to vector<2x64xf32>
    %225 = arith.mulf %223, %224 : vector<2x64xf32>
    %cst_128 = arith.constant 5.000000e-01 : f32
    %226 = vector.broadcast %cst_128 : f32 to vector<2x64xf32>
    %227 = arith.addf %225, %226 : vector<2x64xf32>
    %228 = arith.mulf %221, %199 : vector<2x64xf32>
    %229 = arith.mulf %216, %222 : vector<2x64xf32>
    %230 = arith.addf %228, %229 : vector<2x64xf32>
    %231 = math.tanh %230 : vector<2x64xf32>
    %232 = arith.mulf %227, %231 : vector<2x64xf32>
    %233 = arith.index_cast %c4_i32 : i32 to index
    %c0_129 = arith.constant 0 : index
    %c0_130 = arith.constant 0 : index
    %234 = vector.load %arg25[%233, %c0_129, %c0_130] : memref<16x2x64xf32, #tpu.memory_space<vmem>>, vector<1x2x64xf32>
    %235 = vector.shape_cast %234 : vector<1x2x64xf32> to vector<2x64xf32>
    %236 = vector.shape_cast %232 : vector<2x64xf32> to vector<1x2x64xf32>
    tpu.vector_store %arg25[%233, %c0_129, %c0_130], %236 {strides = array<i32>} : memref<16x2x64xf32, #tpu.memory_space<vmem>>, vector<1x2x64xf32>,
    %c5_i32 = arith.constant 5 : i32
    %237 = arith.index_cast %c5_i32 : i32 to index
    %c0_131 = arith.constant 0 : index
    %c0_132 = arith.constant 0 : index
    %238 = vector.load %arg24[%237, %c0_131, %c0_132] : memref<16x2x256xf32, #tpu.memory_space<vmem>>, vector<1x2x256xf32>
    %239 = vector.shape_cast %238 : vector<1x2x256xf32> to vector<2x256xf32>
    %cst_133 = arith.constant dense<0.000000e+00> : vector<2x256xf32>
    %240 = tpu.matmul %232, %80, %cst_133 {dimension_numbers = #tpu.dot_dimension_numbers<[1], [0], [0], [1], [0, 0, 1, 1], [], []>} : vector<2x64xf32>, vector<64x256xf32>, vector<2x256xf32> -> vector<2x256xf32>
    %241 = arith.addf %239, %240 : vector<2x256xf32>
    %242 = math.tanh %241 : vector<2x256xf32>
    %243 = vector.extract_strided_slice %242 {offsets = [0, 0], sizes = [2, 64], strides = [1, 1]} : vector<2x256xf32> to vector<2x64xf32>
    %cst_134 = arith.constant 5.000000e-01 : f32
    %244 = vector.broadcast %cst_134 : f32 to vector<2x64xf32>
    %245 = arith.mulf %243, %244 : vector<2x64xf32>
    %cst_135 = arith.constant 5.000000e-01 : f32
    %246 = vector.broadcast %cst_135 : f32 to vector<2x64xf32>
    %247 = arith.addf %245, %246 : vector<2x64xf32>
    %248 = vector.extract_strided_slice %242 {offsets = [0, 64], sizes = [2, 64], strides = [1, 1]} : vector<2x256xf32> to vector<2x64xf32>
    %cst_136 = arith.constant 5.000000e-01 : f32
    %249 = vector.broadcast %cst_136 : f32 to vector<2x64xf32>
    %250 = arith.mulf %248, %249 : vector<2x64xf32>
    %cst_137 = arith.constant 5.000000e-01 : f32
    %251 = vector.broadcast %cst_137 : f32 to vector<2x64xf32>
    %252 = arith.addf %250, %251 : vector<2x64xf32>
    %253 = vector.extract_strided_slice %242 {offsets = [0, 128], sizes = [2, 64], strides = [1, 1]} : vector<2x256xf32> to vector<2x64xf32>
    %254 = vector.extract_strided_slice %242 {offsets = [0, 192], sizes = [2, 64], strides = [1, 1]} : vector<2x256xf32> to vector<2x64xf32>
    %cst_138 = arith.constant 5.000000e-01 : f32
    %255 = vector.broadcast %cst_138 : f32 to vector<2x64xf32>
    %256 = arith.mulf %254, %255 : vector<2x64xf32>
    %cst_139 = arith.constant 5.000000e-01 : f32
    %257 = vector.broadcast %cst_139 : f32 to vector<2x64xf32>
    %258 = arith.addf %256, %257 : vector<2x64xf32>
    %259 = arith.mulf %252, %230 : vector<2x64xf32>
    %260 = arith.mulf %247, %253 : vector<2x64xf32>
    %261 = arith.addf %259, %260 : vector<2x64xf32>
    %262 = math.tanh %261 : vector<2x64xf32>
    %263 = arith.mulf %258, %262 : vector<2x64xf32>
    %264 = arith.index_cast %c5_i32 : i32 to index
    %c0_140 = arith.constant 0 : index
    %c0_141 = arith.constant 0 : index
    %265 = vector.load %arg25[%264, %c0_140, %c0_141] : memref<16x2x64xf32, #tpu.memory_space<vmem>>, vector<1x2x64xf32>
    %266 = vector.shape_cast %265 : vector<1x2x64xf32> to vector<2x64xf32>
    %267 = vector.shape_cast %263 : vector<2x64xf32> to vector<1x2x64xf32>
    tpu.vector_store %arg25[%264, %c0_140, %c0_141], %267 {strides = array<i32>} : memref<16x2x64xf32, #tpu.memory_space<vmem>>, vector<1x2x64xf32>,
    %c6_i32 = arith.constant 6 : i32
    %268 = arith.index_cast %c6_i32 : i32 to index
    %c0_142 = arith.constant 0 : index
    %c0_143 = arith.constant 0 : index
    %269 = vector.load %arg24[%268, %c0_142, %c0_143] : memref<16x2x256xf32, #tpu.memory_space<vmem>>, vector<1x2x256xf32>
    %270 = vector.shape_cast %269 : vector<1x2x256xf32> to vector<2x256xf32>
    %cst_144 = arith.constant dense<0.000000e+00> : vector<2x256xf32>
    %271 = tpu.matmul %263, %80, %cst_144 {dimension_numbers = #tpu.dot_dimension_numbers<[1], [0], [0], [1], [0, 0, 1, 1], [], []>} : vector<2x64xf32>, vector<64x256xf32>, vector<2x256xf32> -> vector<2x256xf32>
    %272 = arith.addf %270, %271 : vector<2x256xf32>
    %273 = math.tanh %272 : vector<2x256xf32>
    %274 = vector.extract_strided_slice %273 {offsets = [0, 0], sizes = [2, 64], strides = [1, 1]} : vector<2x256xf32> to vector<2x64xf32>
    %cst_145 = arith.constant 5.000000e-01 : f32
    %275 = vector.broadcast %cst_145 : f32 to vector<2x64xf32>
    %276 = arith.mulf %274, %275 : vector<2x64xf32>
    %cst_146 = arith.constant 5.000000e-01 : f32
    %277 = vector.broadcast %cst_146 : f32 to vector<2x64xf32>
    %278 = arith.addf %276, %277 : vector<2x64xf32>
    %279 = vector.extract_strided_slice %273 {offsets = [0, 64], sizes = [2, 64], strides = [1, 1]} : vector<2x256xf32> to vector<2x64xf32>
    %cst_147 = arith.constant 5.000000e-01 : f32
    %280 = vector.broadcast %cst_147 : f32 to vector<2x64xf32>
    %281 = arith.mulf %279, %280 : vector<2x64xf32>
    %cst_148 = arith.constant 5.000000e-01 : f32
    %282 = vector.broadcast %cst_148 : f32 to vector<2x64xf32>
    %283 = arith.addf %281, %282 : vector<2x64xf32>
    %284 = vector.extract_strided_slice %273 {offsets = [0, 128], sizes = [2, 64], strides = [1, 1]} : vector<2x256xf32> to vector<2x64xf32>
    %285 = vector.extract_strided_slice %273 {offsets = [0, 192], sizes = [2, 64], strides = [1, 1]} : vector<2x256xf32> to vector<2x64xf32>
    %cst_149 = arith.constant 5.000000e-01 : f32
    %286 = vector.broadcast %cst_149 : f32 to vector<2x64xf32>
    %287 = arith.mulf %285, %286 : vector<2x64xf32>
    %cst_150 = arith.constant 5.000000e-01 : f32
    %288 = vector.broadcast %cst_150 : f32 to vector<2x64xf32>
    %289 = arith.addf %287, %288 : vector<2x64xf32>
    %290 = arith.mulf %283, %261 : vector<2x64xf32>
    %291 = arith.mulf %278, %284 : vector<2x64xf32>
    %292 = arith.addf %290, %291 : vector<2x64xf32>
    %293 = math.tanh %292 : vector<2x64xf32>
    %294 = arith.mulf %289, %293 : vector<2x64xf32>
    %295 = arith.index_cast %c6_i32 : i32 to index
    %c0_151 = arith.constant 0 : index
    %c0_152 = arith.constant 0 : index
    %296 = vector.load %arg25[%295, %c0_151, %c0_152] : memref<16x2x64xf32, #tpu.memory_space<vmem>>, vector<1x2x64xf32>
    %297 = vector.shape_cast %296 : vector<1x2x64xf32> to vector<2x64xf32>
    %298 = vector.shape_cast %294 : vector<2x64xf32> to vector<1x2x64xf32>
    tpu.vector_store %arg25[%295, %c0_151, %c0_152], %298 {strides = array<i32>} : memref<16x2x64xf32, #tpu.memory_space<vmem>>, vector<1x2x64xf32>,
    %c7_i32 = arith.constant 7 : i32
    %299 = arith.index_cast %c7_i32 : i32 to index
    %c0_153 = arith.constant 0 : index
    %c0_154 = arith.constant 0 : index
    %300 = vector.load %arg24[%299, %c0_153, %c0_154] : memref<16x2x256xf32, #tpu.memory_space<vmem>>, vector<1x2x256xf32>
    %301 = vector.shape_cast %300 : vector<1x2x256xf32> to vector<2x256xf32>
    %cst_155 = arith.constant dense<0.000000e+00> : vector<2x256xf32>
    %302 = tpu.matmul %294, %80, %cst_155 {dimension_numbers = #tpu.dot_dimension_numbers<[1], [0], [0], [1], [0, 0, 1, 1], [], []>} : vector<2x64xf32>, vector<64x256xf32>, vector<2x256xf32> -> vector<2x256xf32>
    %303 = arith.addf %301, %302 : vector<2x256xf32>
    %304 = math.tanh %303 : vector<2x256xf32>
    %305 = vector.extract_strided_slice %304 {offsets = [0, 0], sizes = [2, 64], strides = [1, 1]} : vector<2x256xf32> to vector<2x64xf32>
    %cst_156 = arith.constant 5.000000e-01 : f32
    %306 = vector.broadcast %cst_156 : f32 to vector<2x64xf32>
    %307 = arith.mulf %305, %306 : vector<2x64xf32>
    %cst_157 = arith.constant 5.000000e-01 : f32
    %308 = vector.broadcast %cst_157 : f32 to vector<2x64xf32>
    %309 = arith.addf %307, %308 : vector<2x64xf32>
    %310 = vector.extract_strided_slice %304 {offsets = [0, 64], sizes = [2, 64], strides = [1, 1]} : vector<2x256xf32> to vector<2x64xf32>
    %cst_158 = arith.constant 5.000000e-01 : f32
    %311 = vector.broadcast %cst_158 : f32 to vector<2x64xf32>
    %312 = arith.mulf %310, %311 : vector<2x64xf32>
    %cst_159 = arith.constant 5.000000e-01 : f32
    %313 = vector.broadcast %cst_159 : f32 to vector<2x64xf32>
    %314 = arith.addf %312, %313 : vector<2x64xf32>
    %315 = vector.extract_strided_slice %304 {offsets = [0, 128], sizes = [2, 64], strides = [1, 1]} : vector<2x256xf32> to vector<2x64xf32>
    %316 = vector.extract_strided_slice %304 {offsets = [0, 192], sizes = [2, 64], strides = [1, 1]} : vector<2x256xf32> to vector<2x64xf32>
    %cst_160 = arith.constant 5.000000e-01 : f32
    %317 = vector.broadcast %cst_160 : f32 to vector<2x64xf32>
    %318 = arith.mulf %316, %317 : vector<2x64xf32>
    %cst_161 = arith.constant 5.000000e-01 : f32
    %319 = vector.broadcast %cst_161 : f32 to vector<2x64xf32>
    %320 = arith.addf %318, %319 : vector<2x64xf32>
    %321 = arith.mulf %314, %292 : vector<2x64xf32>
    %322 = arith.mulf %309, %315 : vector<2x64xf32>
    %323 = arith.addf %321, %322 : vector<2x64xf32>
    %324 = math.tanh %323 : vector<2x64xf32>
    %325 = arith.mulf %320, %324 : vector<2x64xf32>
    %326 = arith.index_cast %c7_i32 : i32 to index
    %c0_162 = arith.constant 0 : index
    %c0_163 = arith.constant 0 : index
    %327 = vector.load %arg25[%326, %c0_162, %c0_163] : memref<16x2x64xf32, #tpu.memory_space<vmem>>, vector<1x2x64xf32>
    %328 = vector.shape_cast %327 : vector<1x2x64xf32> to vector<2x64xf32>
    %329 = vector.shape_cast %325 : vector<2x64xf32> to vector<1x2x64xf32>
    tpu.vector_store %arg25[%326, %c0_162, %c0_163], %329 {strides = array<i32>} : memref<16x2x64xf32, #tpu.memory_space<vmem>>, vector<1x2x64xf32>,
    %c8_i32 = arith.constant 8 : i32
    %330 = arith.index_cast %c8_i32 : i32 to index
    %c0_164 = arith.constant 0 : index
    %c0_165 = arith.constant 0 : index
    %331 = vector.load %arg24[%330, %c0_164, %c0_165] : memref<16x2x256xf32, #tpu.memory_space<vmem>>, vector<1x2x256xf32>
    %332 = vector.shape_cast %331 : vector<1x2x256xf32> to vector<2x256xf32>
    %cst_166 = arith.constant dense<0.000000e+00> : vector<2x256xf32>
    %333 = tpu.matmul %325, %80, %cst_166 {dimension_numbers = #tpu.dot_dimension_numbers<[1], [0], [0], [1], [0, 0, 1, 1], [], []>} : vector<2x64xf32>, vector<64x256xf32>, vector<2x256xf32> -> vector<2x256xf32>
    %334 = arith.addf %332, %333 : vector<2x256xf32>
    %335 = math.tanh %334 : vector<2x256xf32>
    %336 = vector.extract_strided_slice %335 {offsets = [0, 0], sizes = [2, 64], strides = [1, 1]} : vector<2x256xf32> to vector<2x64xf32>
    %cst_167 = arith.constant 5.000000e-01 : f32
    %337 = vector.broadcast %cst_167 : f32 to vector<2x64xf32>
    %338 = arith.mulf %336, %337 : vector<2x64xf32>
    %cst_168 = arith.constant 5.000000e-01 : f32
    %339 = vector.broadcast %cst_168 : f32 to vector<2x64xf32>
    %340 = arith.addf %338, %339 : vector<2x64xf32>
    %341 = vector.extract_strided_slice %335 {offsets = [0, 64], sizes = [2, 64], strides = [1, 1]} : vector<2x256xf32> to vector<2x64xf32>
    %cst_169 = arith.constant 5.000000e-01 : f32
    %342 = vector.broadcast %cst_169 : f32 to vector<2x64xf32>
    %343 = arith.mulf %341, %342 : vector<2x64xf32>
    %cst_170 = arith.constant 5.000000e-01 : f32
    %344 = vector.broadcast %cst_170 : f32 to vector<2x64xf32>
    %345 = arith.addf %343, %344 : vector<2x64xf32>
    %346 = vector.extract_strided_slice %335 {offsets = [0, 128], sizes = [2, 64], strides = [1, 1]} : vector<2x256xf32> to vector<2x64xf32>
    %347 = vector.extract_strided_slice %335 {offsets = [0, 192], sizes = [2, 64], strides = [1, 1]} : vector<2x256xf32> to vector<2x64xf32>
    %cst_171 = arith.constant 5.000000e-01 : f32
    %348 = vector.broadcast %cst_171 : f32 to vector<2x64xf32>
    %349 = arith.mulf %347, %348 : vector<2x64xf32>
    %cst_172 = arith.constant 5.000000e-01 : f32
    %350 = vector.broadcast %cst_172 : f32 to vector<2x64xf32>
    %351 = arith.addf %349, %350 : vector<2x64xf32>
    %352 = arith.mulf %345, %323 : vector<2x64xf32>
    %353 = arith.mulf %340, %346 : vector<2x64xf32>
    %354 = arith.addf %352, %353 : vector<2x64xf32>
    %355 = math.tanh %354 : vector<2x64xf32>
    %356 = arith.mulf %351, %355 : vector<2x64xf32>
    %357 = arith.index_cast %c8_i32 : i32 to index
    %c0_173 = arith.constant 0 : index
    %c0_174 = arith.constant 0 : index
    %358 = vector.load %arg25[%357, %c0_173, %c0_174] : memref<16x2x64xf32, #tpu.memory_space<vmem>>, vector<1x2x64xf32>
    %359 = vector.shape_cast %358 : vector<1x2x64xf32> to vector<2x64xf32>
    %360 = vector.shape_cast %356 : vector<2x64xf32> to vector<1x2x64xf32>
    tpu.vector_store %arg25[%357, %c0_173, %c0_174], %360 {strides = array<i32>} : memref<16x2x64xf32, #tpu.memory_space<vmem>>, vector<1x2x64xf32>,
    %c9_i32 = arith.constant 9 : i32
    %361 = arith.index_cast %c9_i32 : i32 to index
    %c0_175 = arith.constant 0 : index
    %c0_176 = arith.constant 0 : index
    %362 = vector.load %arg24[%361, %c0_175, %c0_176] : memref<16x2x256xf32, #tpu.memory_space<vmem>>, vector<1x2x256xf32>
    %363 = vector.shape_cast %362 : vector<1x2x256xf32> to vector<2x256xf32>
    %cst_177 = arith.constant dense<0.000000e+00> : vector<2x256xf32>
    %364 = tpu.matmul %356, %80, %cst_177 {dimension_numbers = #tpu.dot_dimension_numbers<[1], [0], [0], [1], [0, 0, 1, 1], [], []>} : vector<2x64xf32>, vector<64x256xf32>, vector<2x256xf32> -> vector<2x256xf32>
    %365 = arith.addf %363, %364 : vector<2x256xf32>
    %366 = math.tanh %365 : vector<2x256xf32>
    %367 = vector.extract_strided_slice %366 {offsets = [0, 0], sizes = [2, 64], strides = [1, 1]} : vector<2x256xf32> to vector<2x64xf32>
    %cst_178 = arith.constant 5.000000e-01 : f32
    %368 = vector.broadcast %cst_178 : f32 to vector<2x64xf32>
    %369 = arith.mulf %367, %368 : vector<2x64xf32>
    %cst_179 = arith.constant 5.000000e-01 : f32
    %370 = vector.broadcast %cst_179 : f32 to vector<2x64xf32>
    %371 = arith.addf %369, %370 : vector<2x64xf32>
    %372 = vector.extract_strided_slice %366 {offsets = [0, 64], sizes = [2, 64], strides = [1, 1]} : vector<2x256xf32> to vector<2x64xf32>
    %cst_180 = arith.constant 5.000000e-01 : f32
    %373 = vector.broadcast %cst_180 : f32 to vector<2x64xf32>
    %374 = arith.mulf %372, %373 : vector<2x64xf32>
    %cst_181 = arith.constant 5.000000e-01 : f32
    %375 = vector.broadcast %cst_181 : f32 to vector<2x64xf32>
    %376 = arith.addf %374, %375 : vector<2x64xf32>
    %377 = vector.extract_strided_slice %366 {offsets = [0, 128], sizes = [2, 64], strides = [1, 1]} : vector<2x256xf32> to vector<2x64xf32>
    %378 = vector.extract_strided_slice %366 {offsets = [0, 192], sizes = [2, 64], strides = [1, 1]} : vector<2x256xf32> to vector<2x64xf32>
    %cst_182 = arith.constant 5.000000e-01 : f32
    %379 = vector.broadcast %cst_182 : f32 to vector<2x64xf32>
    %380 = arith.mulf %378, %379 : vector<2x64xf32>
    %cst_183 = arith.constant 5.000000e-01 : f32
    %381 = vector.broadcast %cst_183 : f32 to vector<2x64xf32>
    %382 = arith.addf %380, %381 : vector<2x64xf32>
    %383 = arith.mulf %376, %354 : vector<2x64xf32>
    %384 = arith.mulf %371, %377 : vector<2x64xf32>
    %385 = arith.addf %383, %384 : vector<2x64xf32>
    %386 = math.tanh %385 : vector<2x64xf32>
    %387 = arith.mulf %382, %386 : vector<2x64xf32>
    %388 = arith.index_cast %c9_i32 : i32 to index
    %c0_184 = arith.constant 0 : index
    %c0_185 = arith.constant 0 : index
    %389 = vector.load %arg25[%388, %c0_184, %c0_185] : memref<16x2x64xf32, #tpu.memory_space<vmem>>, vector<1x2x64xf32>
    %390 = vector.shape_cast %389 : vector<1x2x64xf32> to vector<2x64xf32>
    %391 = vector.shape_cast %387 : vector<2x64xf32> to vector<1x2x64xf32>
    tpu.vector_store %arg25[%388, %c0_184, %c0_185], %391 {strides = array<i32>} : memref<16x2x64xf32, #tpu.memory_space<vmem>>, vector<1x2x64xf32>,
    %c10_i32 = arith.constant 10 : i32
    %392 = arith.index_cast %c10_i32 : i32 to index
    %c0_186 = arith.constant 0 : index
    %c0_187 = arith.constant 0 : index
    %393 = vector.load %arg24[%392, %c0_186, %c0_187] : memref<16x2x256xf32, #tpu.memory_space<vmem>>, vector<1x2x256xf32>
    %394 = vector.shape_cast %393 : vector<1x2x256xf32> to vector<2x256xf32>
    %cst_188 = arith.constant dense<0.000000e+00> : vector<2x256xf32>
    %395 = tpu.matmul %387, %80, %cst_188 {dimension_numbers = #tpu.dot_dimension_numbers<[1], [0], [0], [1], [0, 0, 1, 1], [], []>} : vector<2x64xf32>, vector<64x256xf32>, vector<2x256xf32> -> vector<2x256xf32>
    %396 = arith.addf %394, %395 : vector<2x256xf32>
    %397 = math.tanh %396 : vector<2x256xf32>
    %398 = vector.extract_strided_slice %397 {offsets = [0, 0], sizes = [2, 64], strides = [1, 1]} : vector<2x256xf32> to vector<2x64xf32>
    %cst_189 = arith.constant 5.000000e-01 : f32
    %399 = vector.broadcast %cst_189 : f32 to vector<2x64xf32>
    %400 = arith.mulf %398, %399 : vector<2x64xf32>
    %cst_190 = arith.constant 5.000000e-01 : f32
    %401 = vector.broadcast %cst_190 : f32 to vector<2x64xf32>
    %402 = arith.addf %400, %401 : vector<2x64xf32>
    %403 = vector.extract_strided_slice %397 {offsets = [0, 64], sizes = [2, 64], strides = [1, 1]} : vector<2x256xf32> to vector<2x64xf32>
    %cst_191 = arith.constant 5.000000e-01 : f32
    %404 = vector.broadcast %cst_191 : f32 to vector<2x64xf32>
    %405 = arith.mulf %403, %404 : vector<2x64xf32>
    %cst_192 = arith.constant 5.000000e-01 : f32
    %406 = vector.broadcast %cst_192 : f32 to vector<2x64xf32>
    %407 = arith.addf %405, %406 : vector<2x64xf32>
    %408 = vector.extract_strided_slice %397 {offsets = [0, 128], sizes = [2, 64], strides = [1, 1]} : vector<2x256xf32> to vector<2x64xf32>
    %409 = vector.extract_strided_slice %397 {offsets = [0, 192], sizes = [2, 64], strides = [1, 1]} : vector<2x256xf32> to vector<2x64xf32>
    %cst_193 = arith.constant 5.000000e-01 : f32
    %410 = vector.broadcast %cst_193 : f32 to vector<2x64xf32>
    %411 = arith.mulf %409, %410 : vector<2x64xf32>
    %cst_194 = arith.constant 5.000000e-01 : f32
    %412 = vector.broadcast %cst_194 : f32 to vector<2x64xf32>
    %413 = arith.addf %411, %412 : vector<2x64xf32>
    %414 = arith.mulf %407, %385 : vector<2x64xf32>
    %415 = arith.mulf %402, %408 : vector<2x64xf32>
    %416 = arith.addf %414, %415 : vector<2x64xf32>
    %417 = math.tanh %416 : vector<2x64xf32>
    %418 = arith.mulf %413, %417 : vector<2x64xf32>
    %419 = arith.index_cast %c10_i32 : i32 to index
    %c0_195 = arith.constant 0 : index
    %c0_196 = arith.constant 0 : index
    %420 = vector.load %arg25[%419, %c0_195, %c0_196] : memref<16x2x64xf32, #tpu.memory_space<vmem>>, vector<1x2x64xf32>
    %421 = vector.shape_cast %420 : vector<1x2x64xf32> to vector<2x64xf32>
    %422 = vector.shape_cast %418 : vector<2x64xf32> to vector<1x2x64xf32>
    tpu.vector_store %arg25[%419, %c0_195, %c0_196], %422 {strides = array<i32>} : memref<16x2x64xf32, #tpu.memory_space<vmem>>, vector<1x2x64xf32>,
    %c11_i32 = arith.constant 11 : i32
    %423 = arith.index_cast %c11_i32 : i32 to index
    %c0_197 = arith.constant 0 : index
    %c0_198 = arith.constant 0 : index
    %424 = vector.load %arg24[%423, %c0_197, %c0_198] : memref<16x2x256xf32, #tpu.memory_space<vmem>>, vector<1x2x256xf32>
    %425 = vector.shape_cast %424 : vector<1x2x256xf32> to vector<2x256xf32>
    %cst_199 = arith.constant dense<0.000000e+00> : vector<2x256xf32>
    %426 = tpu.matmul %418, %80, %cst_199 {dimension_numbers = #tpu.dot_dimension_numbers<[1], [0], [0], [1], [0, 0, 1, 1], [], []>} : vector<2x64xf32>, vector<64x256xf32>, vector<2x256xf32> -> vector<2x256xf32>
    %427 = arith.addf %425, %426 : vector<2x256xf32>
    %428 = math.tanh %427 : vector<2x256xf32>
    %429 = vector.extract_strided_slice %428 {offsets = [0, 0], sizes = [2, 64], strides = [1, 1]} : vector<2x256xf32> to vector<2x64xf32>
    %cst_200 = arith.constant 5.000000e-01 : f32
    %430 = vector.broadcast %cst_200 : f32 to vector<2x64xf32>
    %431 = arith.mulf %429, %430 : vector<2x64xf32>
    %cst_201 = arith.constant 5.000000e-01 : f32
    %432 = vector.broadcast %cst_201 : f32 to vector<2x64xf32>
    %433 = arith.addf %431, %432 : vector<2x64xf32>
    %434 = vector.extract_strided_slice %428 {offsets = [0, 64], sizes = [2, 64], strides = [1, 1]} : vector<2x256xf32> to vector<2x64xf32>
    %cst_202 = arith.constant 5.000000e-01 : f32
    %435 = vector.broadcast %cst_202 : f32 to vector<2x64xf32>
    %436 = arith.mulf %434, %435 : vector<2x64xf32>
    %cst_203 = arith.constant 5.000000e-01 : f32
    %437 = vector.broadcast %cst_203 : f32 to vector<2x64xf32>
    %438 = arith.addf %436, %437 : vector<2x64xf32>
    %439 = vector.extract_strided_slice %428 {offsets = [0, 128], sizes = [2, 64], strides = [1, 1]} : vector<2x256xf32> to vector<2x64xf32>
    %440 = vector.extract_strided_slice %428 {offsets = [0, 192], sizes = [2, 64], strides = [1, 1]} : vector<2x256xf32> to vector<2x64xf32>
    %cst_204 = arith.constant 5.000000e-01 : f32
    %441 = vector.broadcast %cst_204 : f32 to vector<2x64xf32>
    %442 = arith.mulf %440, %441 : vector<2x64xf32>
    %cst_205 = arith.constant 5.000000e-01 : f32
    %443 = vector.broadcast %cst_205 : f32 to vector<2x64xf32>
    %444 = arith.addf %442, %443 : vector<2x64xf32>
    %445 = arith.mulf %438, %416 : vector<2x64xf32>
    %446 = arith.mulf %433, %439 : vector<2x64xf32>
    %447 = arith.addf %445, %446 : vector<2x64xf32>
    %448 = math.tanh %447 : vector<2x64xf32>
    %449 = arith.mulf %444, %448 : vector<2x64xf32>
    %450 = arith.index_cast %c11_i32 : i32 to index
    %c0_206 = arith.constant 0 : index
    %c0_207 = arith.constant 0 : index
    %451 = vector.load %arg25[%450, %c0_206, %c0_207] : memref<16x2x64xf32, #tpu.memory_space<vmem>>, vector<1x2x64xf32>
    %452 = vector.shape_cast %451 : vector<1x2x64xf32> to vector<2x64xf32>
    %453 = vector.shape_cast %449 : vector<2x64xf32> to vector<1x2x64xf32>
    tpu.vector_store %arg25[%450, %c0_206, %c0_207], %453 {strides = array<i32>} : memref<16x2x64xf32, #tpu.memory_space<vmem>>, vector<1x2x64xf32>,
    %c12_i32 = arith.constant 12 : i32
    %454 = arith.index_cast %c12_i32 : i32 to index
    %c0_208 = arith.constant 0 : index
    %c0_209 = arith.constant 0 : index
    %455 = vector.load %arg24[%454, %c0_208, %c0_209] : memref<16x2x256xf32, #tpu.memory_space<vmem>>, vector<1x2x256xf32>
    %456 = vector.shape_cast %455 : vector<1x2x256xf32> to vector<2x256xf32>
    %cst_210 = arith.constant dense<0.000000e+00> : vector<2x256xf32>
    %457 = tpu.matmul %449, %80, %cst_210 {dimension_numbers = #tpu.dot_dimension_numbers<[1], [0], [0], [1], [0, 0, 1, 1], [], []>} : vector<2x64xf32>, vector<64x256xf32>, vector<2x256xf32> -> vector<2x256xf32>
    %458 = arith.addf %456, %457 : vector<2x256xf32>
    %459 = math.tanh %458 : vector<2x256xf32>
    %460 = vector.extract_strided_slice %459 {offsets = [0, 0], sizes = [2, 64], strides = [1, 1]} : vector<2x256xf32> to vector<2x64xf32>
    %cst_211 = arith.constant 5.000000e-01 : f32
    %461 = vector.broadcast %cst_211 : f32 to vector<2x64xf32>
    %462 = arith.mulf %460, %461 : vector<2x64xf32>
    %cst_212 = arith.constant 5.000000e-01 : f32
    %463 = vector.broadcast %cst_212 : f32 to vector<2x64xf32>
    %464 = arith.addf %462, %463 : vector<2x64xf32>
    %465 = vector.extract_strided_slice %459 {offsets = [0, 64], sizes = [2, 64], strides = [1, 1]} : vector<2x256xf32> to vector<2x64xf32>
    %cst_213 = arith.constant 5.000000e-01 : f32
    %466 = vector.broadcast %cst_213 : f32 to vector<2x64xf32>
    %467 = arith.mulf %465, %466 : vector<2x64xf32>
    %cst_214 = arith.constant 5.000000e-01 : f32
    %468 = vector.broadcast %cst_214 : f32 to vector<2x64xf32>
    %469 = arith.addf %467, %468 : vector<2x64xf32>
    %470 = vector.extract_strided_slice %459 {offsets = [0, 128], sizes = [2, 64], strides = [1, 1]} : vector<2x256xf32> to vector<2x64xf32>
    %471 = vector.extract_strided_slice %459 {offsets = [0, 192], sizes = [2, 64], strides = [1, 1]} : vector<2x256xf32> to vector<2x64xf32>
    %cst_215 = arith.constant 5.000000e-01 : f32
    %472 = vector.broadcast %cst_215 : f32 to vector<2x64xf32>
    %473 = arith.mulf %471, %472 : vector<2x64xf32>
    %cst_216 = arith.constant 5.000000e-01 : f32
    %474 = vector.broadcast %cst_216 : f32 to vector<2x64xf32>
    %475 = arith.addf %473, %474 : vector<2x64xf32>
    %476 = arith.mulf %469, %447 : vector<2x64xf32>
    %477 = arith.mulf %464, %470 : vector<2x64xf32>
    %478 = arith.addf %476, %477 : vector<2x64xf32>
    %479 = math.tanh %478 : vector<2x64xf32>
    %480 = arith.mulf %475, %479 : vector<2x64xf32>
    %481 = arith.index_cast %c12_i32 : i32 to index
    %c0_217 = arith.constant 0 : index
    %c0_218 = arith.constant 0 : index
    %482 = vector.load %arg25[%481, %c0_217, %c0_218] : memref<16x2x64xf32, #tpu.memory_space<vmem>>, vector<1x2x64xf32>
    %483 = vector.shape_cast %482 : vector<1x2x64xf32> to vector<2x64xf32>
    %484 = vector.shape_cast %480 : vector<2x64xf32> to vector<1x2x64xf32>
    tpu.vector_store %arg25[%481, %c0_217, %c0_218], %484 {strides = array<i32>} : memref<16x2x64xf32, #tpu.memory_space<vmem>>, vector<1x2x64xf32>,
    %c13_i32 = arith.constant 13 : i32
    %485 = arith.index_cast %c13_i32 : i32 to index
    %c0_219 = arith.constant 0 : index
    %c0_220 = arith.constant 0 : index
    %486 = vector.load %arg24[%485, %c0_219, %c0_220] : memref<16x2x256xf32, #tpu.memory_space<vmem>>, vector<1x2x256xf32>
    %487 = vector.shape_cast %486 : vector<1x2x256xf32> to vector<2x256xf32>
    %cst_221 = arith.constant dense<0.000000e+00> : vector<2x256xf32>
    %488 = tpu.matmul %480, %80, %cst_221 {dimension_numbers = #tpu.dot_dimension_numbers<[1], [0], [0], [1], [0, 0, 1, 1], [], []>} : vector<2x64xf32>, vector<64x256xf32>, vector<2x256xf32> -> vector<2x256xf32>
    %489 = arith.addf %487, %488 : vector<2x256xf32>
    %490 = math.tanh %489 : vector<2x256xf32>
    %491 = vector.extract_strided_slice %490 {offsets = [0, 0], sizes = [2, 64], strides = [1, 1]} : vector<2x256xf32> to vector<2x64xf32>
    %cst_222 = arith.constant 5.000000e-01 : f32
    %492 = vector.broadcast %cst_222 : f32 to vector<2x64xf32>
    %493 = arith.mulf %491, %492 : vector<2x64xf32>
    %cst_223 = arith.constant 5.000000e-01 : f32
    %494 = vector.broadcast %cst_223 : f32 to vector<2x64xf32>
    %495 = arith.addf %493, %494 : vector<2x64xf32>
    %496 = vector.extract_strided_slice %490 {offsets = [0, 64], sizes = [2, 64], strides = [1, 1]} : vector<2x256xf32> to vector<2x64xf32>
    %cst_224 = arith.constant 5.000000e-01 : f32
    %497 = vector.broadcast %cst_224 : f32 to vector<2x64xf32>
    %498 = arith.mulf %496, %497 : vector<2x64xf32>
    %cst_225 = arith.constant 5.000000e-01 : f32
    %499 = vector.broadcast %cst_225 : f32 to vector<2x64xf32>
    %500 = arith.addf %498, %499 : vector<2x64xf32>
    %501 = vector.extract_strided_slice %490 {offsets = [0, 128], sizes = [2, 64], strides = [1, 1]} : vector<2x256xf32> to vector<2x64xf32>
    %502 = vector.extract_strided_slice %490 {offsets = [0, 192], sizes = [2, 64], strides = [1, 1]} : vector<2x256xf32> to vector<2x64xf32>
    %cst_226 = arith.constant 5.000000e-01 : f32
    %503 = vector.broadcast %cst_226 : f32 to vector<2x64xf32>
    %504 = arith.mulf %502, %503 : vector<2x64xf32>
    %cst_227 = arith.constant 5.000000e-01 : f32
    %505 = vector.broadcast %cst_227 : f32 to vector<2x64xf32>
    %506 = arith.addf %504, %505 : vector<2x64xf32>
    %507 = arith.mulf %500, %478 : vector<2x64xf32>
    %508 = arith.mulf %495, %501 : vector<2x64xf32>
    %509 = arith.addf %507, %508 : vector<2x64xf32>
    %510 = math.tanh %509 : vector<2x64xf32>
    %511 = arith.mulf %506, %510 : vector<2x64xf32>
    %512 = arith.index_cast %c13_i32 : i32 to index
    %c0_228 = arith.constant 0 : index
    %c0_229 = arith.constant 0 : index
    %513 = vector.load %arg25[%512, %c0_228, %c0_229] : memref<16x2x64xf32, #tpu.memory_space<vmem>>, vector<1x2x64xf32>
    %514 = vector.shape_cast %513 : vector<1x2x64xf32> to vector<2x64xf32>
    %515 = vector.shape_cast %511 : vector<2x64xf32> to vector<1x2x64xf32>
    tpu.vector_store %arg25[%512, %c0_228, %c0_229], %515 {strides = array<i32>} : memref<16x2x64xf32, #tpu.memory_space<vmem>>, vector<1x2x64xf32>,
    %c14_i32 = arith.constant 14 : i32
    %516 = arith.index_cast %c14_i32 : i32 to index
    %c0_230 = arith.constant 0 : index
    %c0_231 = arith.constant 0 : index
    %517 = vector.load %arg24[%516, %c0_230, %c0_231] : memref<16x2x256xf32, #tpu.memory_space<vmem>>, vector<1x2x256xf32>
    %518 = vector.shape_cast %517 : vector<1x2x256xf32> to vector<2x256xf32>
    %cst_232 = arith.constant dense<0.000000e+00> : vector<2x256xf32>
    %519 = tpu.matmul %511, %80, %cst_232 {dimension_numbers = #tpu.dot_dimension_numbers<[1], [0], [0], [1], [0, 0, 1, 1], [], []>} : vector<2x64xf32>, vector<64x256xf32>, vector<2x256xf32> -> vector<2x256xf32>
    %520 = arith.addf %518, %519 : vector<2x256xf32>
    %521 = math.tanh %520 : vector<2x256xf32>
    %522 = vector.extract_strided_slice %521 {offsets = [0, 0], sizes = [2, 64], strides = [1, 1]} : vector<2x256xf32> to vector<2x64xf32>
    %cst_233 = arith.constant 5.000000e-01 : f32
    %523 = vector.broadcast %cst_233 : f32 to vector<2x64xf32>
    %524 = arith.mulf %522, %523 : vector<2x64xf32>
    %cst_234 = arith.constant 5.000000e-01 : f32
    %525 = vector.broadcast %cst_234 : f32 to vector<2x64xf32>
    %526 = arith.addf %524, %525 : vector<2x64xf32>
    %527 = vector.extract_strided_slice %521 {offsets = [0, 64], sizes = [2, 64], strides = [1, 1]} : vector<2x256xf32> to vector<2x64xf32>
    %cst_235 = arith.constant 5.000000e-01 : f32
    %528 = vector.broadcast %cst_235 : f32 to vector<2x64xf32>
    %529 = arith.mulf %527, %528 : vector<2x64xf32>
    %cst_236 = arith.constant 5.000000e-01 : f32
    %530 = vector.broadcast %cst_236 : f32 to vector<2x64xf32>
    %531 = arith.addf %529, %530 : vector<2x64xf32>
    %532 = vector.extract_strided_slice %521 {offsets = [0, 128], sizes = [2, 64], strides = [1, 1]} : vector<2x256xf32> to vector<2x64xf32>
    %533 = vector.extract_strided_slice %521 {offsets = [0, 192], sizes = [2, 64], strides = [1, 1]} : vector<2x256xf32> to vector<2x64xf32>
    %cst_237 = arith.constant 5.000000e-01 : f32
    %534 = vector.broadcast %cst_237 : f32 to vector<2x64xf32>
    %535 = arith.mulf %533, %534 : vector<2x64xf32>
    %cst_238 = arith.constant 5.000000e-01 : f32
    %536 = vector.broadcast %cst_238 : f32 to vector<2x64xf32>
    %537 = arith.addf %535, %536 : vector<2x64xf32>
    %538 = arith.mulf %531, %509 : vector<2x64xf32>
    %539 = arith.mulf %526, %532 : vector<2x64xf32>
    %540 = arith.addf %538, %539 : vector<2x64xf32>
    %541 = math.tanh %540 : vector<2x64xf32>
    %542 = arith.mulf %537, %541 : vector<2x64xf32>
    %543 = arith.index_cast %c14_i32 : i32 to index
    %c0_239 = arith.constant 0 : index
    %c0_240 = arith.constant 0 : index
    %544 = vector.load %arg25[%543, %c0_239, %c0_240] : memref<16x2x64xf32, #tpu.memory_space<vmem>>, vector<1x2x64xf32>
    %545 = vector.shape_cast %544 : vector<1x2x64xf32> to vector<2x64xf32>
    %546 = vector.shape_cast %542 : vector<2x64xf32> to vector<1x2x64xf32>
    tpu.vector_store %arg25[%543, %c0_239, %c0_240], %546 {strides = array<i32>} : memref<16x2x64xf32, #tpu.memory_space<vmem>>, vector<1x2x64xf32>,
    %c15_i32 = arith.constant 15 : i32
    %547 = arith.index_cast %c15_i32 : i32 to index
    %c0_241 = arith.constant 0 : index
    %c0_242 = arith.constant 0 : index
    %548 = vector.load %arg24[%547, %c0_241, %c0_242] : memref<16x2x256xf32, #tpu.memory_space<vmem>>, vector<1x2x256xf32>
    %549 = vector.shape_cast %548 : vector<1x2x256xf32> to vector<2x256xf32>
    %cst_243 = arith.constant dense<0.000000e+00> : vector<2x256xf32>
    %550 = tpu.matmul %542, %80, %cst_243 {dimension_numbers = #tpu.dot_dimension_numbers<[1], [0], [0], [1], [0, 0, 1, 1], [], []>} : vector<2x64xf32>, vector<64x256xf32>, vector<2x256xf32> -> vector<2x256xf32>
    %551 = arith.addf %549, %550 : vector<2x256xf32>
    %552 = math.tanh %551 : vector<2x256xf32>
    %553 = vector.extract_strided_slice %552 {offsets = [0, 0], sizes = [2, 64], strides = [1, 1]} : vector<2x256xf32> to vector<2x64xf32>
    %cst_244 = arith.constant 5.000000e-01 : f32
    %554 = vector.broadcast %cst_244 : f32 to vector<2x64xf32>
    %555 = arith.mulf %553, %554 : vector<2x64xf32>
    %cst_245 = arith.constant 5.000000e-01 : f32
    %556 = vector.broadcast %cst_245 : f32 to vector<2x64xf32>
    %557 = arith.addf %555, %556 : vector<2x64xf32>
    %558 = vector.extract_strided_slice %552 {offsets = [0, 64], sizes = [2, 64], strides = [1, 1]} : vector<2x256xf32> to vector<2x64xf32>
    %cst_246 = arith.constant 5.000000e-01 : f32
    %559 = vector.broadcast %cst_246 : f32 to vector<2x64xf32>
    %560 = arith.mulf %558, %559 : vector<2x64xf32>
    %cst_247 = arith.constant 5.000000e-01 : f32
    %561 = vector.broadcast %cst_247 : f32 to vector<2x64xf32>
    %562 = arith.addf %560, %561 : vector<2x64xf32>
    %563 = vector.extract_strided_slice %552 {offsets = [0, 128], sizes = [2, 64], strides = [1, 1]} : vector<2x256xf32> to vector<2x64xf32>
    %564 = vector.extract_strided_slice %552 {offsets = [0, 192], sizes = [2, 64], strides = [1, 1]} : vector<2x256xf32> to vector<2x64xf32>
    %cst_248 = arith.constant 5.000000e-01 : f32
    %565 = vector.broadcast %cst_248 : f32 to vector<2x64xf32>
    %566 = arith.mulf %564, %565 : vector<2x64xf32>
    %cst_249 = arith.constant 5.000000e-01 : f32
    %567 = vector.broadcast %cst_249 : f32 to vector<2x64xf32>
    %568 = arith.addf %566, %567 : vector<2x64xf32>
    %569 = arith.mulf %562, %540 : vector<2x64xf32>
    %570 = arith.mulf %557, %563 : vector<2x64xf32>
    %571 = arith.addf %569, %570 : vector<2x64xf32>
    %572 = math.tanh %571 : vector<2x64xf32>
    %573 = arith.mulf %568, %572 : vector<2x64xf32>
    %574 = arith.index_cast %c15_i32 : i32 to index
    %c0_250 = arith.constant 0 : index
    %c0_251 = arith.constant 0 : index
    %575 = vector.load %arg25[%574, %c0_250, %c0_251] : memref<16x2x64xf32, #tpu.memory_space<vmem>>, vector<1x2x64xf32>
    %576 = vector.shape_cast %575 : vector<1x2x64xf32> to vector<2x64xf32>
    %577 = vector.shape_cast %573 : vector<2x64xf32> to vector<1x2x64xf32>
    tpu.vector_store %arg25[%574, %c0_250, %c0_251], %577 {strides = array<i32>} : memref<16x2x64xf32, #tpu.memory_space<vmem>>, vector<1x2x64xf32>,
    %c16_i32 = arith.constant 16 : i32
    %c0_252 = arith.constant 0 : index
    %c0_253 = arith.constant 0 : index
    %c0_254 = arith.constant 0 : index
    %578 = vector.load %arg25[%c0_252, %c0_253, %c0_254] : memref<16x2x64xf32, #tpu.memory_space<vmem>>, vector<16x2x64xf32>
    %579 = vector.shape_cast %578 : vector<16x2x64xf32> to vector<32x64xf32>
    %cst_255 = arith.constant dense<0.000000e+00> : vector<32x64xf32>
    %580 = tpu.matmul %68, %579, %cst_255 {dimension_numbers = #tpu.dot_dimension_numbers<[1], [0], [0], [1], [0, 0, 1, 1], [], []>} : vector<32x32xf32>, vector<32x64xf32>, vector<32x64xf32> -> vector<32x64xf32>
    %c0_256 = arith.constant 0 : index
    %c0_257 = arith.constant 0 : index
    %581 = vector.load %arg14[%c0_256, %c0_257] : memref<64x128xf32, #tpu.memory_space<vmem>>, vector<64x128xf32>
    %cst_258 = arith.constant dense<0.000000e+00> : vector<32x128xf32>
    %582 = tpu.matmul %579, %581, %cst_258 {dimension_numbers = #tpu.dot_dimension_numbers<[1], [0], [0], [1], [0, 0, 1, 1], [], []>} : vector<32x64xf32>, vector<64x128xf32>, vector<32x128xf32> -> vector<32x128xf32>
    %c0_259 = arith.constant 0 : index
    %c0_260 = arith.constant 0 : index
    %583 = vector.load %arg15[%c0_259, %c0_260] : memref<64x128xf32, #tpu.memory_space<vmem>>, vector<64x128xf32>
    %cst_261 = arith.constant dense<0.000000e+00> : vector<32x128xf32>
    %584 = tpu.matmul %580, %583, %cst_261 {dimension_numbers = #tpu.dot_dimension_numbers<[1], [0], [0], [1], [0, 0, 1, 1], [], []>} : vector<32x64xf32>, vector<64x128xf32>, vector<32x128xf32> -> vector<32x128xf32>
    %585 = arith.addf %582, %584 : vector<32x128xf32>
    %c0_262 = arith.constant 0 : index
    %c0_263 = arith.constant 0 : index
    %586 = vector.load %arg17[%c0_262, %c0_263] : memref<1x128xf32, #tpu.memory_space<vmem>>, vector<1x128xf32>
    %587 = vector.broadcast %586 : vector<1x128xf32> to vector<32x128xf32>
    %588 = arith.addf %585, %587 : vector<32x128xf32>
    %589 = vector.shape_cast %588 : vector<32x128xf32> to vector<16x2x128xf32>
    %c0_264 = arith.constant 0 : index
    %c0_265 = arith.constant 0 : index
    %c0_266 = arith.constant 0 : index
    %590 = vector.load %arg26[%c0_264, %c0_265, %c0_266] : memref<16x2x128xf32, #tpu.memory_space<vmem>>, vector<16x2x128xf32>
    tpu.vector_store %arg26[%c0_264, %c0_265, %c0_266], %589 {strides = array<i32>} : memref<16x2x128xf32, #tpu.memory_space<vmem>>, vector<16x2x128xf32>,
    %c0_267 = arith.constant 0 : index
    %c0_268 = arith.constant 0 : index
    %591 = vector.load %arg16[%c0_267, %c0_268] : memref<32x128xf32, #tpu.memory_space<vmem>>, vector<32x128xf32>
    %cst_269 = arith.constant 0.000000e+00 : f32
    %592 = vector.broadcast %cst_269 : f32 to vector<2x32xf32>
    %c0_i32_270 = arith.constant 0 : i32
    %593 = arith.index_cast %c0_i32_270 : i32 to index
    %c0_271 = arith.constant 0 : index
    %c0_272 = arith.constant 0 : index
    %594 = vector.load %arg26[%593, %c0_271, %c0_272] : memref<16x2x128xf32, #tpu.memory_space<vmem>>, vector<1x2x128xf32>
    %595 = vector.shape_cast %594 : vector<1x2x128xf32> to vector<2x128xf32>
    %cst_273 = arith.constant dense<0.000000e+00> : vector<2x128xf32>
    %596 = tpu.matmul %592, %591, %cst_273 {dimension_numbers = #tpu.dot_dimension_numbers<[1], [0], [0], [1], [0, 0, 1, 1], [], []>} : vector<2x32xf32>, vector<32x128xf32>, vector<2x128xf32> -> vector<2x128xf32>
    %597 = arith.addf %595, %596 : vector<2x128xf32>
    %598 = math.tanh %597 : vector<2x128xf32>
    %599 = vector.extract_strided_slice %598 {offsets = [0, 0], sizes = [2, 32], strides = [1, 1]} : vector<2x128xf32> to vector<2x32xf32>
    %cst_274 = arith.constant 5.000000e-01 : f32
    %600 = vector.broadcast %cst_274 : f32 to vector<2x32xf32>
    %601 = arith.mulf %599, %600 : vector<2x32xf32>
    %cst_275 = arith.constant 5.000000e-01 : f32
    %602 = vector.broadcast %cst_275 : f32 to vector<2x32xf32>
    %603 = arith.addf %601, %602 : vector<2x32xf32>
    %604 = vector.extract_strided_slice %598 {offsets = [0, 32], sizes = [2, 32], strides = [1, 1]} : vector<2x128xf32> to vector<2x32xf32>
    %cst_276 = arith.constant 5.000000e-01 : f32
    %605 = vector.broadcast %cst_276 : f32 to vector<2x32xf32>
    %606 = arith.mulf %604, %605 : vector<2x32xf32>
    %cst_277 = arith.constant 5.000000e-01 : f32
    %607 = vector.broadcast %cst_277 : f32 to vector<2x32xf32>
    %608 = arith.addf %606, %607 : vector<2x32xf32>
    %609 = vector.extract_strided_slice %598 {offsets = [0, 64], sizes = [2, 32], strides = [1, 1]} : vector<2x128xf32> to vector<2x32xf32>
    %610 = vector.extract_strided_slice %598 {offsets = [0, 96], sizes = [2, 32], strides = [1, 1]} : vector<2x128xf32> to vector<2x32xf32>
    %cst_278 = arith.constant 5.000000e-01 : f32
    %611 = vector.broadcast %cst_278 : f32 to vector<2x32xf32>
    %612 = arith.mulf %610, %611 : vector<2x32xf32>
    %cst_279 = arith.constant 5.000000e-01 : f32
    %613 = vector.broadcast %cst_279 : f32 to vector<2x32xf32>
    %614 = arith.addf %612, %613 : vector<2x32xf32>
    %615 = arith.mulf %608, %592 : vector<2x32xf32>
    %616 = arith.mulf %603, %609 : vector<2x32xf32>
    %617 = arith.addf %615, %616 : vector<2x32xf32>
    %618 = math.tanh %617 : vector<2x32xf32>
    %619 = arith.mulf %614, %618 : vector<2x32xf32>
    %620 = arith.index_cast %c0_i32_270 : i32 to index
    %c0_280 = arith.constant 0 : index
    %c0_281 = arith.constant 0 : index
    %621 = vector.load %arg27[%620, %c0_280, %c0_281] : memref<16x2x32xf32, #tpu.memory_space<vmem>>, vector<1x2x32xf32>
    %622 = vector.shape_cast %621 : vector<1x2x32xf32> to vector<2x32xf32>
    %623 = vector.shape_cast %619 : vector<2x32xf32> to vector<1x2x32xf32>
    tpu.vector_store %arg27[%620, %c0_280, %c0_281], %623 {strides = array<i32>} : memref<16x2x32xf32, #tpu.memory_space<vmem>>, vector<1x2x32xf32>,
    %c1_i32_282 = arith.constant 1 : i32
    %624 = arith.index_cast %c1_i32_282 : i32 to index
    %c0_283 = arith.constant 0 : index
    %c0_284 = arith.constant 0 : index
    %625 = vector.load %arg26[%624, %c0_283, %c0_284] : memref<16x2x128xf32, #tpu.memory_space<vmem>>, vector<1x2x128xf32>
    %626 = vector.shape_cast %625 : vector<1x2x128xf32> to vector<2x128xf32>
    %cst_285 = arith.constant dense<0.000000e+00> : vector<2x128xf32>
    %627 = tpu.matmul %619, %591, %cst_285 {dimension_numbers = #tpu.dot_dimension_numbers<[1], [0], [0], [1], [0, 0, 1, 1], [], []>} : vector<2x32xf32>, vector<32x128xf32>, vector<2x128xf32> -> vector<2x128xf32>
    %628 = arith.addf %626, %627 : vector<2x128xf32>
    %629 = math.tanh %628 : vector<2x128xf32>
    %630 = vector.extract_strided_slice %629 {offsets = [0, 0], sizes = [2, 32], strides = [1, 1]} : vector<2x128xf32> to vector<2x32xf32>
    %cst_286 = arith.constant 5.000000e-01 : f32
    %631 = vector.broadcast %cst_286 : f32 to vector<2x32xf32>
    %632 = arith.mulf %630, %631 : vector<2x32xf32>
    %cst_287 = arith.constant 5.000000e-01 : f32
    %633 = vector.broadcast %cst_287 : f32 to vector<2x32xf32>
    %634 = arith.addf %632, %633 : vector<2x32xf32>
    %635 = vector.extract_strided_slice %629 {offsets = [0, 32], sizes = [2, 32], strides = [1, 1]} : vector<2x128xf32> to vector<2x32xf32>
    %cst_288 = arith.constant 5.000000e-01 : f32
    %636 = vector.broadcast %cst_288 : f32 to vector<2x32xf32>
    %637 = arith.mulf %635, %636 : vector<2x32xf32>
    %cst_289 = arith.constant 5.000000e-01 : f32
    %638 = vector.broadcast %cst_289 : f32 to vector<2x32xf32>
    %639 = arith.addf %637, %638 : vector<2x32xf32>
    %640 = vector.extract_strided_slice %629 {offsets = [0, 64], sizes = [2, 32], strides = [1, 1]} : vector<2x128xf32> to vector<2x32xf32>
    %641 = vector.extract_strided_slice %629 {offsets = [0, 96], sizes = [2, 32], strides = [1, 1]} : vector<2x128xf32> to vector<2x32xf32>
    %cst_290 = arith.constant 5.000000e-01 : f32
    %642 = vector.broadcast %cst_290 : f32 to vector<2x32xf32>
    %643 = arith.mulf %641, %642 : vector<2x32xf32>
    %cst_291 = arith.constant 5.000000e-01 : f32
    %644 = vector.broadcast %cst_291 : f32 to vector<2x32xf32>
    %645 = arith.addf %643, %644 : vector<2x32xf32>
    %646 = arith.mulf %639, %617 : vector<2x32xf32>
    %647 = arith.mulf %634, %640 : vector<2x32xf32>
    %648 = arith.addf %646, %647 : vector<2x32xf32>
    %649 = math.tanh %648 : vector<2x32xf32>
    %650 = arith.mulf %645, %649 : vector<2x32xf32>
    %651 = arith.index_cast %c1_i32_282 : i32 to index
    %c0_292 = arith.constant 0 : index
    %c0_293 = arith.constant 0 : index
    %652 = vector.load %arg27[%651, %c0_292, %c0_293] : memref<16x2x32xf32, #tpu.memory_space<vmem>>, vector<1x2x32xf32>
    %653 = vector.shape_cast %652 : vector<1x2x32xf32> to vector<2x32xf32>
    %654 = vector.shape_cast %650 : vector<2x32xf32> to vector<1x2x32xf32>
    tpu.vector_store %arg27[%651, %c0_292, %c0_293], %654 {strides = array<i32>} : memref<16x2x32xf32, #tpu.memory_space<vmem>>, vector<1x2x32xf32>,
    %c2_i32_294 = arith.constant 2 : i32
    %655 = arith.index_cast %c2_i32_294 : i32 to index
    %c0_295 = arith.constant 0 : index
    %c0_296 = arith.constant 0 : index
    %656 = vector.load %arg26[%655, %c0_295, %c0_296] : memref<16x2x128xf32, #tpu.memory_space<vmem>>, vector<1x2x128xf32>
    %657 = vector.shape_cast %656 : vector<1x2x128xf32> to vector<2x128xf32>
    %cst_297 = arith.constant dense<0.000000e+00> : vector<2x128xf32>
    %658 = tpu.matmul %650, %591, %cst_297 {dimension_numbers = #tpu.dot_dimension_numbers<[1], [0], [0], [1], [0, 0, 1, 1], [], []>} : vector<2x32xf32>, vector<32x128xf32>, vector<2x128xf32> -> vector<2x128xf32>
    %659 = arith.addf %657, %658 : vector<2x128xf32>
    %660 = math.tanh %659 : vector<2x128xf32>
    %661 = vector.extract_strided_slice %660 {offsets = [0, 0], sizes = [2, 32], strides = [1, 1]} : vector<2x128xf32> to vector<2x32xf32>
    %cst_298 = arith.constant 5.000000e-01 : f32
    %662 = vector.broadcast %cst_298 : f32 to vector<2x32xf32>
    %663 = arith.mulf %661, %662 : vector<2x32xf32>
    %cst_299 = arith.constant 5.000000e-01 : f32
    %664 = vector.broadcast %cst_299 : f32 to vector<2x32xf32>
    %665 = arith.addf %663, %664 : vector<2x32xf32>
    %666 = vector.extract_strided_slice %660 {offsets = [0, 32], sizes = [2, 32], strides = [1, 1]} : vector<2x128xf32> to vector<2x32xf32>
    %cst_300 = arith.constant 5.000000e-01 : f32
    %667 = vector.broadcast %cst_300 : f32 to vector<2x32xf32>
    %668 = arith.mulf %666, %667 : vector<2x32xf32>
    %cst_301 = arith.constant 5.000000e-01 : f32
    %669 = vector.broadcast %cst_301 : f32 to vector<2x32xf32>
    %670 = arith.addf %668, %669 : vector<2x32xf32>
    %671 = vector.extract_strided_slice %660 {offsets = [0, 64], sizes = [2, 32], strides = [1, 1]} : vector<2x128xf32> to vector<2x32xf32>
    %672 = vector.extract_strided_slice %660 {offsets = [0, 96], sizes = [2, 32], strides = [1, 1]} : vector<2x128xf32> to vector<2x32xf32>
    %cst_302 = arith.constant 5.000000e-01 : f32
    %673 = vector.broadcast %cst_302 : f32 to vector<2x32xf32>
    %674 = arith.mulf %672, %673 : vector<2x32xf32>
    %cst_303 = arith.constant 5.000000e-01 : f32
    %675 = vector.broadcast %cst_303 : f32 to vector<2x32xf32>
    %676 = arith.addf %674, %675 : vector<2x32xf32>
    %677 = arith.mulf %670, %648 : vector<2x32xf32>
    %678 = arith.mulf %665, %671 : vector<2x32xf32>
    %679 = arith.addf %677, %678 : vector<2x32xf32>
    %680 = math.tanh %679 : vector<2x32xf32>
    %681 = arith.mulf %676, %680 : vector<2x32xf32>
    %682 = arith.index_cast %c2_i32_294 : i32 to index
    %c0_304 = arith.constant 0 : index
    %c0_305 = arith.constant 0 : index
    %683 = vector.load %arg27[%682, %c0_304, %c0_305] : memref<16x2x32xf32, #tpu.memory_space<vmem>>, vector<1x2x32xf32>
    %684 = vector.shape_cast %683 : vector<1x2x32xf32> to vector<2x32xf32>
    %685 = vector.shape_cast %681 : vector<2x32xf32> to vector<1x2x32xf32>
    tpu.vector_store %arg27[%682, %c0_304, %c0_305], %685 {strides = array<i32>} : memref<16x2x32xf32, #tpu.memory_space<vmem>>, vector<1x2x32xf32>,
    %c3_i32_306 = arith.constant 3 : i32
    %686 = arith.index_cast %c3_i32_306 : i32 to index
    %c0_307 = arith.constant 0 : index
    %c0_308 = arith.constant 0 : index
    %687 = vector.load %arg26[%686, %c0_307, %c0_308] : memref<16x2x128xf32, #tpu.memory_space<vmem>>, vector<1x2x128xf32>
    %688 = vector.shape_cast %687 : vector<1x2x128xf32> to vector<2x128xf32>
    %cst_309 = arith.constant dense<0.000000e+00> : vector<2x128xf32>
    %689 = tpu.matmul %681, %591, %cst_309 {dimension_numbers = #tpu.dot_dimension_numbers<[1], [0], [0], [1], [0, 0, 1, 1], [], []>} : vector<2x32xf32>, vector<32x128xf32>, vector<2x128xf32> -> vector<2x128xf32>
    %690 = arith.addf %688, %689 : vector<2x128xf32>
    %691 = math.tanh %690 : vector<2x128xf32>
    %692 = vector.extract_strided_slice %691 {offsets = [0, 0], sizes = [2, 32], strides = [1, 1]} : vector<2x128xf32> to vector<2x32xf32>
    %cst_310 = arith.constant 5.000000e-01 : f32
    %693 = vector.broadcast %cst_310 : f32 to vector<2x32xf32>
    %694 = arith.mulf %692, %693 : vector<2x32xf32>
    %cst_311 = arith.constant 5.000000e-01 : f32
    %695 = vector.broadcast %cst_311 : f32 to vector<2x32xf32>
    %696 = arith.addf %694, %695 : vector<2x32xf32>
    %697 = vector.extract_strided_slice %691 {offsets = [0, 32], sizes = [2, 32], strides = [1, 1]} : vector<2x128xf32> to vector<2x32xf32>
    %cst_312 = arith.constant 5.000000e-01 : f32
    %698 = vector.broadcast %cst_312 : f32 to vector<2x32xf32>
    %699 = arith.mulf %697, %698 : vector<2x32xf32>
    %cst_313 = arith.constant 5.000000e-01 : f32
    %700 = vector.broadcast %cst_313 : f32 to vector<2x32xf32>
    %701 = arith.addf %699, %700 : vector<2x32xf32>
    %702 = vector.extract_strided_slice %691 {offsets = [0, 64], sizes = [2, 32], strides = [1, 1]} : vector<2x128xf32> to vector<2x32xf32>
    %703 = vector.extract_strided_slice %691 {offsets = [0, 96], sizes = [2, 32], strides = [1, 1]} : vector<2x128xf32> to vector<2x32xf32>
    %cst_314 = arith.constant 5.000000e-01 : f32
    %704 = vector.broadcast %cst_314 : f32 to vector<2x32xf32>
    %705 = arith.mulf %703, %704 : vector<2x32xf32>
    %cst_315 = arith.constant 5.000000e-01 : f32
    %706 = vector.broadcast %cst_315 : f32 to vector<2x32xf32>
    %707 = arith.addf %705, %706 : vector<2x32xf32>
    %708 = arith.mulf %701, %679 : vector<2x32xf32>
    %709 = arith.mulf %696, %702 : vector<2x32xf32>
    %710 = arith.addf %708, %709 : vector<2x32xf32>
    %711 = math.tanh %710 : vector<2x32xf32>
    %712 = arith.mulf %707, %711 : vector<2x32xf32>
    %713 = arith.index_cast %c3_i32_306 : i32 to index
    %c0_316 = arith.constant 0 : index
    %c0_317 = arith.constant 0 : index
    %714 = vector.load %arg27[%713, %c0_316, %c0_317] : memref<16x2x32xf32, #tpu.memory_space<vmem>>, vector<1x2x32xf32>
    %715 = vector.shape_cast %714 : vector<1x2x32xf32> to vector<2x32xf32>
    %716 = vector.shape_cast %712 : vector<2x32xf32> to vector<1x2x32xf32>
    tpu.vector_store %arg27[%713, %c0_316, %c0_317], %716 {strides = array<i32>} : memref<16x2x32xf32, #tpu.memory_space<vmem>>, vector<1x2x32xf32>,
    %c4_i32_318 = arith.constant 4 : i32
    %717 = arith.index_cast %c4_i32_318 : i32 to index
    %c0_319 = arith.constant 0 : index
    %c0_320 = arith.constant 0 : index
    %718 = vector.load %arg26[%717, %c0_319, %c0_320] : memref<16x2x128xf32, #tpu.memory_space<vmem>>, vector<1x2x128xf32>
    %719 = vector.shape_cast %718 : vector<1x2x128xf32> to vector<2x128xf32>
    %cst_321 = arith.constant dense<0.000000e+00> : vector<2x128xf32>
    %720 = tpu.matmul %712, %591, %cst_321 {dimension_numbers = #tpu.dot_dimension_numbers<[1], [0], [0], [1], [0, 0, 1, 1], [], []>} : vector<2x32xf32>, vector<32x128xf32>, vector<2x128xf32> -> vector<2x128xf32>
    %721 = arith.addf %719, %720 : vector<2x128xf32>
    %722 = math.tanh %721 : vector<2x128xf32>
    %723 = vector.extract_strided_slice %722 {offsets = [0, 0], sizes = [2, 32], strides = [1, 1]} : vector<2x128xf32> to vector<2x32xf32>
    %cst_322 = arith.constant 5.000000e-01 : f32
    %724 = vector.broadcast %cst_322 : f32 to vector<2x32xf32>
    %725 = arith.mulf %723, %724 : vector<2x32xf32>
    %cst_323 = arith.constant 5.000000e-01 : f32
    %726 = vector.broadcast %cst_323 : f32 to vector<2x32xf32>
    %727 = arith.addf %725, %726 : vector<2x32xf32>
    %728 = vector.extract_strided_slice %722 {offsets = [0, 32], sizes = [2, 32], strides = [1, 1]} : vector<2x128xf32> to vector<2x32xf32>
    %cst_324 = arith.constant 5.000000e-01 : f32
    %729 = vector.broadcast %cst_324 : f32 to vector<2x32xf32>
    %730 = arith.mulf %728, %729 : vector<2x32xf32>
    %cst_325 = arith.constant 5.000000e-01 : f32
    %731 = vector.broadcast %cst_325 : f32 to vector<2x32xf32>
    %732 = arith.addf %730, %731 : vector<2x32xf32>
    %733 = vector.extract_strided_slice %722 {offsets = [0, 64], sizes = [2, 32], strides = [1, 1]} : vector<2x128xf32> to vector<2x32xf32>
    %734 = vector.extract_strided_slice %722 {offsets = [0, 96], sizes = [2, 32], strides = [1, 1]} : vector<2x128xf32> to vector<2x32xf32>
    %cst_326 = arith.constant 5.000000e-01 : f32
    %735 = vector.broadcast %cst_326 : f32 to vector<2x32xf32>
    %736 = arith.mulf %734, %735 : vector<2x32xf32>
    %cst_327 = arith.constant 5.000000e-01 : f32
    %737 = vector.broadcast %cst_327 : f32 to vector<2x32xf32>
    %738 = arith.addf %736, %737 : vector<2x32xf32>
    %739 = arith.mulf %732, %710 : vector<2x32xf32>
    %740 = arith.mulf %727, %733 : vector<2x32xf32>
    %741 = arith.addf %739, %740 : vector<2x32xf32>
    %742 = math.tanh %741 : vector<2x32xf32>
    %743 = arith.mulf %738, %742 : vector<2x32xf32>
    %744 = arith.index_cast %c4_i32_318 : i32 to index
    %c0_328 = arith.constant 0 : index
    %c0_329 = arith.constant 0 : index
    %745 = vector.load %arg27[%744, %c0_328, %c0_329] : memref<16x2x32xf32, #tpu.memory_space<vmem>>, vector<1x2x32xf32>
    %746 = vector.shape_cast %745 : vector<1x2x32xf32> to vector<2x32xf32>
    %747 = vector.shape_cast %743 : vector<2x32xf32> to vector<1x2x32xf32>
    tpu.vector_store %arg27[%744, %c0_328, %c0_329], %747 {strides = array<i32>} : memref<16x2x32xf32, #tpu.memory_space<vmem>>, vector<1x2x32xf32>,
    %c5_i32_330 = arith.constant 5 : i32
    %748 = arith.index_cast %c5_i32_330 : i32 to index
    %c0_331 = arith.constant 0 : index
    %c0_332 = arith.constant 0 : index
    %749 = vector.load %arg26[%748, %c0_331, %c0_332] : memref<16x2x128xf32, #tpu.memory_space<vmem>>, vector<1x2x128xf32>
    %750 = vector.shape_cast %749 : vector<1x2x128xf32> to vector<2x128xf32>
    %cst_333 = arith.constant dense<0.000000e+00> : vector<2x128xf32>
    %751 = tpu.matmul %743, %591, %cst_333 {dimension_numbers = #tpu.dot_dimension_numbers<[1], [0], [0], [1], [0, 0, 1, 1], [], []>} : vector<2x32xf32>, vector<32x128xf32>, vector<2x128xf32> -> vector<2x128xf32>
    %752 = arith.addf %750, %751 : vector<2x128xf32>
    %753 = math.tanh %752 : vector<2x128xf32>
    %754 = vector.extract_strided_slice %753 {offsets = [0, 0], sizes = [2, 32], strides = [1, 1]} : vector<2x128xf32> to vector<2x32xf32>
    %cst_334 = arith.constant 5.000000e-01 : f32
    %755 = vector.broadcast %cst_334 : f32 to vector<2x32xf32>
    %756 = arith.mulf %754, %755 : vector<2x32xf32>
    %cst_335 = arith.constant 5.000000e-01 : f32
    %757 = vector.broadcast %cst_335 : f32 to vector<2x32xf32>
    %758 = arith.addf %756, %757 : vector<2x32xf32>
    %759 = vector.extract_strided_slice %753 {offsets = [0, 32], sizes = [2, 32], strides = [1, 1]} : vector<2x128xf32> to vector<2x32xf32>
    %cst_336 = arith.constant 5.000000e-01 : f32
    %760 = vector.broadcast %cst_336 : f32 to vector<2x32xf32>
    %761 = arith.mulf %759, %760 : vector<2x32xf32>
    %cst_337 = arith.constant 5.000000e-01 : f32
    %762 = vector.broadcast %cst_337 : f32 to vector<2x32xf32>
    %763 = arith.addf %761, %762 : vector<2x32xf32>
    %764 = vector.extract_strided_slice %753 {offsets = [0, 64], sizes = [2, 32], strides = [1, 1]} : vector<2x128xf32> to vector<2x32xf32>
    %765 = vector.extract_strided_slice %753 {offsets = [0, 96], sizes = [2, 32], strides = [1, 1]} : vector<2x128xf32> to vector<2x32xf32>
    %cst_338 = arith.constant 5.000000e-01 : f32
    %766 = vector.broadcast %cst_338 : f32 to vector<2x32xf32>
    %767 = arith.mulf %765, %766 : vector<2x32xf32>
    %cst_339 = arith.constant 5.000000e-01 : f32
    %768 = vector.broadcast %cst_339 : f32 to vector<2x32xf32>
    %769 = arith.addf %767, %768 : vector<2x32xf32>
    %770 = arith.mulf %763, %741 : vector<2x32xf32>
    %771 = arith.mulf %758, %764 : vector<2x32xf32>
    %772 = arith.addf %770, %771 : vector<2x32xf32>
    %773 = math.tanh %772 : vector<2x32xf32>
    %774 = arith.mulf %769, %773 : vector<2x32xf32>
    %775 = arith.index_cast %c5_i32_330 : i32 to index
    %c0_340 = arith.constant 0 : index
    %c0_341 = arith.constant 0 : index
    %776 = vector.load %arg27[%775, %c0_340, %c0_341] : memref<16x2x32xf32, #tpu.memory_space<vmem>>, vector<1x2x32xf32>
    %777 = vector.shape_cast %776 : vector<1x2x32xf32> to vector<2x32xf32>
    %778 = vector.shape_cast %774 : vector<2x32xf32> to vector<1x2x32xf32>
    tpu.vector_store %arg27[%775, %c0_340, %c0_341], %778 {strides = array<i32>} : memref<16x2x32xf32, #tpu.memory_space<vmem>>, vector<1x2x32xf32>,
    %c6_i32_342 = arith.constant 6 : i32
    %779 = arith.index_cast %c6_i32_342 : i32 to index
    %c0_343 = arith.constant 0 : index
    %c0_344 = arith.constant 0 : index
    %780 = vector.load %arg26[%779, %c0_343, %c0_344] : memref<16x2x128xf32, #tpu.memory_space<vmem>>, vector<1x2x128xf32>
    %781 = vector.shape_cast %780 : vector<1x2x128xf32> to vector<2x128xf32>
    %cst_345 = arith.constant dense<0.000000e+00> : vector<2x128xf32>
    %782 = tpu.matmul %774, %591, %cst_345 {dimension_numbers = #tpu.dot_dimension_numbers<[1], [0], [0], [1], [0, 0, 1, 1], [], []>} : vector<2x32xf32>, vector<32x128xf32>, vector<2x128xf32> -> vector<2x128xf32>
    %783 = arith.addf %781, %782 : vector<2x128xf32>
    %784 = math.tanh %783 : vector<2x128xf32>
    %785 = vector.extract_strided_slice %784 {offsets = [0, 0], sizes = [2, 32], strides = [1, 1]} : vector<2x128xf32> to vector<2x32xf32>
    %cst_346 = arith.constant 5.000000e-01 : f32
    %786 = vector.broadcast %cst_346 : f32 to vector<2x32xf32>
    %787 = arith.mulf %785, %786 : vector<2x32xf32>
    %cst_347 = arith.constant 5.000000e-01 : f32
    %788 = vector.broadcast %cst_347 : f32 to vector<2x32xf32>
    %789 = arith.addf %787, %788 : vector<2x32xf32>
    %790 = vector.extract_strided_slice %784 {offsets = [0, 32], sizes = [2, 32], strides = [1, 1]} : vector<2x128xf32> to vector<2x32xf32>
    %cst_348 = arith.constant 5.000000e-01 : f32
    %791 = vector.broadcast %cst_348 : f32 to vector<2x32xf32>
    %792 = arith.mulf %790, %791 : vector<2x32xf32>
    %cst_349 = arith.constant 5.000000e-01 : f32
    %793 = vector.broadcast %cst_349 : f32 to vector<2x32xf32>
    %794 = arith.addf %792, %793 : vector<2x32xf32>
    %795 = vector.extract_strided_slice %784 {offsets = [0, 64], sizes = [2, 32], strides = [1, 1]} : vector<2x128xf32> to vector<2x32xf32>
    %796 = vector.extract_strided_slice %784 {offsets = [0, 96], sizes = [2, 32], strides = [1, 1]} : vector<2x128xf32> to vector<2x32xf32>
    %cst_350 = arith.constant 5.000000e-01 : f32
    %797 = vector.broadcast %cst_350 : f32 to vector<2x32xf32>
    %798 = arith.mulf %796, %797 : vector<2x32xf32>
    %cst_351 = arith.constant 5.000000e-01 : f32
    %799 = vector.broadcast %cst_351 : f32 to vector<2x32xf32>
    %800 = arith.addf %798, %799 : vector<2x32xf32>
    %801 = arith.mulf %794, %772 : vector<2x32xf32>
    %802 = arith.mulf %789, %795 : vector<2x32xf32>
    %803 = arith.addf %801, %802 : vector<2x32xf32>
    %804 = math.tanh %803 : vector<2x32xf32>
    %805 = arith.mulf %800, %804 : vector<2x32xf32>
    %806 = arith.index_cast %c6_i32_342 : i32 to index
    %c0_352 = arith.constant 0 : index
    %c0_353 = arith.constant 0 : index
    %807 = vector.load %arg27[%806, %c0_352, %c0_353] : memref<16x2x32xf32, #tpu.memory_space<vmem>>, vector<1x2x32xf32>
    %808 = vector.shape_cast %807 : vector<1x2x32xf32> to vector<2x32xf32>
    %809 = vector.shape_cast %805 : vector<2x32xf32> to vector<1x2x32xf32>
    tpu.vector_store %arg27[%806, %c0_352, %c0_353], %809 {strides = array<i32>} : memref<16x2x32xf32, #tpu.memory_space<vmem>>, vector<1x2x32xf32>,
    %c7_i32_354 = arith.constant 7 : i32
    %810 = arith.index_cast %c7_i32_354 : i32 to index
    %c0_355 = arith.constant 0 : index
    %c0_356 = arith.constant 0 : index
    %811 = vector.load %arg26[%810, %c0_355, %c0_356] : memref<16x2x128xf32, #tpu.memory_space<vmem>>, vector<1x2x128xf32>
    %812 = vector.shape_cast %811 : vector<1x2x128xf32> to vector<2x128xf32>
    %cst_357 = arith.constant dense<0.000000e+00> : vector<2x128xf32>
    %813 = tpu.matmul %805, %591, %cst_357 {dimension_numbers = #tpu.dot_dimension_numbers<[1], [0], [0], [1], [0, 0, 1, 1], [], []>} : vector<2x32xf32>, vector<32x128xf32>, vector<2x128xf32> -> vector<2x128xf32>
    %814 = arith.addf %812, %813 : vector<2x128xf32>
    %815 = math.tanh %814 : vector<2x128xf32>
    %816 = vector.extract_strided_slice %815 {offsets = [0, 0], sizes = [2, 32], strides = [1, 1]} : vector<2x128xf32> to vector<2x32xf32>
    %cst_358 = arith.constant 5.000000e-01 : f32
    %817 = vector.broadcast %cst_358 : f32 to vector<2x32xf32>
    %818 = arith.mulf %816, %817 : vector<2x32xf32>
    %cst_359 = arith.constant 5.000000e-01 : f32
    %819 = vector.broadcast %cst_359 : f32 to vector<2x32xf32>
    %820 = arith.addf %818, %819 : vector<2x32xf32>
    %821 = vector.extract_strided_slice %815 {offsets = [0, 32], sizes = [2, 32], strides = [1, 1]} : vector<2x128xf32> to vector<2x32xf32>
    %cst_360 = arith.constant 5.000000e-01 : f32
    %822 = vector.broadcast %cst_360 : f32 to vector<2x32xf32>
    %823 = arith.mulf %821, %822 : vector<2x32xf32>
    %cst_361 = arith.constant 5.000000e-01 : f32
    %824 = vector.broadcast %cst_361 : f32 to vector<2x32xf32>
    %825 = arith.addf %823, %824 : vector<2x32xf32>
    %826 = vector.extract_strided_slice %815 {offsets = [0, 64], sizes = [2, 32], strides = [1, 1]} : vector<2x128xf32> to vector<2x32xf32>
    %827 = vector.extract_strided_slice %815 {offsets = [0, 96], sizes = [2, 32], strides = [1, 1]} : vector<2x128xf32> to vector<2x32xf32>
    %cst_362 = arith.constant 5.000000e-01 : f32
    %828 = vector.broadcast %cst_362 : f32 to vector<2x32xf32>
    %829 = arith.mulf %827, %828 : vector<2x32xf32>
    %cst_363 = arith.constant 5.000000e-01 : f32
    %830 = vector.broadcast %cst_363 : f32 to vector<2x32xf32>
    %831 = arith.addf %829, %830 : vector<2x32xf32>
    %832 = arith.mulf %825, %803 : vector<2x32xf32>
    %833 = arith.mulf %820, %826 : vector<2x32xf32>
    %834 = arith.addf %832, %833 : vector<2x32xf32>
    %835 = math.tanh %834 : vector<2x32xf32>
    %836 = arith.mulf %831, %835 : vector<2x32xf32>
    %837 = arith.index_cast %c7_i32_354 : i32 to index
    %c0_364 = arith.constant 0 : index
    %c0_365 = arith.constant 0 : index
    %838 = vector.load %arg27[%837, %c0_364, %c0_365] : memref<16x2x32xf32, #tpu.memory_space<vmem>>, vector<1x2x32xf32>
    %839 = vector.shape_cast %838 : vector<1x2x32xf32> to vector<2x32xf32>
    %840 = vector.shape_cast %836 : vector<2x32xf32> to vector<1x2x32xf32>
    tpu.vector_store %arg27[%837, %c0_364, %c0_365], %840 {strides = array<i32>} : memref<16x2x32xf32, #tpu.memory_space<vmem>>, vector<1x2x32xf32>,
    %c8_i32_366 = arith.constant 8 : i32
    %841 = arith.index_cast %c8_i32_366 : i32 to index
    %c0_367 = arith.constant 0 : index
    %c0_368 = arith.constant 0 : index
    %842 = vector.load %arg26[%841, %c0_367, %c0_368] : memref<16x2x128xf32, #tpu.memory_space<vmem>>, vector<1x2x128xf32>
    %843 = vector.shape_cast %842 : vector<1x2x128xf32> to vector<2x128xf32>
    %cst_369 = arith.constant dense<0.000000e+00> : vector<2x128xf32>
    %844 = tpu.matmul %836, %591, %cst_369 {dimension_numbers = #tpu.dot_dimension_numbers<[1], [0], [0], [1], [0, 0, 1, 1], [], []>} : vector<2x32xf32>, vector<32x128xf32>, vector<2x128xf32> -> vector<2x128xf32>
    %845 = arith.addf %843, %844 : vector<2x128xf32>
    %846 = math.tanh %845 : vector<2x128xf32>
    %847 = vector.extract_strided_slice %846 {offsets = [0, 0], sizes = [2, 32], strides = [1, 1]} : vector<2x128xf32> to vector<2x32xf32>
    %cst_370 = arith.constant 5.000000e-01 : f32
    %848 = vector.broadcast %cst_370 : f32 to vector<2x32xf32>
    %849 = arith.mulf %847, %848 : vector<2x32xf32>
    %cst_371 = arith.constant 5.000000e-01 : f32
    %850 = vector.broadcast %cst_371 : f32 to vector<2x32xf32>
    %851 = arith.addf %849, %850 : vector<2x32xf32>
    %852 = vector.extract_strided_slice %846 {offsets = [0, 32], sizes = [2, 32], strides = [1, 1]} : vector<2x128xf32> to vector<2x32xf32>
    %cst_372 = arith.constant 5.000000e-01 : f32
    %853 = vector.broadcast %cst_372 : f32 to vector<2x32xf32>
    %854 = arith.mulf %852, %853 : vector<2x32xf32>
    %cst_373 = arith.constant 5.000000e-01 : f32
    %855 = vector.broadcast %cst_373 : f32 to vector<2x32xf32>
    %856 = arith.addf %854, %855 : vector<2x32xf32>
    %857 = vector.extract_strided_slice %846 {offsets = [0, 64], sizes = [2, 32], strides = [1, 1]} : vector<2x128xf32> to vector<2x32xf32>
    %858 = vector.extract_strided_slice %846 {offsets = [0, 96], sizes = [2, 32], strides = [1, 1]} : vector<2x128xf32> to vector<2x32xf32>
    %cst_374 = arith.constant 5.000000e-01 : f32
    %859 = vector.broadcast %cst_374 : f32 to vector<2x32xf32>
    %860 = arith.mulf %858, %859 : vector<2x32xf32>
    %cst_375 = arith.constant 5.000000e-01 : f32
    %861 = vector.broadcast %cst_375 : f32 to vector<2x32xf32>
    %862 = arith.addf %860, %861 : vector<2x32xf32>
    %863 = arith.mulf %856, %834 : vector<2x32xf32>
    %864 = arith.mulf %851, %857 : vector<2x32xf32>
    %865 = arith.addf %863, %864 : vector<2x32xf32>
    %866 = math.tanh %865 : vector<2x32xf32>
    %867 = arith.mulf %862, %866 : vector<2x32xf32>
    %868 = arith.index_cast %c8_i32_366 : i32 to index
    %c0_376 = arith.constant 0 : index
    %c0_377 = arith.constant 0 : index
    %869 = vector.load %arg27[%868, %c0_376, %c0_377] : memref<16x2x32xf32, #tpu.memory_space<vmem>>, vector<1x2x32xf32>
    %870 = vector.shape_cast %869 : vector<1x2x32xf32> to vector<2x32xf32>
    %871 = vector.shape_cast %867 : vector<2x32xf32> to vector<1x2x32xf32>
    tpu.vector_store %arg27[%868, %c0_376, %c0_377], %871 {strides = array<i32>} : memref<16x2x32xf32, #tpu.memory_space<vmem>>, vector<1x2x32xf32>,
    %c9_i32_378 = arith.constant 9 : i32
    %872 = arith.index_cast %c9_i32_378 : i32 to index
    %c0_379 = arith.constant 0 : index
    %c0_380 = arith.constant 0 : index
    %873 = vector.load %arg26[%872, %c0_379, %c0_380] : memref<16x2x128xf32, #tpu.memory_space<vmem>>, vector<1x2x128xf32>
    %874 = vector.shape_cast %873 : vector<1x2x128xf32> to vector<2x128xf32>
    %cst_381 = arith.constant dense<0.000000e+00> : vector<2x128xf32>
    %875 = tpu.matmul %867, %591, %cst_381 {dimension_numbers = #tpu.dot_dimension_numbers<[1], [0], [0], [1], [0, 0, 1, 1], [], []>} : vector<2x32xf32>, vector<32x128xf32>, vector<2x128xf32> -> vector<2x128xf32>
    %876 = arith.addf %874, %875 : vector<2x128xf32>
    %877 = math.tanh %876 : vector<2x128xf32>
    %878 = vector.extract_strided_slice %877 {offsets = [0, 0], sizes = [2, 32], strides = [1, 1]} : vector<2x128xf32> to vector<2x32xf32>
    %cst_382 = arith.constant 5.000000e-01 : f32
    %879 = vector.broadcast %cst_382 : f32 to vector<2x32xf32>
    %880 = arith.mulf %878, %879 : vector<2x32xf32>
    %cst_383 = arith.constant 5.000000e-01 : f32
    %881 = vector.broadcast %cst_383 : f32 to vector<2x32xf32>
    %882 = arith.addf %880, %881 : vector<2x32xf32>
    %883 = vector.extract_strided_slice %877 {offsets = [0, 32], sizes = [2, 32], strides = [1, 1]} : vector<2x128xf32> to vector<2x32xf32>
    %cst_384 = arith.constant 5.000000e-01 : f32
    %884 = vector.broadcast %cst_384 : f32 to vector<2x32xf32>
    %885 = arith.mulf %883, %884 : vector<2x32xf32>
    %cst_385 = arith.constant 5.000000e-01 : f32
    %886 = vector.broadcast %cst_385 : f32 to vector<2x32xf32>
    %887 = arith.addf %885, %886 : vector<2x32xf32>
    %888 = vector.extract_strided_slice %877 {offsets = [0, 64], sizes = [2, 32], strides = [1, 1]} : vector<2x128xf32> to vector<2x32xf32>
    %889 = vector.extract_strided_slice %877 {offsets = [0, 96], sizes = [2, 32], strides = [1, 1]} : vector<2x128xf32> to vector<2x32xf32>
    %cst_386 = arith.constant 5.000000e-01 : f32
    %890 = vector.broadcast %cst_386 : f32 to vector<2x32xf32>
    %891 = arith.mulf %889, %890 : vector<2x32xf32>
    %cst_387 = arith.constant 5.000000e-01 : f32
    %892 = vector.broadcast %cst_387 : f32 to vector<2x32xf32>
    %893 = arith.addf %891, %892 : vector<2x32xf32>
    %894 = arith.mulf %887, %865 : vector<2x32xf32>
    %895 = arith.mulf %882, %888 : vector<2x32xf32>
    %896 = arith.addf %894, %895 : vector<2x32xf32>
    %897 = math.tanh %896 : vector<2x32xf32>
    %898 = arith.mulf %893, %897 : vector<2x32xf32>
    %899 = arith.index_cast %c9_i32_378 : i32 to index
    %c0_388 = arith.constant 0 : index
    %c0_389 = arith.constant 0 : index
    %900 = vector.load %arg27[%899, %c0_388, %c0_389] : memref<16x2x32xf32, #tpu.memory_space<vmem>>, vector<1x2x32xf32>
    %901 = vector.shape_cast %900 : vector<1x2x32xf32> to vector<2x32xf32>
    %902 = vector.shape_cast %898 : vector<2x32xf32> to vector<1x2x32xf32>
    tpu.vector_store %arg27[%899, %c0_388, %c0_389], %902 {strides = array<i32>} : memref<16x2x32xf32, #tpu.memory_space<vmem>>, vector<1x2x32xf32>,
    %c10_i32_390 = arith.constant 10 : i32
    %903 = arith.index_cast %c10_i32_390 : i32 to index
    %c0_391 = arith.constant 0 : index
    %c0_392 = arith.constant 0 : index
    %904 = vector.load %arg26[%903, %c0_391, %c0_392] : memref<16x2x128xf32, #tpu.memory_space<vmem>>, vector<1x2x128xf32>
    %905 = vector.shape_cast %904 : vector<1x2x128xf32> to vector<2x128xf32>
    %cst_393 = arith.constant dense<0.000000e+00> : vector<2x128xf32>
    %906 = tpu.matmul %898, %591, %cst_393 {dimension_numbers = #tpu.dot_dimension_numbers<[1], [0], [0], [1], [0, 0, 1, 1], [], []>} : vector<2x32xf32>, vector<32x128xf32>, vector<2x128xf32> -> vector<2x128xf32>
    %907 = arith.addf %905, %906 : vector<2x128xf32>
    %908 = math.tanh %907 : vector<2x128xf32>
    %909 = vector.extract_strided_slice %908 {offsets = [0, 0], sizes = [2, 32], strides = [1, 1]} : vector<2x128xf32> to vector<2x32xf32>
    %cst_394 = arith.constant 5.000000e-01 : f32
    %910 = vector.broadcast %cst_394 : f32 to vector<2x32xf32>
    %911 = arith.mulf %909, %910 : vector<2x32xf32>
    %cst_395 = arith.constant 5.000000e-01 : f32
    %912 = vector.broadcast %cst_395 : f32 to vector<2x32xf32>
    %913 = arith.addf %911, %912 : vector<2x32xf32>
    %914 = vector.extract_strided_slice %908 {offsets = [0, 32], sizes = [2, 32], strides = [1, 1]} : vector<2x128xf32> to vector<2x32xf32>
    %cst_396 = arith.constant 5.000000e-01 : f32
    %915 = vector.broadcast %cst_396 : f32 to vector<2x32xf32>
    %916 = arith.mulf %914, %915 : vector<2x32xf32>
    %cst_397 = arith.constant 5.000000e-01 : f32
    %917 = vector.broadcast %cst_397 : f32 to vector<2x32xf32>
    %918 = arith.addf %916, %917 : vector<2x32xf32>
    %919 = vector.extract_strided_slice %908 {offsets = [0, 64], sizes = [2, 32], strides = [1, 1]} : vector<2x128xf32> to vector<2x32xf32>
    %920 = vector.extract_strided_slice %908 {offsets = [0, 96], sizes = [2, 32], strides = [1, 1]} : vector<2x128xf32> to vector<2x32xf32>
    %cst_398 = arith.constant 5.000000e-01 : f32
    %921 = vector.broadcast %cst_398 : f32 to vector<2x32xf32>
    %922 = arith.mulf %920, %921 : vector<2x32xf32>
    %cst_399 = arith.constant 5.000000e-01 : f32
    %923 = vector.broadcast %cst_399 : f32 to vector<2x32xf32>
    %924 = arith.addf %922, %923 : vector<2x32xf32>
    %925 = arith.mulf %918, %896 : vector<2x32xf32>
    %926 = arith.mulf %913, %919 : vector<2x32xf32>
    %927 = arith.addf %925, %926 : vector<2x32xf32>
    %928 = math.tanh %927 : vector<2x32xf32>
    %929 = arith.mulf %924, %928 : vector<2x32xf32>
    %930 = arith.index_cast %c10_i32_390 : i32 to index
    %c0_400 = arith.constant 0 : index
    %c0_401 = arith.constant 0 : index
    %931 = vector.load %arg27[%930, %c0_400, %c0_401] : memref<16x2x32xf32, #tpu.memory_space<vmem>>, vector<1x2x32xf32>
    %932 = vector.shape_cast %931 : vector<1x2x32xf32> to vector<2x32xf32>
    %933 = vector.shape_cast %929 : vector<2x32xf32> to vector<1x2x32xf32>
    tpu.vector_store %arg27[%930, %c0_400, %c0_401], %933 {strides = array<i32>} : memref<16x2x32xf32, #tpu.memory_space<vmem>>, vector<1x2x32xf32>,
    %c11_i32_402 = arith.constant 11 : i32
    %934 = arith.index_cast %c11_i32_402 : i32 to index
    %c0_403 = arith.constant 0 : index
    %c0_404 = arith.constant 0 : index
    %935 = vector.load %arg26[%934, %c0_403, %c0_404] : memref<16x2x128xf32, #tpu.memory_space<vmem>>, vector<1x2x128xf32>
    %936 = vector.shape_cast %935 : vector<1x2x128xf32> to vector<2x128xf32>
    %cst_405 = arith.constant dense<0.000000e+00> : vector<2x128xf32>
    %937 = tpu.matmul %929, %591, %cst_405 {dimension_numbers = #tpu.dot_dimension_numbers<[1], [0], [0], [1], [0, 0, 1, 1], [], []>} : vector<2x32xf32>, vector<32x128xf32>, vector<2x128xf32> -> vector<2x128xf32>
    %938 = arith.addf %936, %937 : vector<2x128xf32>
    %939 = math.tanh %938 : vector<2x128xf32>
    %940 = vector.extract_strided_slice %939 {offsets = [0, 0], sizes = [2, 32], strides = [1, 1]} : vector<2x128xf32> to vector<2x32xf32>
    %cst_406 = arith.constant 5.000000e-01 : f32
    %941 = vector.broadcast %cst_406 : f32 to vector<2x32xf32>
    %942 = arith.mulf %940, %941 : vector<2x32xf32>
    %cst_407 = arith.constant 5.000000e-01 : f32
    %943 = vector.broadcast %cst_407 : f32 to vector<2x32xf32>
    %944 = arith.addf %942, %943 : vector<2x32xf32>
    %945 = vector.extract_strided_slice %939 {offsets = [0, 32], sizes = [2, 32], strides = [1, 1]} : vector<2x128xf32> to vector<2x32xf32>
    %cst_408 = arith.constant 5.000000e-01 : f32
    %946 = vector.broadcast %cst_408 : f32 to vector<2x32xf32>
    %947 = arith.mulf %945, %946 : vector<2x32xf32>
    %cst_409 = arith.constant 5.000000e-01 : f32
    %948 = vector.broadcast %cst_409 : f32 to vector<2x32xf32>
    %949 = arith.addf %947, %948 : vector<2x32xf32>
    %950 = vector.extract_strided_slice %939 {offsets = [0, 64], sizes = [2, 32], strides = [1, 1]} : vector<2x128xf32> to vector<2x32xf32>
    %951 = vector.extract_strided_slice %939 {offsets = [0, 96], sizes = [2, 32], strides = [1, 1]} : vector<2x128xf32> to vector<2x32xf32>
    %cst_410 = arith.constant 5.000000e-01 : f32
    %952 = vector.broadcast %cst_410 : f32 to vector<2x32xf32>
    %953 = arith.mulf %951, %952 : vector<2x32xf32>
    %cst_411 = arith.constant 5.000000e-01 : f32
    %954 = vector.broadcast %cst_411 : f32 to vector<2x32xf32>
    %955 = arith.addf %953, %954 : vector<2x32xf32>
    %956 = arith.mulf %949, %927 : vector<2x32xf32>
    %957 = arith.mulf %944, %950 : vector<2x32xf32>
    %958 = arith.addf %956, %957 : vector<2x32xf32>
    %959 = math.tanh %958 : vector<2x32xf32>
    %960 = arith.mulf %955, %959 : vector<2x32xf32>
    %961 = arith.index_cast %c11_i32_402 : i32 to index
    %c0_412 = arith.constant 0 : index
    %c0_413 = arith.constant 0 : index
    %962 = vector.load %arg27[%961, %c0_412, %c0_413] : memref<16x2x32xf32, #tpu.memory_space<vmem>>, vector<1x2x32xf32>
    %963 = vector.shape_cast %962 : vector<1x2x32xf32> to vector<2x32xf32>
    %964 = vector.shape_cast %960 : vector<2x32xf32> to vector<1x2x32xf32>
    tpu.vector_store %arg27[%961, %c0_412, %c0_413], %964 {strides = array<i32>} : memref<16x2x32xf32, #tpu.memory_space<vmem>>, vector<1x2x32xf32>,
    %c12_i32_414 = arith.constant 12 : i32
    %965 = arith.index_cast %c12_i32_414 : i32 to index
    %c0_415 = arith.constant 0 : index
    %c0_416 = arith.constant 0 : index
    %966 = vector.load %arg26[%965, %c0_415, %c0_416] : memref<16x2x128xf32, #tpu.memory_space<vmem>>, vector<1x2x128xf32>
    %967 = vector.shape_cast %966 : vector<1x2x128xf32> to vector<2x128xf32>
    %cst_417 = arith.constant dense<0.000000e+00> : vector<2x128xf32>
    %968 = tpu.matmul %960, %591, %cst_417 {dimension_numbers = #tpu.dot_dimension_numbers<[1], [0], [0], [1], [0, 0, 1, 1], [], []>} : vector<2x32xf32>, vector<32x128xf32>, vector<2x128xf32> -> vector<2x128xf32>
    %969 = arith.addf %967, %968 : vector<2x128xf32>
    %970 = math.tanh %969 : vector<2x128xf32>
    %971 = vector.extract_strided_slice %970 {offsets = [0, 0], sizes = [2, 32], strides = [1, 1]} : vector<2x128xf32> to vector<2x32xf32>
    %cst_418 = arith.constant 5.000000e-01 : f32
    %972 = vector.broadcast %cst_418 : f32 to vector<2x32xf32>
    %973 = arith.mulf %971, %972 : vector<2x32xf32>
    %cst_419 = arith.constant 5.000000e-01 : f32
    %974 = vector.broadcast %cst_419 : f32 to vector<2x32xf32>
    %975 = arith.addf %973, %974 : vector<2x32xf32>
    %976 = vector.extract_strided_slice %970 {offsets = [0, 32], sizes = [2, 32], strides = [1, 1]} : vector<2x128xf32> to vector<2x32xf32>
    %cst_420 = arith.constant 5.000000e-01 : f32
    %977 = vector.broadcast %cst_420 : f32 to vector<2x32xf32>
    %978 = arith.mulf %976, %977 : vector<2x32xf32>
    %cst_421 = arith.constant 5.000000e-01 : f32
    %979 = vector.broadcast %cst_421 : f32 to vector<2x32xf32>
    %980 = arith.addf %978, %979 : vector<2x32xf32>
    %981 = vector.extract_strided_slice %970 {offsets = [0, 64], sizes = [2, 32], strides = [1, 1]} : vector<2x128xf32> to vector<2x32xf32>
    %982 = vector.extract_strided_slice %970 {offsets = [0, 96], sizes = [2, 32], strides = [1, 1]} : vector<2x128xf32> to vector<2x32xf32>
    %cst_422 = arith.constant 5.000000e-01 : f32
    %983 = vector.broadcast %cst_422 : f32 to vector<2x32xf32>
    %984 = arith.mulf %982, %983 : vector<2x32xf32>
    %cst_423 = arith.constant 5.000000e-01 : f32
    %985 = vector.broadcast %cst_423 : f32 to vector<2x32xf32>
    %986 = arith.addf %984, %985 : vector<2x32xf32>
    %987 = arith.mulf %980, %958 : vector<2x32xf32>
    %988 = arith.mulf %975, %981 : vector<2x32xf32>
    %989 = arith.addf %987, %988 : vector<2x32xf32>
    %990 = math.tanh %989 : vector<2x32xf32>
    %991 = arith.mulf %986, %990 : vector<2x32xf32>
    %992 = arith.index_cast %c12_i32_414 : i32 to index
    %c0_424 = arith.constant 0 : index
    %c0_425 = arith.constant 0 : index
    %993 = vector.load %arg27[%992, %c0_424, %c0_425] : memref<16x2x32xf32, #tpu.memory_space<vmem>>, vector<1x2x32xf32>
    %994 = vector.shape_cast %993 : vector<1x2x32xf32> to vector<2x32xf32>
    %995 = vector.shape_cast %991 : vector<2x32xf32> to vector<1x2x32xf32>
    tpu.vector_store %arg27[%992, %c0_424, %c0_425], %995 {strides = array<i32>} : memref<16x2x32xf32, #tpu.memory_space<vmem>>, vector<1x2x32xf32>,
    %c13_i32_426 = arith.constant 13 : i32
    %996 = arith.index_cast %c13_i32_426 : i32 to index
    %c0_427 = arith.constant 0 : index
    %c0_428 = arith.constant 0 : index
    %997 = vector.load %arg26[%996, %c0_427, %c0_428] : memref<16x2x128xf32, #tpu.memory_space<vmem>>, vector<1x2x128xf32>
    %998 = vector.shape_cast %997 : vector<1x2x128xf32> to vector<2x128xf32>
    %cst_429 = arith.constant dense<0.000000e+00> : vector<2x128xf32>
    %999 = tpu.matmul %991, %591, %cst_429 {dimension_numbers = #tpu.dot_dimension_numbers<[1], [0], [0], [1], [0, 0, 1, 1], [], []>} : vector<2x32xf32>, vector<32x128xf32>, vector<2x128xf32> -> vector<2x128xf32>
    %1000 = arith.addf %998, %999 : vector<2x128xf32>
    %1001 = math.tanh %1000 : vector<2x128xf32>
    %1002 = vector.extract_strided_slice %1001 {offsets = [0, 0], sizes = [2, 32], strides = [1, 1]} : vector<2x128xf32> to vector<2x32xf32>
    %cst_430 = arith.constant 5.000000e-01 : f32
    %1003 = vector.broadcast %cst_430 : f32 to vector<2x32xf32>
    %1004 = arith.mulf %1002, %1003 : vector<2x32xf32>
    %cst_431 = arith.constant 5.000000e-01 : f32
    %1005 = vector.broadcast %cst_431 : f32 to vector<2x32xf32>
    %1006 = arith.addf %1004, %1005 : vector<2x32xf32>
    %1007 = vector.extract_strided_slice %1001 {offsets = [0, 32], sizes = [2, 32], strides = [1, 1]} : vector<2x128xf32> to vector<2x32xf32>
    %cst_432 = arith.constant 5.000000e-01 : f32
    %1008 = vector.broadcast %cst_432 : f32 to vector<2x32xf32>
    %1009 = arith.mulf %1007, %1008 : vector<2x32xf32>
    %cst_433 = arith.constant 5.000000e-01 : f32
    %1010 = vector.broadcast %cst_433 : f32 to vector<2x32xf32>
    %1011 = arith.addf %1009, %1010 : vector<2x32xf32>
    %1012 = vector.extract_strided_slice %1001 {offsets = [0, 64], sizes = [2, 32], strides = [1, 1]} : vector<2x128xf32> to vector<2x32xf32>
    %1013 = vector.extract_strided_slice %1001 {offsets = [0, 96], sizes = [2, 32], strides = [1, 1]} : vector<2x128xf32> to vector<2x32xf32>
    %cst_434 = arith.constant 5.000000e-01 : f32
    %1014 = vector.broadcast %cst_434 : f32 to vector<2x32xf32>
    %1015 = arith.mulf %1013, %1014 : vector<2x32xf32>
    %cst_435 = arith.constant 5.000000e-01 : f32
    %1016 = vector.broadcast %cst_435 : f32 to vector<2x32xf32>
    %1017 = arith.addf %1015, %1016 : vector<2x32xf32>
    %1018 = arith.mulf %1011, %989 : vector<2x32xf32>
    %1019 = arith.mulf %1006, %1012 : vector<2x32xf32>
    %1020 = arith.addf %1018, %1019 : vector<2x32xf32>
    %1021 = math.tanh %1020 : vector<2x32xf32>
    %1022 = arith.mulf %1017, %1021 : vector<2x32xf32>
    %1023 = arith.index_cast %c13_i32_426 : i32 to index
    %c0_436 = arith.constant 0 : index
    %c0_437 = arith.constant 0 : index
    %1024 = vector.load %arg27[%1023, %c0_436, %c0_437] : memref<16x2x32xf32, #tpu.memory_space<vmem>>, vector<1x2x32xf32>
    %1025 = vector.shape_cast %1024 : vector<1x2x32xf32> to vector<2x32xf32>
    %1026 = vector.shape_cast %1022 : vector<2x32xf32> to vector<1x2x32xf32>
    tpu.vector_store %arg27[%1023, %c0_436, %c0_437], %1026 {strides = array<i32>} : memref<16x2x32xf32, #tpu.memory_space<vmem>>, vector<1x2x32xf32>,
    %c14_i32_438 = arith.constant 14 : i32
    %1027 = arith.index_cast %c14_i32_438 : i32 to index
    %c0_439 = arith.constant 0 : index
    %c0_440 = arith.constant 0 : index
    %1028 = vector.load %arg26[%1027, %c0_439, %c0_440] : memref<16x2x128xf32, #tpu.memory_space<vmem>>, vector<1x2x128xf32>
    %1029 = vector.shape_cast %1028 : vector<1x2x128xf32> to vector<2x128xf32>
    %cst_441 = arith.constant dense<0.000000e+00> : vector<2x128xf32>
    %1030 = tpu.matmul %1022, %591, %cst_441 {dimension_numbers = #tpu.dot_dimension_numbers<[1], [0], [0], [1], [0, 0, 1, 1], [], []>} : vector<2x32xf32>, vector<32x128xf32>, vector<2x128xf32> -> vector<2x128xf32>
    %1031 = arith.addf %1029, %1030 : vector<2x128xf32>
    %1032 = math.tanh %1031 : vector<2x128xf32>
    %1033 = vector.extract_strided_slice %1032 {offsets = [0, 0], sizes = [2, 32], strides = [1, 1]} : vector<2x128xf32> to vector<2x32xf32>
    %cst_442 = arith.constant 5.000000e-01 : f32
    %1034 = vector.broadcast %cst_442 : f32 to vector<2x32xf32>
    %1035 = arith.mulf %1033, %1034 : vector<2x32xf32>
    %cst_443 = arith.constant 5.000000e-01 : f32
    %1036 = vector.broadcast %cst_443 : f32 to vector<2x32xf32>
    %1037 = arith.addf %1035, %1036 : vector<2x32xf32>
    %1038 = vector.extract_strided_slice %1032 {offsets = [0, 32], sizes = [2, 32], strides = [1, 1]} : vector<2x128xf32> to vector<2x32xf32>
    %cst_444 = arith.constant 5.000000e-01 : f32
    %1039 = vector.broadcast %cst_444 : f32 to vector<2x32xf32>
    %1040 = arith.mulf %1038, %1039 : vector<2x32xf32>
    %cst_445 = arith.constant 5.000000e-01 : f32
    %1041 = vector.broadcast %cst_445 : f32 to vector<2x32xf32>
    %1042 = arith.addf %1040, %1041 : vector<2x32xf32>
    %1043 = vector.extract_strided_slice %1032 {offsets = [0, 64], sizes = [2, 32], strides = [1, 1]} : vector<2x128xf32> to vector<2x32xf32>
    %1044 = vector.extract_strided_slice %1032 {offsets = [0, 96], sizes = [2, 32], strides = [1, 1]} : vector<2x128xf32> to vector<2x32xf32>
    %cst_446 = arith.constant 5.000000e-01 : f32
    %1045 = vector.broadcast %cst_446 : f32 to vector<2x32xf32>
    %1046 = arith.mulf %1044, %1045 : vector<2x32xf32>
    %cst_447 = arith.constant 5.000000e-01 : f32
    %1047 = vector.broadcast %cst_447 : f32 to vector<2x32xf32>
    %1048 = arith.addf %1046, %1047 : vector<2x32xf32>
    %1049 = arith.mulf %1042, %1020 : vector<2x32xf32>
    %1050 = arith.mulf %1037, %1043 : vector<2x32xf32>
    %1051 = arith.addf %1049, %1050 : vector<2x32xf32>
    %1052 = math.tanh %1051 : vector<2x32xf32>
    %1053 = arith.mulf %1048, %1052 : vector<2x32xf32>
    %1054 = arith.index_cast %c14_i32_438 : i32 to index
    %c0_448 = arith.constant 0 : index
    %c0_449 = arith.constant 0 : index
    %1055 = vector.load %arg27[%1054, %c0_448, %c0_449] : memref<16x2x32xf32, #tpu.memory_space<vmem>>, vector<1x2x32xf32>
    %1056 = vector.shape_cast %1055 : vector<1x2x32xf32> to vector<2x32xf32>
    %1057 = vector.shape_cast %1053 : vector<2x32xf32> to vector<1x2x32xf32>
    tpu.vector_store %arg27[%1054, %c0_448, %c0_449], %1057 {strides = array<i32>} : memref<16x2x32xf32, #tpu.memory_space<vmem>>, vector<1x2x32xf32>,
    %c15_i32_450 = arith.constant 15 : i32
    %1058 = arith.index_cast %c15_i32_450 : i32 to index
    %c0_451 = arith.constant 0 : index
    %c0_452 = arith.constant 0 : index
    %1059 = vector.load %arg26[%1058, %c0_451, %c0_452] : memref<16x2x128xf32, #tpu.memory_space<vmem>>, vector<1x2x128xf32>
    %1060 = vector.shape_cast %1059 : vector<1x2x128xf32> to vector<2x128xf32>
    %cst_453 = arith.constant dense<0.000000e+00> : vector<2x128xf32>
    %1061 = tpu.matmul %1053, %591, %cst_453 {dimension_numbers = #tpu.dot_dimension_numbers<[1], [0], [0], [1], [0, 0, 1, 1], [], []>} : vector<2x32xf32>, vector<32x128xf32>, vector<2x128xf32> -> vector<2x128xf32>
    %1062 = arith.addf %1060, %1061 : vector<2x128xf32>
    %1063 = math.tanh %1062 : vector<2x128xf32>
    %1064 = vector.extract_strided_slice %1063 {offsets = [0, 0], sizes = [2, 32], strides = [1, 1]} : vector<2x128xf32> to vector<2x32xf32>
    %cst_454 = arith.constant 5.000000e-01 : f32
    %1065 = vector.broadcast %cst_454 : f32 to vector<2x32xf32>
    %1066 = arith.mulf %1064, %1065 : vector<2x32xf32>
    %cst_455 = arith.constant 5.000000e-01 : f32
    %1067 = vector.broadcast %cst_455 : f32 to vector<2x32xf32>
    %1068 = arith.addf %1066, %1067 : vector<2x32xf32>
    %1069 = vector.extract_strided_slice %1063 {offsets = [0, 32], sizes = [2, 32], strides = [1, 1]} : vector<2x128xf32> to vector<2x32xf32>
    %cst_456 = arith.constant 5.000000e-01 : f32
    %1070 = vector.broadcast %cst_456 : f32 to vector<2x32xf32>
    %1071 = arith.mulf %1069, %1070 : vector<2x32xf32>
    %cst_457 = arith.constant 5.000000e-01 : f32
    %1072 = vector.broadcast %cst_457 : f32 to vector<2x32xf32>
    %1073 = arith.addf %1071, %1072 : vector<2x32xf32>
    %1074 = vector.extract_strided_slice %1063 {offsets = [0, 64], sizes = [2, 32], strides = [1, 1]} : vector<2x128xf32> to vector<2x32xf32>
    %1075 = vector.extract_strided_slice %1063 {offsets = [0, 96], sizes = [2, 32], strides = [1, 1]} : vector<2x128xf32> to vector<2x32xf32>
    %cst_458 = arith.constant 5.000000e-01 : f32
    %1076 = vector.broadcast %cst_458 : f32 to vector<2x32xf32>
    %1077 = arith.mulf %1075, %1076 : vector<2x32xf32>
    %cst_459 = arith.constant 5.000000e-01 : f32
    %1078 = vector.broadcast %cst_459 : f32 to vector<2x32xf32>
    %1079 = arith.addf %1077, %1078 : vector<2x32xf32>
    %1080 = arith.mulf %1073, %1051 : vector<2x32xf32>
    %1081 = arith.mulf %1068, %1074 : vector<2x32xf32>
    %1082 = arith.addf %1080, %1081 : vector<2x32xf32>
    %1083 = math.tanh %1082 : vector<2x32xf32>
    %1084 = arith.mulf %1079, %1083 : vector<2x32xf32>
    %1085 = arith.index_cast %c15_i32_450 : i32 to index
    %c0_460 = arith.constant 0 : index
    %c0_461 = arith.constant 0 : index
    %1086 = vector.load %arg27[%1085, %c0_460, %c0_461] : memref<16x2x32xf32, #tpu.memory_space<vmem>>, vector<1x2x32xf32>
    %1087 = vector.shape_cast %1086 : vector<1x2x32xf32> to vector<2x32xf32>
    %1088 = vector.shape_cast %1084 : vector<2x32xf32> to vector<1x2x32xf32>
    tpu.vector_store %arg27[%1085, %c0_460, %c0_461], %1088 {strides = array<i32>} : memref<16x2x32xf32, #tpu.memory_space<vmem>>, vector<1x2x32xf32>,
    %c16_i32_462 = arith.constant 16 : i32
    %c0_463 = arith.constant 0 : index
    %c0_464 = arith.constant 0 : index
    %c0_465 = arith.constant 0 : index
    %1089 = vector.load %arg27[%c0_463, %c0_464, %c0_465] : memref<16x2x32xf32, #tpu.memory_space<vmem>>, vector<16x2x32xf32>
    %1090 = vector.shape_cast %1089 : vector<16x2x32xf32> to vector<32x32xf32>
    %cst_466 = arith.constant dense<0.000000e+00> : vector<32x32xf32>
    %1091 = tpu.matmul %68, %1090, %cst_466 {dimension_numbers = #tpu.dot_dimension_numbers<[1], [0], [0], [1], [0, 0, 1, 1], [], []>} : vector<32x32xf32>, vector<32x32xf32>, vector<32x32xf32> -> vector<32x32xf32>
    %c0_467 = arith.constant 0 : index
    %c0_468 = arith.constant 0 : index
    %1092 = vector.load %arg18[%c0_467, %c0_468] : memref<32x4xf32, #tpu.memory_space<vmem>>, vector<32x4xf32>
    %cst_469 = arith.constant dense<0.000000e+00> : vector<32x4xf32>
    %1093 = tpu.matmul %1090, %1092, %cst_469 {dimension_numbers = #tpu.dot_dimension_numbers<[1], [0], [0], [1], [0, 0, 1, 1], [], []>} : vector<32x32xf32>, vector<32x4xf32>, vector<32x4xf32> -> vector<32x4xf32>
    %c0_470 = arith.constant 0 : index
    %c0_471 = arith.constant 0 : index
    %1094 = vector.load %arg19[%c0_470, %c0_471] : memref<32x4xf32, #tpu.memory_space<vmem>>, vector<32x4xf32>
    %cst_472 = arith.constant dense<0.000000e+00> : vector<32x4xf32>
    %1095 = tpu.matmul %1091, %1094, %cst_472 {dimension_numbers = #tpu.dot_dimension_numbers<[1], [0], [0], [1], [0, 0, 1, 1], [], []>} : vector<32x32xf32>, vector<32x4xf32>, vector<32x4xf32> -> vector<32x4xf32>
    %1096 = arith.addf %1093, %1095 : vector<32x4xf32>
    %c0_473 = arith.constant 0 : index
    %c0_474 = arith.constant 0 : index
    %1097 = vector.load %arg20[%c0_473, %c0_474] : memref<1x4xf32, #tpu.memory_space<vmem>>, vector<1x4xf32>
    %1098 = vector.broadcast %1097 : vector<1x4xf32> to vector<32x4xf32>
    %1099 = arith.addf %1096, %1098 : vector<32x4xf32>
    %c0_475 = arith.constant 0 : index
    %c0_476 = arith.constant 0 : index
    %1100 = vector.load %arg21[%c0_475, %c0_476] : memref<32x4xf32, #tpu.memory_space<vmem>>, vector<32x4xf32>
    tpu.vector_store %arg21[%c0_475, %c0_476], %1099 {strides = array<i32>} : memref<32x4xf32, #tpu.memory_space<vmem>>, vector<32x4xf32>,
    return
  }
  func.func @transform_0(%arg0: i32) -> (i32, i32) {
    %c0_i32 = arith.constant 0 : i32
    %c0_i32_0 = arith.constant 0 : i32
    %c0_i32_1 = arith.constant 0 : i32
    return %c0_i32, %c0_i32_0 : i32, i32
  }
  func.func @transform_1(%arg0: i32) -> (i32, i32) {
    %c0_i32 = arith.constant 0 : i32
    %c0_i32_0 = arith.constant 0 : i32
    %c0_i32_1 = arith.constant 0 : i32
    return %c0_i32, %c0_i32_0 : i32, i32
  }
  func.func @transform_2(%arg0: i32) -> (i32, i32) {
    %c0_i32 = arith.constant 0 : i32
    %c0_i32_0 = arith.constant 0 : i32
    %c0_i32_1 = arith.constant 0 : i32
    return %c0_i32, %c0_i32_0 : i32, i32
  }
  func.func @transform_3(%arg0: i32) -> (i32, i32, i32) {
    %c0_i32 = arith.constant 0 : i32
    %c0_i32_0 = arith.constant 0 : i32
    %c0_i32_1 = arith.constant 0 : i32
    %c0_i32_2 = arith.constant 0 : i32
    return %c0_i32, %c0_i32_0, %c0_i32_1 : i32, i32, i32
  }
  func.func @transform_4(%arg0: i32) -> (i32, i32) {
    %c0_i32 = arith.constant 0 : i32
    %c0_i32_0 = arith.constant 0 : i32
    %c0_i32_1 = arith.constant 0 : i32
    return %c0_i32, %c0_i32_0 : i32, i32
  }
  func.func @transform_5(%arg0: i32) -> (i32, i32, i32) {
    %c0_i32 = arith.constant 0 : i32
    %c0_i32_0 = arith.constant 0 : i32
    %c0_i32_1 = arith.constant 0 : i32
    %c0_i32_2 = arith.constant 0 : i32
    return %c0_i32, %c0_i32_0, %c0_i32_1 : i32, i32, i32
  }
  func.func @transform_6(%arg0: i32) -> (i32, i32) {
    %c0_i32 = arith.constant 0 : i32
    %c0_i32_0 = arith.constant 0 : i32
    %c0_i32_1 = arith.constant 0 : i32
    return %c0_i32, %c0_i32_0 : i32, i32
  }
  func.func @transform_7(%arg0: i32) -> (i32, i32, i32) {
    %c0_i32 = arith.constant 0 : i32
    %c0_i32_0 = arith.constant 0 : i32
    %c0_i32_1 = arith.constant 0 : i32
    %c0_i32_2 = arith.constant 0 : i32
    return %c0_i32, %c0_i32_0, %c0_i32_1 : i32, i32, i32
  }
  func.func @transform_8(%arg0: i32) -> (i32, i32) {
    %c0_i32 = arith.constant 0 : i32
    %c0_i32_0 = arith.constant 0 : i32
    %c0_i32_1 = arith.constant 0 : i32
    return %c0_i32, %c0_i32_0 : i32, i32
  }
  func.func @transform_9(%arg0: i32) -> (i32, i32) {
    %c0_i32 = arith.constant 0 : i32
    %c0_i32_0 = arith.constant 0 : i32
    %c0_i32_1 = arith.constant 0 : i32
    return %c0_i32, %c0_i32_0 : i32, i32
  }
  func.func @transform_10(%arg0: i32) -> (i32, i32) {
    %c0_i32 = arith.constant 0 : i32
    %c0_i32_0 = arith.constant 0 : i32
    %c0_i32_1 = arith.constant 0 : i32
    return %c0_i32, %c0_i32_0 : i32, i32
  }
  func.func @transform_11(%arg0: i32) -> (i32, i32) {
    %c0_i32 = arith.constant 0 : i32
    %c0_i32_0 = arith.constant 0 : i32
    %c0_i32_1 = arith.constant 0 : i32
    return %c0_i32, %c0_i32_0 : i32, i32
  }
  func.func @transform_12(%arg0: i32) -> (i32, i32) {
    %c0_i32 = arith.constant 0 : i32
    %c0_i32_0 = arith.constant 0 : i32
    %c0_i32_1 = arith.constant 0 : i32
    return %c0_i32, %c0_i32_0 : i32, i32
  }
  func.func @transform_13(%arg0: i32) -> (i32, i32) {
    %c0_i32 = arith.constant 0 : i32
    %c0_i32_0 = arith.constant 0 : i32
    %c0_i32_1 = arith.constant 0 : i32
    return %c0_i32, %c0_i32_0 : i32, i32
  }
  func.func @transform_14(%arg0: i32) -> (i32, i32) {
    %c0_i32 = arith.constant 0 : i32
    %c0_i32_0 = arith.constant 0 : i32
    %c0_i32_1 = arith.constant 0 : i32
    return %c0_i32, %c0_i32_0 : i32, i32
  }
  func.func @transform_15(%arg0: i32) -> (i32, i32) {
    %c0_i32 = arith.constant 0 : i32
    %c0_i32_0 = arith.constant 0 : i32
    %c0_i32_1 = arith.constant 0 : i32
    return %c0_i32, %c0_i32_0 : i32, i32
  }
  func.func @transform_16(%arg0: i32) -> (i32, i32) {
    %c0_i32 = arith.constant 0 : i32
    %c0_i32_0 = arith.constant 0 : i32
    %c0_i32_1 = arith.constant 0 : i32
    return %c0_i32, %c0_i32_0 : i32, i32
  }
  func.func @transform_17(%arg0: i32) -> (i32, i32) {
    %c0_i32 = arith.constant 0 : i32
    %c0_i32_0 = arith.constant 0 : i32
    %c0_i32_1 = arith.constant 0 : i32
    return %c0_i32, %c0_i32_0 : i32, i32
  }
  func.func @transform_18(%arg0: i32) -> (i32, i32) {
    %c0_i32 = arith.constant 0 : i32
    %c0_i32_0 = arith.constant 0 : i32
    %c0_i32_1 = arith.constant 0 : i32
    return %c0_i32, %c0_i32_0 : i32, i32
  }
  func.func @transform_19(%arg0: i32) -> (i32, i32) {
    %c0_i32 = arith.constant 0 : i32
    %c0_i32_0 = arith.constant 0 : i32
    %c0_i32_1 = arith.constant 0 : i32
    return %c0_i32, %c0_i32_0 : i32, i32
  }
  func.func @transform_20(%arg0: i32) -> (i32, i32) {
    %c0_i32 = arith.constant 0 : i32
    %c0_i32_0 = arith.constant 0 : i32
    %c0_i32_1 = arith.constant 0 : i32
    return %c0_i32, %c0_i32_0 : i32, i32
  }
}

</mosaic_0001>

<bundles_post_ra>
// kernel: tpu_custom_call.1
= control target key start
LH: loop header
LB: loop body
LE: loop exit
PB: predicated region body
PF: predicated region fallthrough
CT: control target
= control target key end

     0   :  { %s8480_s0 = inlined_call_operand.vmem [shape: f32[36,4], index: 0, kind: input, shape index: {}]   ;;  %s8481_s1 = inlined_call_operand.hbm [shape: f32[32,32], index: 1, kind: input, shape index: {}]   ;;  %s8482_s2 = inlined_call_operand.hbm [shape: f32[32,32], index: 2, kind: input, shape index: {}]   ;;  %s8483_s3 = inlined_call_operand.hbm [shape: f32[3,4,8], index: 3, kind: input, shape index: {}]   ;;  %s8484_s4 = inlined_call_operand.vmem [shape: f32[1,8], index: 4, kind: input, shape index: {}]   ;;  %s8485_s5 = inlined_call_operand.hbm [shape: f32[3,8,16], index: 5, kind: input, shape index: {}]   ;;  %s8486_s6 = inlined_call_operand.hbm [shape: f32[1,16], index: 6, kind: input, shape index: {}]   ;;  %s8487_s7 = inlined_call_operand.hbm [shape: f32[3,16,32], index: 7, kind: input, shape index: {}]   ;;  %s8488_s8 = inlined_call_operand.hbm [shape: f32[1,32], index: 8, kind: input, shape index: {}]   ;;  %s8489_s9 = inlined_call_operand.hbm [shape: f32[32,256], index: 9, kind: input, shape index: {}]   ;;  %s8490_s10 = inlined_call_operand.hbm [shape: f32[32,256], index: 10, kind: input, shape index: {}]   ;;  %s8491_s11 = inlined_call_operand.vmem [shape: f32[64,256], index: 11, kind: input, shape index: {}]   ;;  %s8492_s12 = inlined_call_operand.hbm [shape: f32[1,256], index: 12, kind: input, shape index: {}]   ;;  %s8493_s13 = inlined_call_operand.hbm [shape: f32[64,128], index: 13, kind: input, shape index: {}]   ;;  %s8494_s14 = inlined_call_operand.hbm [shape: f32[64,128], index: 14, kind: input, shape index: {}]   ;;  %s8495_s15 = inlined_call_operand.hbm [shape: f32[32,128], index: 15, kind: input, shape index: {}]   ;;  %s8496_s16 = inlined_call_operand.vmem [shape: f32[1,128], index: 16, kind: input, shape index: {}]   ;;  %s8497_s17 = inlined_call_operand.vmem [shape: f32[32,4], index: 17, kind: input, shape index: {}]   ;;  %s8498_s18 = inlined_call_operand.vmem [shape: f32[32,4], index: 18, kind: input, shape index: {}]   ;;  %s8499_s19 = inlined_call_operand.vmem [shape: f32[1,4], index: 19, kind: input, shape index: {}]   ;;  %s8500_s20 = inlined_call_operand.vmem [shape: f32[32,4], index: 20, kind: output, shape index: {}]  }
   0x1   :  { %8502 = sst [smem:[#allocation35_spill]] %s8480_s0 }
   0x2   :  { %8503 = sst [smem:[#allocation36_spill]] %s8481_s1 }
   0x3   :  { %8504 = sst [smem:[#allocation37_spill]] %s8482_s2 }
   0x4   :  { %8505 = sst [smem:[#allocation38_spill]] %s8483_s3 }
   0x5   :  { %8506 = sst [smem:[#allocation39_spill]] %s8484_s4 }
   0x6   :  { %25 = vsyncpa [#allocation9], 0 }
   0x7   :  { %26 = vsyncpa [#allocation11], 0 }
   0x8   :  { %27 = vsyncpa [#allocation14], 0 }
   0x9   :  { %28 = vsyncpa [#allocation17], 0 }
   0xa   :  { %29 = vsyncpa [#allocation20], 0 }
   0xb   :  { %30 = vsyncpa [#allocation23], 0 }
   0xc   :  { %31 = vsyncpa [#allocation26], 0  ;;  %s7262_s1 = smov [#allocation10]   ;;  %s7263_s23 = smov [#allocation13]  }
   0xd   :  { %s51_s22 = sshll.u32 %s7262_s1, 4  ;;  %s77_s24 = sshll.u32 %s7263_s23, 4  ;;  %s52_s22 = int_to_ptr.vmem [resolvable:$true] %s51_s22  ;;  %s78_s24 = int_to_ptr.vmem [resolvable:$true] %s77_s24 }
   0xe   :  { %s6996_s2 = scalar_lea.vmem %s52_s22, 512  ;;  %p7001_p1 = scmp.lt.s32.totalorder %s52_s22, %s52_s22 }
   0xf   :  { %p6997_p0 = scmp.ne.s32.totalorder %s52_s22, %s6996_s2  ;;  %p7002_p2 = scmp.lt.s32.totalorder %s6996_s2, %s6996_s2 }
  0x11   :  { %p7003_p3 = por %p7002_p2, %p7001_p1 }
  0x13   :  { %p7004_p4 = pnand %p7003_p3, %p6997_p0 }
  0x15   :  { %7007 = shalt.err (!%p7004_p4)
}
  0x16   :  { %s7264_s25 = smov 128   ;;  %s7265_s3 = smov 8  }
  0x17   :  { %s8507_s28 = sld [smem:[#allocation37_spill]]  ;;  %s7016_s4 = scalar_lea.vmem %s78_s24, 384 }
  0x18   :  { %p7017_p5 = scmp.ne.s32.totalorder %s78_s24, %s7016_s4  ;;  %p7021_p6 = scmp.lt.s32.totalorder %s78_s24, %s78_s24 }
  0x19   :  { %p7022_p7 = scmp.lt.s32.totalorder %s7016_s4, %s7016_s4 }
  0x1b   :  { %p7023_p8 = por %p7022_p7, %p7021_p6 }
  0x1d   :  { %57 = dma.hbm_to_vmem [thread:$0]  %s8507_s28, 512, %s52_s22, [#allocation11], %s7264_s25, %s7264_s25, %s7265_s3  }
  0x1e   :  { %p7024_p9 = pnand %p7023_p8, %p7017_p5 }
  0x20   :  { %7027 = shalt.err (!%p7024_p9)
}
  0x21   :  { %83 = dma.hbm_to_vmem [thread:$0]  %s8485_s5, 384, %s78_s24, [#allocation14], %s7264_s25, %s7264_s25, %s7265_s3  }
  0x22   :  { %s7266_s0 = smov [#allocation16]   ;;  %s7267_s1 = smov [#allocation19]  }
  0x23   :  { %s99_s21 = sshll.u32 %s7266_s0, 4  ;;  %s121_s23 = sshll.u32 %s7267_s1, 4  ;;  %s100_s21 = int_to_ptr.vmem [resolvable:$true] %s99_s21  ;;  %s122_s23 = int_to_ptr.vmem [resolvable:$true] %s121_s23 }
  0x24   :  { %s7036_s22 = scalar_lea.vmem %s100_s21, 768  ;;  %p7041_p11 = scmp.lt.s32.totalorder %s100_s21, %s100_s21 }
  0x25   :  { %p7037_p10 = scmp.ne.s32.totalorder %s100_s21, %s7036_s22  ;;  %p7042_p12 = scmp.lt.s32.totalorder %s7036_s22, %s7036_s22 }
  0x27   :  { %p7043_p13 = por %p7042_p12, %p7041_p11 }
  0x29   :  { %p7044_p0 = pnand %p7043_p13, %p7037_p10 }
  0x2b   :  { %7047 = shalt.err (!%p7044_p0)
}
  0x2c   :  { %105 = dma.hbm_to_vmem [thread:$0]  %s8487_s7, 768, %s100_s21, [#allocation17], %s7264_s25, %s7264_s25, %s7265_s3  }
  0x2d   :  { %s7056_s5 = scalar_lea.vmem %s122_s23, 1024  ;;  %p7061_p2 = scmp.lt.s32.totalorder %s122_s23, %s122_s23 }
  0x2e   :  { %p7057_p1 = scmp.ne.s32.totalorder %s122_s23, %s7056_s5  ;;  %p7062_p3 = scmp.lt.s32.totalorder %s7056_s5, %s7056_s5 }
  0x30   :  { %p7063_p4 = por %p7062_p3, %p7061_p2 }
  0x32   :  { %p7064_p5 = pnand %p7063_p4, %p7057_p1 }
  0x34   :  { %7067 = shalt.err (!%p7064_p5)
}
  0x35   :  { %s7268_s24 = smov 256   ;;  %s7269_s27 = smov 16  }
  0x36   :  { %127 = dma.hbm_to_vmem [thread:$0]  %s8489_s9, 1024, %s122_s23, [#allocation20], %s7268_s24, %s7268_s24, %s7269_s27  }
  0x37   :  { %s7270_s29 = smov [#allocation22]   ;;  %s7271_s0 = smov [#allocation25]  }
  0x38   :  { %s148_s30 = sshll.u32 %s7270_s29, 4  ;;  %s169_s7 = sshll.u32 %s7271_s0, 4  ;;  %s149_s30 = int_to_ptr.vmem [resolvable:$true] %s148_s30  ;;  %s170_s7 = int_to_ptr.vmem [resolvable:$true] %s169_s7 }
  0x39   :  { %s7076_s21 = scalar_lea.vmem %s149_s30, 32  ;;  %p7081_p7 = scmp.lt.s32.totalorder %s149_s30, %s149_s30 }
  0x3a   :  { %p7077_p6 = scmp.ne.s32.totalorder %s149_s30, %s7076_s21  ;;  %p7082_p8 = scmp.lt.s32.totalorder %s7076_s21, %s7076_s21 }
  0x3c   :  { %p7083_p9 = por %p7082_p8, %p7081_p7 }
  0x3e   :  { %p7084_p10 = pnand %p7083_p9, %p7077_p6 }
  0x40   :  { %7087 = shalt.err (!%p7084_p10)
}
  0x41   :  { %151 = dma.hbm_to_vmem [thread:$0]  %s8492_s12, 32, %s149_s30, [#allocation23]  }
  0x42   :  { %s7096_s2 = scalar_lea.vmem %s170_s7, 1024  ;;  %p7101_p12 = scmp.lt.s32.totalorder %s170_s7, %s170_s7 }
  0x43   :  { %p7097_p11 = scmp.ne.s32.totalorder %s170_s7, %s7096_s2  ;;  %p7102_p13 = scmp.lt.s32.totalorder %s7096_s2, %s7096_s2 }
  0x45   :  { %p7103_p0 = por %p7102_p13, %p7101_p12 }
  0x47   :  { %p7104_p1 = pnand %p7103_p0, %p7097_p11 }
  0x49   :  { %7107 = shalt.err (!%p7104_p1)
}
  0x4a   :  { %175 = dma.hbm_to_vmem [thread:$0]  %s8494_s14, 1024, %s170_s7, [#allocation26], %s7264_s25, %s7264_s25, %s7265_s3  }
  0x4b   :  { %s7272_s26 = smov [#allocation8]   ;;  %s7273_s28 = smov [#allocation12]  }
  0x4c   :  { %s39_s5 = sshll.u32 %s7272_s26, 4  ;;  %s63_s4 = sshll.u32 %s7273_s28, 4  ;;  %s40_s5 = int_to_ptr.vmem [resolvable:$true] %s39_s5  ;;  %s64_s4 = int_to_ptr.vmem [resolvable:$true] %s63_s4 }
  0x4d   :  { %s7116_s12 = scalar_lea.vmem %s40_s5, 512  ;;  %p7121_p3 = scmp.lt.s32.totalorder %s40_s5, %s40_s5 }
  0x4e   :  { %p7117_p2 = scmp.ne.s32.totalorder %s40_s5, %s7116_s12  ;;  %p7122_p4 = scmp.lt.s32.totalorder %s7116_s12, %s7116_s12 }
  0x50   :  { %p7123_p5 = por %p7122_p4, %p7121_p3 }
  0x52   :  { %p7124_p6 = pnand %p7123_p5, %p7117_p2 }
  0x54   :  { %7127 = shalt.err (!%p7124_p6)
}
  0x55   :  { %s8508_s0 = sld [smem:[#allocation36_spill]]  ;;  %s7136_s14 = scalar_lea.vmem %s64_s4, 192 }
  0x56   :  { %p7137_p7 = scmp.ne.s32.totalorder %s64_s4, %s7136_s14  ;;  %p7141_p8 = scmp.lt.s32.totalorder %s64_s4, %s64_s4 }
  0x57   :  { %p7142_p9 = scmp.lt.s32.totalorder %s7136_s14, %s7136_s14 }
  0x59   :  { %p7143_p10 = por %p7142_p9, %p7141_p8 }
  0x5b   :  { %45 = dma.hbm_to_vmem [thread:$0]  %s8508_s0, 512, %s40_s5, [#allocation9], %s7264_s25, %s7264_s25, %s7265_s3  }
  0x5c   :  { %p7144_p11 = pnand %p7143_p10, %p7137_p7 }
  0x5e   :  { %7147 = shalt.err (!%p7144_p11)
}
  0x5f   :  { %s7274_s7 = smov 64   ;;  %s7275_s21 = smov 4  }
  0x60   :  { %s8509_s2 = sld [smem:[#allocation38_spill]]  ;;  %s7276_s9 = smov [#allocation15]  }
  0x61   :  { %s90_s23 = sshll.u32 %s7276_s9, 4  ;;  %s7277_s26 = smov [#allocation18]   ;;  %s91_s23 = int_to_ptr.vmem [resolvable:$true] %s90_s23 }
  0x62   :  { %s112_s28 = sshll.u32 %s7277_s26, 4  ;;  %s7156_s5 = scalar_lea.vmem %s91_s23, 16  ;;  %s113_s28 = int_to_ptr.vmem [resolvable:$true] %s112_s28 }
  0x63   :  { %p7157_p12 = scmp.ne.s32.totalorder %s91_s23, %s7156_s5  ;;  %s7160_s12 = scalar_lea.vmem %s91_s23, 32 }
  0x64   :  { %p7161_p13 = scmp.lt.s32.totalorder %s91_s23, %s91_s23  ;;  %p7162_p0 = scmp.lt.s32.totalorder %s7160_s12, %s7156_s5 }
  0x66   :  { %69 = dma.hbm_to_vmem [thread:$0]  %s8509_s2, 192, %s64_s4, [#allocation11], %s7274_s7, %s7274_s7, %s7275_s21  }
  0x67   :  { %p7163_p1 = por %p7162_p0, %p7161_p13 }
  0x69   :  { %p7164_p2 = pnand %p7163_p1, %p7157_p12 }
  0x6b   :  { %7167 = shalt.err (!%p7164_p2)
}
  0x6c   :  { %93 = dma.hbm_to_vmem [thread:$0]  %s8486_s6, 16, %s91_s23, [#allocation14]  }
  0x6d   :  { %s7176_s0 = scalar_lea.vmem %s113_s28, 16  ;;  %s7180_s4 = scalar_lea.vmem %s113_s28, 32 }
  0x6e   :  { %p7177_p3 = scmp.ne.s32.totalorder %s113_s28, %s7176_s0  ;;  %p7181_p4 = scmp.lt.s32.totalorder %s113_s28, %s113_s28 }
  0x6f   :  { %p7182_p5 = scmp.lt.s32.totalorder %s7180_s4, %s7176_s0 }
  0x71   :  { %p7183_p6 = por %p7182_p5, %p7181_p4 }
  0x73   :  { %p7184_p7 = pnand %p7183_p6, %p7177_p3 }
  0x75   :  { %7187 = shalt.err (!%p7184_p7)
}
  0x76   :  { %115 = dma.hbm_to_vmem [thread:$0]  %s8488_s8, 16, %s113_s28, [#allocation17]  }
  0x77   :  { %s7278_s1 = smov [#allocation21]   ;;  %s7279_s2 = smov [#allocation24]  }
  0x78   :  { %s133_s22 = sshll.u32 %s7278_s1, 4  ;;  %s157_s9 = sshll.u32 %s7279_s2, 4  ;;  %s134_s22 = int_to_ptr.vmem [resolvable:$true] %s133_s22  ;;  %s158_s9 = int_to_ptr.vmem [resolvable:$true] %s157_s9 }
  0x79   :  { %s7196_s26 = scalar_lea.vmem %s134_s22, 1024  ;;  %p7201_p9 = scmp.lt.s32.totalorder %s134_s22, %s134_s22 }
  0x7a   :  { %p7197_p8 = scmp.ne.s32.totalorder %s134_s22, %s7196_s26  ;;  %p7202_p10 = scmp.lt.s32.totalorder %s7196_s26, %s7196_s26 }
  0x7c   :  { %p7203_p11 = por %p7202_p10, %p7201_p9 }
  0x7e   :  { %p7204_p12 = pnand %p7203_p11, %p7197_p8 }
  0x80   :  { %7207 = shalt.err (!%p7204_p12)
}
  0x81   :  { %139 = dma.hbm_to_vmem [thread:$0]  %s8490_s10, 1024, %s134_s22, [#allocation20], %s7268_s24, %s7268_s24, %s7269_s27  }
  0x82   :  { %s7216_s8 = scalar_lea.vmem %s158_s9, 1024  ;;  %p7221_p0 = scmp.lt.s32.totalorder %s158_s9, %s158_s9 }
  0x83   :  { %p7217_p13 = scmp.ne.s32.totalorder %s158_s9, %s7216_s8  ;;  %p7222_p1 = scmp.lt.s32.totalorder %s7216_s8, %s7216_s8 }
  0x85   :  { %p7223_p2 = por %p7222_p1, %p7221_p0 }
  0x87   :  { %p7224_p3 = pnand %p7223_p2, %p7217_p13 }
  0x89   :  { %7227 = shalt.err (!%p7224_p3)
}
  0x8a   :  { %163 = dma.hbm_to_vmem [thread:$0]  %s8493_s13, 1024, %s158_s9, [#allocation23], %s7264_s25, %s7264_s25, %s7265_s3  }
  0x8b   :  { %s7280_s12 = smov [#allocation27]  }
  0x8c   :  { %s181_s29 = sshll.u32 %s7280_s12, 4  ;;  %s182_s29 = int_to_ptr.vmem [resolvable:$true] %s181_s29 }
  0x8d   :  { %s7236_s30 = scalar_lea.vmem %s182_s29, 512  ;;  %p7241_p5 = scmp.lt.s32.totalorder %s182_s29, %s182_s29 }
  0x8e   :  { %p7237_p4 = scmp.ne.s32.totalorder %s182_s29, %s7236_s30  ;;  %p7242_p6 = scmp.lt.s32.totalorder %s7236_s30, %s7236_s30 }
  0x90   :  { %p7243_p7 = por %p7242_p6, %p7241_p5 }
  0x92   :  { %p7244_p8 = pnand %p7243_p7, %p7237_p4 }
  0x94   :  { %7247 = shalt.err (!%p7244_p8)
}
  0x95   :  { %187 = dma.hbm_to_vmem [thread:$0]  %s8495_s15, 512, %s182_s29, [#allocation26], %s7264_s25, %s7264_s25, %s7265_s3  }
  0x96   :  { %7248 = dma.done.wait [#allocation9], 512  }
  0x97   :  { %7249 = vsyncadd [#allocation9], 4294966784 }
  0x98   :  { %7250 = dma.done.wait [#allocation11], 704  }
  0x99   :  { %7251 = vsyncadd [#allocation11], 4294966592 }
  0x9a   :  { %7252 = dma.done.wait [#allocation14], 400  }
  0x9b   :  { %7253 = vsyncadd [#allocation14], 4294966896 }
  0x9c   :  { %7254 = dma.done.wait [#allocation17], 784  }
  0x9d   :  { %7255 = vsyncadd [#allocation17], 4294966512 }
  0x9e   :  { %7256 = dma.done.wait [#allocation20], 2048  }
  0x9f   :  { %7257 = vsyncadd [#allocation20], 4294965248 }
  0xa0   :  { %7258 = dma.done.wait [#allocation23], 1056  }
  0xa1   :  { %7259 = vsyncadd [#allocation23], 4294966240 }
  0xa2   :  { %7260 = dma.done.wait [#allocation26], 1536  }
  0xa3   :  { %7261 = vsyncadd [#allocation26], 4294965760  ;;  %vm267_vm0 = vcmask 1043456   ;;  %v242_v0 = vld [vmem:[#allocation12 + $0x4] sm:$0xf]  ;;  %s8510_s15 = sld [smem:[#allocation35_spill]] }
  0xa4   :  { %v240_v1 = vld [vmem:[#allocation12] sm:$0xf]  ;;  %vm258_vm1 = vcmask 31744   ;;  %6441 = vmatprep.subr.msk.mxu0 %vm267_vm0, %v242_v0  ;;  %vm248_vm2 = vcmask 1045504   ;;  %v453_v6 = vld [vmem:[#allocation12 + $0x8] sm:$0xf] }
  0xa5   :  { %6449 = vmatprep.subr.msk.mxu1 %vm267_vm0, %v240_v1  ;;  %6442 = vmatpush3.msk.msra.mxu0 %vm267_vm0, %v242_v0  ;;  %vm578_vm3 = vcmask 64512   ;;  %v7281_v26 = vmov 0.0   ;;  %vm583_vm4 = vcmask 60416   ;;  %v596_v27 = vld [vmem:[#allocation13 + $0x8] sm:$0xff]  ;;  %v594_v28 = vld [vmem:[#allocation13] sm:$0xff]  ;;  %v798_v29 = vld [vmem:[#allocation13 + $0x10] sm:$0xff] }
  0xa6   :  { %6450 = vmatpush3.msk.msra.mxu1 %vm267_vm0, %v240_v1  ;;  %6457 = vmatprep.subr.msk.mxu0 %vm267_vm0, %v453_v6  ;;  %580 = vst.msk [vmem:[#allocation2 + $0x8] sm:$0xff] %vm578_vm3, %v7281_v26  ;;  %581 = vst.msk [vmem:[#allocation2 + $0x10] sm:$0xff] %vm578_vm3, %v7281_v26  ;;  %s8511_s26 = sld [smem:[#allocation39_spill]]  ;;  %vm920_vm5 = vcmask 130048   ;;  %vm925_vm6 = vcmask 125952   ;;  %vm1277_vm7 = vcmask 261120  }
  0xa7   :  { %579 = vst.msk [vmem:[#allocation2] sm:$0xff] %vm578_vm3, %v7281_v26  ;;  %582 = vst.msk [vmem:[#allocation2 + $0x18] sm:$0xff] %vm578_vm3, %v7281_v26  ;;  %6465 = vmatprep.subr.mxu1 %v596_v27  ;;  %vm1854_vm8 = vcmask 517120   ;;  %vm1742_vm9 = vcmask 523264   ;;  %vm7283_vm10 = vmmov 0   ;;  %vm4193_vm11 = vcmask 254976  }
  0xa8   :  { %584 = vst.msk [vmem:[#allocation2 + $0x20] sm:$0xf] %vm583_vm4, %v7281_v26 }
  0xa9   :  { %v235_v2 = vld [vmem:[%s8510_s15] sm:$0xff]  ;;  %v236_v3 = vld [vmem:[%s8510_s15 + $0x8] sm:$0xff]  ;;  %v237_v5 = vld [vmem:[%s8510_s15 + $0x10] sm:$0xff]  ;;  %922 = vst.msk [vmem:[#allocation3 + $0x8] sm:$0xff] %vm920_vm5, %v7281_v26 }
  0xaa   :  { %v249_v4 = vrot.slane %v235_v2, 2  ;;  %v250_v7 = vrot.slane %v236_v3, 2  ;;  %v252_v8 = vrot.slane %v237_v5, 2  ;;  %v238_v9 = vld [vmem:[%s8510_s15 + $0x18] sm:$0xff]  ;;  %v239_v10 = vld [vmem:[%s8510_s15 + $0x20] sm:$0xf]  ;;  %6451 = vmatprep.mubr.msk.f32.mxu1 %vm258_vm1, %v235_v2 }
  0xab   :  { %v254_v11 = vrot.slane %v238_v9, 2  ;;  %v256_v12 = vrot.slane %v239_v10, 2  ;;  %6452 = vmatmul.mubr.msk.f32.vlgmr.msra.gmra.mxu1 %vm258_vm1, %v236_v3  ;;  %v454_v15 = vrot.slane %v235_v2, 4  ;;  %v455_v16 = vrot.slane %v236_v3, 4  ;;  %923 = vst.msk [vmem:[#allocation3 + $0x10] sm:$0xff] %vm920_vm5, %v7281_v26  ;;  %921 = vst.msk [vmem:[#allocation3] sm:$0xff] %vm920_vm5, %v7281_v26 }
  0xac   :  { %v251_v13 = vsel %vm248_vm2, %v249_v4, %v250_v7  ;;  %v253_v14 = vsel %vm248_vm2, %v250_v7, %v252_v8  ;;  %6454 = vmatprep.mubr.msk.f32.mxu1 %vm258_vm1, %v237_v5  ;;  %v457_v18 = vrot.slane %v237_v5, 4  ;;  %v459_v21 = vrot.slane %v238_v9, 4  ;;  %6466 = vmatpush3.msra.mxu1 %v596_v27  ;;  %v6138_v39 = vld [vmem:[%s8511_s26] ss:$0 sm:$0xff]  ;;  %924 = vst.msk [vmem:[#allocation3 + $0x18] sm:$0xff] %vm920_vm5, %v7281_v26 }
  0xad   :  { %6443 = vmatprep.mubr.msk.f32.mxu0 %vm258_vm1, %v251_v13  ;;  %v255_v17 = vsel %vm248_vm2, %v252_v8, %v254_v11  ;;  %v257_v19 = vsel %vm248_vm2, %v254_v11, %v256_v12  ;;  %v456_v20 = vsel %vm267_vm0, %v454_v15, %v455_v16  ;;  %v461_v23 = vrot.slane %v239_v10, 4  ;;  %6481 = vmatprep.subr.mxu1 %v798_v29 }
  0xae   :  { %6444 = vmatmul.mubr.msk.f32.vlgmr.msra.gmra.mxu0 %vm258_vm1, %v253_v14  ;;  %v458_v22 = vsel %vm267_vm0, %v455_v16, %v457_v18  ;;  %v460_v24 = vsel %vm267_vm0, %v457_v18, %v459_v21  ;;  %926 = vst.msk [vmem:[#allocation3 + $0x20] sm:$0xf] %vm925_vm6, %v7281_v26  ;;  %v937_v18 = vld [vmem:[#allocation16 + $0x8] sm:$0xff] }
  0xaf   :  { %6458 = vmatpush3.msk.msra.mxu0 %vm267_vm0, %v453_v6  ;;  %6446 = vmatprep.mubr.msk.f32.mxu0 %vm258_vm1, %v255_v17  ;;  %v462_v25 = vsel %vm267_vm0, %v459_v21, %v461_v23  ;;  %v939_v21 = vld [vmem:[#allocation16 + $0x10] sm:$0xff] }
  0xb0   :  { %6455 = vmatmul.mubr.msk.f32.gmra.mxu1 %vm258_vm1, %v238_v9  ;;  %6473 = vmatprep.subr.mxu0 %v594_v28 }
  0xb2   :  { %6447 = vmatmul.mubr.msk.f32.gmra.mxu0 %vm258_vm1, %v257_v19  ;;  %v940_v19 = vld [vmem:[#allocation16 + $0x18] sm:$0xff] }
  0xb3   :  { %6459 = vmatprep.mubr.msk.f32.mxu0 %vm258_vm1, %v456_v20  ;;  %v936_v20 = vld [vmem:[#allocation16] sm:$0xff] }
  0xb6   :  { %6460 = vmatmul.mubr.msk.f32.vlgmr.msra.gmra.mxu0 %vm258_vm1, %v458_v22  ;;  %v1143_v22 = vld [vmem:[#allocation16 + $0x28] sm:$0xff] }
  0xb7   :  { %6462 = vmatprep.mubr.msk.f32.mxu0 %vm258_vm1, %v460_v24  ;;  %6474 = vmatpush3.msra.mxu0 %v594_v28 }
  0xb8   :  { %6489 = vmatprep.subr.mxu0 %v940_v19 }
  0xba   :  { %6463 = vmatmul.mubr.msk.f32.gmra.mxu0 %vm258_vm1, %v462_v25 }
 0x16b   :  { %v6453_v30 = vpop.f32.mrf.mxu1 }
 0x16d   :  { %v433_v33 = vpop.f32.mrf.mxu1 }
 0x16e   :  { %v6445_v31 = vpop.f32.mrf.mxu0 }
 0x16f   :  { %v439_v37 = vadd.f32 %v6453_v30, %v6445_v31 }
 0x170   :  { %v337_v32 = vpop.f32.mrf.mxu0  ;;  %v6456_v35 = vpop.f32.mrf.mxu1 }
 0x171   :  { %v434_v40 = vadd.f32 %v433_v33, %v337_v32  ;;  %v6151_v33 = vld [vmem:[#allocation15] ss:$0 sm:$0xff] }
 0x172   :  { %v6448_v34 = vpop.f32.mrf.mxu0  ;;  %v443_v42 = vpop.f32.mrf.mxu1 }
 0x173   :  { %v449_v44 = vadd.f32 %v6456_v35, %v6448_v34 }
 0x174   :  { %v347_v36 = vpop.f32.mrf.mxu0 }
 0x175   :  { %v444_v48 = vadd.f32 %v443_v42, %v347_v36 }
 0x176   :  { %v6461_v38 = vpop.f32.mrf.mxu0 }
 0x177   :  { %v560_v41 = vadd.f32 %v6461_v38, %v439_v37 }
 0x178   :  { %v540_v43 = vpop.f32.mrf.mxu0 }
 0x179   :  { %v571_v45 = vadd.f32 %v6138_v39, %v560_v41  ;;  %v559_v46 = vadd.f32 %v540_v43, %v434_v40 }
 0x17a   :  { %v6464_v47 = vpop.f32.mrf.mxu0 }
 0x17b   :  { %v575_v49 = vmax.f32 %v571_v45, 0.0  ;;  %v570_v50 = vadd.f32 %v6138_v39, %v559_v46  ;;  %v562_v51 = vadd.f32 %v6464_v47, %v449_v44 }
 0x17c   :  { %v550_v52 = vpop.f32.mrf.mxu0 }
 0x17d   :  { %586 = vst.msk [vmem:[#allocation2 + $0xa] sm:$0xff] %vm578_vm3, %v575_v49  ;;  %v574_v53 = vmax.f32 %v570_v50, 0.0  ;;  %v573_v54 = vadd.f32 %v6138_v39, %v562_v51  ;;  %v561_v55 = vadd.f32 %v550_v52, %v444_v48 }
 0x17f   :  { %585 = vst.msk [vmem:[#allocation2 + $0x2] sm:$0xff] %vm578_vm3, %v574_v53  ;;  %v577_v56 = vmax.f32 %v573_v54, 0.0  ;;  %v572_v57 = vadd.f32 %v6138_v39, %v561_v55 }
 0x181   :  { %588 = vst.msk [vmem:[#allocation2 + $0x1a] sm:$0xff] %vm578_vm3, %v577_v56  ;;  %v576_v58 = vmax.f32 %v572_v57, 0.0 }
 0x183   :  { %587 = vst.msk [vmem:[#allocation2 + $0x12] sm:$0xff] %vm578_vm3, %v576_v58 }
 0x186   :  { %v589_v59 = vld [vmem:[#allocation2] sm:$0xff]  ;;  %v590_v60 = vld [vmem:[#allocation2 + $0x8] sm:$0xff] }
 0x187   :  { %v602_v61 = vrot.slane %v589_v59, 2  ;;  %6475 = vmatprep.mubr.msk.f32.mxu0 %vm578_vm3, %v589_v59  ;;  %v603_v62 = vrot.slane %v590_v60, 2  ;;  %v799_v7 = vrot.slane %v589_v59, 4  ;;  %v800_v8 = vrot.slane %v590_v60, 4 }
 0x188   :  { %6476 = vmatmul.mubr.msk.f32.vlgmr.msra.gmra.mxu0 %vm578_vm3, %v590_v60  ;;  %v593_v4 = vld [vmem:[#allocation2 + $0x20] sm:$0xf] }
 0x189   :  { %v604_v63 = vsel %vm248_vm2, %v602_v61, %v603_v62  ;;  %v609_v9 = vrot.slane %v593_v4, 2  ;;  %v801_v13 = vsel %vm267_vm0, %v799_v7, %v800_v8  ;;  %v806_v16 = vrot.slane %v593_v4, 4  ;;  %6490 = vmatpush3.msra.mxu0 %v940_v19 }
 0x18a   :  { %6467 = vmatprep.mubr.msk.f32.mxu1 %vm578_vm3, %v604_v63  ;;  %v591_v0 = vld [vmem:[#allocation2 + $0x10] sm:$0xff]  ;;  %v592_v1 = vld [vmem:[#allocation2 + $0x18] sm:$0xff]  ;;  %6491 = vmatprep.subr.mxu0 %v939_v21 }
 0x18b   :  { %v605_v2 = vrot.slane %v591_v0, 2  ;;  %6478 = vmatprep.mubr.msk.f32.mxu0 %vm578_vm3, %v591_v0  ;;  %v607_v3 = vrot.slane %v592_v1, 2  ;;  %v802_v10 = vrot.slane %v591_v0, 4  ;;  %v804_v12 = vrot.slane %v592_v1, 4  ;;  %6492 = vmatpush3.msra.mxu0 %v939_v21 }
 0x18c   :  { %6479 = vmatmul.mubr.msk.f32.gmra.mxu0 %vm578_vm3, %v592_v1  ;;  %6509 = vmatprep.subr.mxu0 %v1143_v22  ;;  %v1142_v1 = vld [vmem:[#allocation16 + $0x20] sm:$0xff] }
 0x18d   :  { %v606_v5 = vsel %vm248_vm2, %v603_v62, %v605_v2  ;;  %v608_v6 = vsel %vm248_vm2, %v605_v2, %v607_v3  ;;  %v610_v11 = vsel %vm248_vm2, %v607_v3, %v609_v9  ;;  %v803_v14 = vsel %vm267_vm0, %v800_v8, %v802_v10 }
 0x18e   :  { %6468 = vmatmul.mubr.msk.f32.vlgmr.msra.gmra.mxu1 %vm578_vm3, %v606_v5  ;;  %v805_v15 = vsel %vm267_vm0, %v802_v10, %v804_v12  ;;  %v807_v17 = vsel %vm267_vm0, %v804_v12, %v806_v16  ;;  %v1388_v16 = vld [vmem:[#allocation21 + $0x28] sm:$0xff] }
 0x18f   :  { %6470 = vmatprep.mubr.msk.f32.mxu1 %vm578_vm3, %v608_v6  ;;  %6482 = vmatpush3.msra.mxu1 %v798_v29 }
 0x190   :  { %6499 = vmatprep.subr.mxu1 %v937_v18 }
 0x192   :  { %6471 = vmatmul.mubr.msk.f32.gmra.mxu1 %vm578_vm3, %v610_v11 }
 0x193   :  { %6483 = vmatprep.mubr.msk.f32.mxu1 %vm578_vm3, %v801_v13  ;;  %v1273_v13 = vld [vmem:[#allocation8] sm:$0xff] }
 0x196   :  { %6484 = vmatmul.mubr.msk.f32.vlgmr.msra.gmra.mxu1 %vm578_vm3, %v803_v14  ;;  %v1390_v14 = vld [vmem:[#allocation21 + $0x38] sm:$0xff] }
 0x197   :  { %6486 = vmatprep.mubr.msk.f32.mxu1 %vm578_vm3, %v805_v15  ;;  %6500 = vmatpush3.msra.mxu1 %v937_v18  ;;  %v1389_v15 = vld [vmem:[#allocation21 + $0x30] sm:$0xff]  ;;  %v1386_v18 = vld [vmem:[#allocation21 + $0x18] sm:$0xff] }
 0x198   :  { %6501 = vmatprep.subr.mxu1 %v936_v20 }
 0x199   :  { %6502 = vmatpush3.msra.mxu1 %v936_v20 }
 0x19a   :  { %6487 = vmatmul.mubr.msk.f32.gmra.mxu1 %vm578_vm3, %v807_v17  ;;  %v1387_v17 = vld [vmem:[#allocation21 + $0x20] sm:$0xff] }
 0x248   :  { %v6477_v23 = vpop.f32.mrf.mxu0 }
 0x24a   :  { %v778_v27 = vpop.f32.mrf.mxu0 }
 0x24c   :  { %v6480_v31 = vpop.f32.mrf.mxu0 }
 0x24e   :  { %v6469_v24 = vpop.f32.mrf.mxu1  ;;  %v788_v40 = vpop.f32.mrf.mxu0 }
 0x24f   :  { %v784_v30 = vadd.f32 %v6477_v23, %v6469_v24 }
 0x250   :  { %v685_v25 = vpop.f32.mrf.mxu1 }
 0x251   :  { %v779_v34 = vadd.f32 %v778_v27, %v685_v25 }
 0x252   :  { %v6472_v28 = vpop.f32.mrf.mxu1 }
 0x253   :  { %v794_v37 = vadd.f32 %v6480_v31, %v6472_v28 }
 0x254   :  { %v695_v29 = vpop.f32.mrf.mxu1 }
 0x255   :  { %v789_v42 = vadd.f32 %v788_v40, %v695_v29 }
 0x256   :  { %v6485_v32 = vpop.f32.mrf.mxu1 }
 0x257   :  { %v902_v35 = vadd.f32 %v6485_v32, %v784_v30 }
 0x258   :  { %v882_v36 = vpop.f32.mrf.mxu1 }
 0x259   :  { %v913_v38 = vadd.f32 %v6151_v33, %v902_v35  ;;  %v901_v39 = vadd.f32 %v882_v36, %v779_v34  ;;  %v6164_v34 = vld [vmem:[#allocation18] ss:$0 sm:$0xff] }
 0x25a   :  { %v6488_v41 = vpop.f32.mrf.mxu1 }
 0x25b   :  { %v917_v43 = vmax.f32 %v913_v38, 0.0  ;;  %v912_v44 = vadd.f32 %v6151_v33, %v901_v39  ;;  %v904_v45 = vadd.f32 %v6488_v41, %v794_v37 }
 0x25c   :  { %v892_v46 = vpop.f32.mrf.mxu1 }
 0x25d   :  { %928 = vst.msk [vmem:[#allocation3 + $0xa] sm:$0xff] %vm920_vm5, %v917_v43  ;;  %v916_v47 = vmax.f32 %v912_v44, 0.0  ;;  %v915_v48 = vadd.f32 %v6151_v33, %v904_v45  ;;  %v903_v49 = vadd.f32 %v892_v46, %v789_v42  ;;  %v1268_v43 = vld [vmem:[#allocation10 + $0x18] sm:$0xff] }
 0x25f   :  { %927 = vst.msk [vmem:[#allocation3 + $0x2] sm:$0xff] %vm920_vm5, %v916_v47  ;;  %v919_v50 = vmax.f32 %v915_v48, 0.0  ;;  %v914_v51 = vadd.f32 %v6151_v33, %v903_v49  ;;  %v1267_v47 = vld [vmem:[#allocation10 + $0x10] sm:$0xff] }
 0x261   :  { %930 = vst.msk [vmem:[#allocation3 + $0x1a] sm:$0xff] %vm920_vm5, %v919_v50  ;;  %v918_v52 = vmax.f32 %v914_v51, 0.0  ;;  %v1266_v51 = vld [vmem:[#allocation10 + $0x8] sm:$0xff] }
 0x263   :  { %929 = vst.msk [vmem:[#allocation3 + $0x12] sm:$0xff] %vm920_vm5, %v918_v52 }
 0x266   :  { %v931_v53 = vld [vmem:[#allocation3] sm:$0xff]  ;;  %v932_v54 = vld [vmem:[#allocation3 + $0x8] sm:$0xff] }
 0x267   :  { %v946_v55 = vrot.slane %v931_v53, 2  ;;  %6503 = vmatprep.mubr.msk.f32.mxu1 %vm920_vm5, %v931_v53  ;;  %v947_v56 = vrot.slane %v932_v54, 2  ;;  %v1144_v2 = vrot.slane %v931_v53, 4  ;;  %v1145_v3 = vrot.slane %v932_v54, 4 }
 0x268   :  { %6504 = vmatmul.mubr.msk.f32.vlgmr.msra.gmra.mxu1 %vm920_vm5, %v932_v54  ;;  %v935_v62 = vld [vmem:[#allocation3 + $0x20] sm:$0xf]  ;;  %v1265_v54 = vld [vmem:[#allocation10] sm:$0xff] }
 0x269   :  { %v948_v57 = vsel %vm248_vm2, %v946_v55, %v947_v56  ;;  %v953_v4 = vrot.slane %v935_v62, 2  ;;  %v1146_v8 = vsel %vm267_vm0, %v1144_v2, %v1145_v3  ;;  %v1151_v11 = vrot.slane %v935_v62, 4  ;;  %v1379_v62 = vld [vmem:[#allocation19 + $0x20] sm:$0xff]  ;;  %v1376_v2 = vld [vmem:[#allocation19 + $0x8] sm:$0xff] }
 0x26a   :  { %6493 = vmatprep.mubr.msk.f32.mxu0 %vm920_vm5, %v948_v57  ;;  %v933_v58 = vld [vmem:[#allocation3 + $0x10] sm:$0xff]  ;;  %v934_v59 = vld [vmem:[#allocation3 + $0x18] sm:$0xff] }
 0x26b   :  { %v949_v60 = vrot.slane %v933_v58, 2  ;;  %6506 = vmatprep.mubr.msk.f32.mxu1 %vm920_vm5, %v933_v58  ;;  %v951_v61 = vrot.slane %v934_v59, 2  ;;  %v1147_v5 = vrot.slane %v933_v58, 4  ;;  %v1149_v7 = vrot.slane %v934_v59, 4  ;;  %v1274_v57 = vld [vmem:[#allocation8 + $0x8] sm:$0xff]  ;;  %v1382_v58 = vld [vmem:[#allocation19 + $0x38] sm:$0xff] }
 0x26c   :  { %6507 = vmatmul.mubr.msk.f32.gmra.mxu1 %vm920_vm5, %v934_v59  ;;  %v1381_v59 = vld [vmem:[#allocation19 + $0x30] sm:$0xff] }
 0x26d   :  { %v950_v63 = vsel %vm248_vm2, %v947_v56, %v949_v60  ;;  %v952_v0 = vsel %vm248_vm2, %v949_v60, %v951_v61  ;;  %v954_v6 = vsel %vm248_vm2, %v951_v61, %v953_v4  ;;  %v1148_v9 = vsel %vm267_vm0, %v1145_v3, %v1147_v5  ;;  %6527 = vmatprep.mubr.msk.f32.mxu1 %vm1277_vm7, %v1273_v13  ;;  %v1275_v60 = vld [vmem:[#allocation8 + $0x10] sm:$0xff]  ;;  %v1380_v61 = vld [vmem:[#allocation19 + $0x28] sm:$0xff]  ;;  %v1375_v3 = vld [vmem:[#allocation19] sm:$0xff] }
 0x26e   :  { %6494 = vmatmul.mubr.msk.f32.vlgmr.msra.gmra.mxu0 %vm920_vm5, %v950_v63  ;;  %v1150_v10 = vsel %vm267_vm0, %v1147_v5, %v1149_v7  ;;  %v1152_v12 = vsel %vm267_vm0, %v1149_v7, %v1151_v11  ;;  %v1276_v63 = vld [vmem:[#allocation8 + $0x18] sm:$0xff]  ;;  %v1385_v4 = vld [vmem:[#allocation21 + $0x10] sm:$0xff]  ;;  %v1384_v5 = vld [vmem:[#allocation21 + $0x8] sm:$0xff] }
 0x26f   :  { %6496 = vmatprep.mubr.msk.f32.mxu0 %vm920_vm5, %v952_v0  ;;  %6510 = vmatpush3.msra.mxu0 %v1143_v22  ;;  %v1378_v0 = vld [vmem:[#allocation19 + $0x18] sm:$0xff]  ;;  %v7585_v7 = vld [vmem:[%s8491_s11 + $0x78] sm:$0xff]  ;;  %v7621_v13 = vld [vmem:[%s8491_s11 + $0x48] sm:$0xff] }
 0x270   :  { %6511 = vmatprep.subr.mxu0 %v1142_v1  ;;  %v7609_v11 = vld [vmem:[%s8491_s11 + $0x58] sm:$0xff] }
 0x271   :  { %6512 = vmatpush3.msra.mxu0 %v1142_v1  ;;  %v1377_v1 = vld [vmem:[#allocation19 + $0x10] sm:$0xff] }
 0x272   :  { %6497 = vmatmul.mubr.msk.f32.gmra.mxu0 %vm920_vm5, %v954_v6  ;;  %1427 = vmatprep.subr.mxu0 %v1390_v14  ;;  %v1383_v6 = vld [vmem:[#allocation21] sm:$0xff]  ;;  %v7627_v14 = vld [vmem:[%s8491_s11 + $0x40] sm:$0xff] }
 0x273   :  { %6513 = vmatprep.mubr.msk.f32.mxu0 %vm920_vm5, %v1146_v8  ;;  %v7591_v8 = vld [vmem:[%s8491_s11 + $0x70] sm:$0xff] }
 0x276   :  { %6514 = vmatmul.mubr.msk.f32.vlgmr.msra.gmra.mxu0 %vm920_vm5, %v1148_v9  ;;  %v7597_v9 = vld [vmem:[%s8491_s11 + $0x68] sm:$0xff] }
 0x277   :  { %6516 = vmatprep.mubr.msk.f32.mxu0 %vm920_vm5, %v1150_v10  ;;  %1428 = vmatpush1.msra.mxu0 %v1389_v15  ;;  %v7603_v10 = vld [vmem:[%s8491_s11 + $0x60] sm:$0xff]  ;;  %v7633_v15 = vld [vmem:[%s8491_s11 + $0x38] sm:$0xff] }
 0x278   :  { %1429 = vmatprep.subr.mxu0 %v1388_v16  ;;  %v7639_v16 = vld [vmem:[%s8491_s11 + $0x30] sm:$0xff] }
 0x279   :  { %1430 = vmatpush1.msra.mxu0 %v1387_v17  ;;  %v7645_v17 = vld [vmem:[%s8491_s11 + $0x28] sm:$0xff] }
 0x27a   :  { %6517 = vmatmul.mubr.msk.f32.gmra.mxu0 %vm920_vm5, %v1152_v12  ;;  %1431 = vmatprep.subr.mxu0 %v1386_v18  ;;  %v7615_v12 = vld [vmem:[%s8491_s11 + $0x50] sm:$0xff]  ;;  %v7651_v18 = vld [vmem:[%s8491_s11 + $0x20] sm:$0xff] }
 0x27b   :  { %1467 = vmatprep.mubr.f32.mxu0 %v7281_v26  ;;  %1432 = vmatpush1.msra.mxu0 %v1385_v4 }
 0x27c   :  { %1433 = vmatprep.subr.mxu0 %v1384_v5 }
 0x27d   :  { %1434 = vmatpush1.msra.mxu0 %v1383_v6 }
 0x27e   :  { %1762 = vmatprep.subr.mxu0 %v7585_v7 }
 0x328   :  { %v6505_v19 = vpop.f32.mrf.mxu1 }
 0x32a   :  { %v1122_v22 = vpop.f32.mrf.mxu1 }
 0x32c   :  { %v6508_v25 = vpop.f32.mrf.mxu1 }
 0x32e   :  { %v6495_v20 = vpop.f32.mrf.mxu0  ;;  %v1132_v33 = vpop.f32.mrf.mxu1 }
 0x32f   :  { %v1128_v28 = vadd.f32 %v6505_v19, %v6495_v20  ;;  %v7657_v19 = vld [vmem:[%s8491_s11 + $0x18] sm:$0xff]  ;;  %v7663_v20 = vld [vmem:[%s8491_s11 + $0x10] sm:$0xff] }
 0x330   :  { %v1029_v21 = vpop.f32.mrf.mxu0 }
 0x331   :  { %v1123_v30 = vadd.f32 %v1122_v22, %v1029_v21  ;;  %v7669_v21 = vld [vmem:[%s8491_s11 + $0x8] sm:$0xff]  ;;  %v7675_v22 = vld [vmem:[%s8491_s11] sm:$0xff] }
 0x332   :  { %v6498_v23 = vpop.f32.mrf.mxu0 }
 0x333   :  { %v1138_v31 = vadd.f32 %v6508_v25, %v6498_v23 }
 0x334   :  { %v1039_v24 = vpop.f32.mrf.mxu0 }
 0x335   :  { %v1133_v36 = vadd.f32 %v1132_v33, %v1039_v24 }
 0x336   :  { %v6515_v27 = vpop.f32.mrf.mxu0 }
 0x337   :  { %v1247_v32 = vadd.f32 %v6515_v27, %v1128_v28 }
 0x338   :  { %v1227_v29 = vpop.f32.mrf.mxu0 }
 0x339   :  { %v1246_v37 = vadd.f32 %v1227_v29, %v1123_v30  ;;  %v1258_v40 = vadd.f32 %v6164_v34, %v1247_v32  ;;  %v1595_v29 = vlaneseq }
 0x33a   :  { %v6518_v35 = vpop.f32.mrf.mxu0 }
 0x33b   :  { %v1249_v38 = vadd.f32 %v6518_v35, %v1138_v31  ;;  %v1257_v44 = vadd.f32 %v6164_v34, %v1246_v37  ;;  %v1262_v48 = vmax.f32 %v1258_v40, 0.0  ;;  %v1596_v31 = vshrl.u32 %v1595_v29, 7 }
 0x33c   :  { %v1237_v39 = vpop.f32.mrf.mxu0 }
 0x33d   :  { %v1260_v41 = vadd.f32 %v6164_v34, %v1249_v38  ;;  %v1248_v42 = vadd.f32 %v1237_v39, %v1133_v36  ;;  %v1261_v52 = vmax.f32 %v1257_v44, 0.0  ;;  %v1270_v55 = vadd.f32 %v1266_v51, %v1262_v48  ;;  %v1593_v38 = vld [vmem:[#allocation22] sm:$0x3] }
 0x33e   :  { %v1597_v33 = vsub.s32 0, %v1596_v31  ;;  %v1601_v36 = vsub.s32 1, %v1596_v31 }
 0x33f   :  { %v1264_v45 = vmax.f32 %v1260_v41, 0.0  ;;  %v1259_v46 = vadd.f32 %v6164_v34, %v1248_v42  ;;  %v1269_v56 = vadd.f32 %v1265_v54, %v1261_v52  ;;  %v7282_v34 = vmov 1983009808  }
 0x340   :  { %v1624_v35 = vunpack.c.l.s4 %v7282_v34  ;;  %v1598_v41 = vrot.slane %v1593_v38, %v1597_v33 }
 0x341   :  { %v1263_v49 = vmax.f32 %v1259_v46, 0.0  ;;  %v1272_v50 = vadd.f32 %v1268_v43, %v1264_v45  ;;  %v1602_v43 = vrot.slane %v1593_v38, %v1601_v36 }
 0x342   :  { %v1625_v42 = vunpack.c.0.s8 %v1624_v35 }
 0x343   :  { %6519 = vmatprep.subr.mxu1 %v1272_v50  ;;  %v1271_v53 = vadd.f32 %v1267_v47, %v1263_v49 }
 0x344   :  { %6520 = vmatpush3.msra.mxu1 %v1272_v50  ;;  %v7722_v49 = vsub.s32 %v1625_v42, %v1596_v31 }
 0x345   :  { %6521 = vmatprep.subr.mxu1 %v1271_v53 }
 0x346   :  { %6522 = vmatpush3.msra.mxu1 %v1271_v53 }
 0x347   :  { %6523 = vmatprep.subr.mxu1 %v1270_v55 }
 0x348   :  { %6524 = vmatpush3.msra.mxu1 %v1270_v55 }
 0x349   :  { %6525 = vmatprep.subr.mxu1 %v1269_v56 }
 0x34a   :  { %6526 = vmatpush3.msra.mxu1 %v1269_v56 }
 0x34b   :  { %6528 = vmatmul.mubr.msk.f32.vlgmr.msra.gmra.mxu1 %vm1277_vm7, %v1274_v57  ;;  %1528 = vmatprep.subr.mxu1 %v1382_v58 }
 0x34c   :  { %1529 = vmatpush1.msra.mxu1 %v1381_v59  ;;  %6530 = vmatprep.mubr.msk.f32.mxu1 %vm1277_vm7, %v1275_v60 }
 0x34d   :  { %1530 = vmatprep.subr.mxu1 %v1380_v61 }
 0x34e   :  { %1531 = vmatpush1.msra.mxu1 %v1379_v62 }
 0x34f   :  { %6531 = vmatmul.mubr.msk.f32.gmra.mxu1 %vm1277_vm7, %v1276_v63  ;;  %1532 = vmatprep.subr.mxu1 %v1378_v0 }
 0x350   :  { %1533 = vmatpush1.msra.mxu1 %v1377_v1  ;;  %1568 = vmatprep.mubr.f32.mxu1 %v7281_v26 }
 0x351   :  { %1534 = vmatprep.subr.mxu1 %v1376_v2 }
 0x352   :  { %1535 = vmatpush1.msra.mxu1 %v1375_v3 }
 0x353   :  { %6173 = vmatmul.mubr.msk.f32.vlgmr.msra.gmra.mxu1 %vm1277_vm7, %v1269_v56  ;;  %1877 = vmatprep.subr.mxu1 %v7585_v7 }
 0x354   :  { %1574 = vmatprep.mubr.f32.mxu1 %v7281_v26  ;;  %1878 = vmatpush1.msra.mxu1 %v7591_v8 }
 0x355   :  { %1879 = vmatprep.subr.mxu1 %v7597_v9 }
 0x356   :  { %1880 = vmatpush1.msra.mxu1 %v7603_v10 }
 0x357   :  { %6174 = vmatmul.mubr.msk.f32.gmra.mxu1 %vm1277_vm7, %v1270_v55  ;;  %1881 = vmatprep.subr.mxu1 %v7609_v11 }
 0x358   :  { %1580 = vmatprep.mubr.f32.mxu1 %v7281_v26  ;;  %1882 = vmatpush1.msra.mxu1 %v7615_v12 }
 0x359   :  { %1883 = vmatprep.subr.mxu1 %v7621_v13 }
 0x35a   :  { %1884 = vmatpush1.msra.mxu1 %v7627_v14 }
 0x35b   :  { %6175 = vmatmul.mubr.msk.f32.gmra.mxu1 %vm1277_vm7, %v1271_v53  ;;  %1885 = vmatprep.subr.mxu1 %v7633_v15 }
 0x35c   :  { %1586 = vmatprep.mubr.f32.mxu1 %v7281_v26  ;;  %1886 = vmatpush1.msra.mxu1 %v7639_v16 }
 0x35d   :  { %1887 = vmatprep.subr.mxu1 %v7645_v17 }
 0x35e   :  { %1888 = vmatpush1.msra.mxu1 %v7651_v18 }
 0x35f   :  { %6176 = vmatmul.mubr.msk.f32.gmra.mxu1 %vm1277_vm7, %v1272_v50  ;;  %1889 = vmatprep.subr.mxu1 %v7657_v19 }
 0x360   :  { %1925 = vmatprep.mubr.f32.mxu1 %v7281_v26  ;;  %1890 = vmatpush1.msra.mxu1 %v7663_v20 }
 0x361   :  { %1891 = vmatprep.subr.mxu1 %v7669_v21 }
 0x362   :  { %1892 = vmatpush1.msra.mxu1 %v7675_v22 }
 0x363   :  { %2107 = vmatprep.subr.mxu1 %v7585_v7 }
 0x40b   :  { %v6529_v23 = vpop.f32.mrf.mxu1 }
 0x40d   :  { %v1356_v24 = vpop.f32.mrf.mxu1 }
 0x40e   :  { %6169 = vmatmul.mubr.msk.f32.vlgmr.msra.gmra.mxu0 %vm1277_vm7, %v1356_v24 }
 0x40f   :  { %1763 = vmatpush1.msra.mxu0 %v7591_v8  ;;  %1473 = vmatprep.mubr.f32.mxu0 %v7281_v26  ;;  %v6532_v25 = vpop.f32.mrf.mxu1 }
 0x410   :  { %1764 = vmatprep.subr.mxu0 %v7597_v9 }
 0x411   :  { %1765 = vmatpush1.msra.mxu0 %v7603_v10  ;;  %v1366_v27 = vpop.f32.mrf.mxu1 }
 0x412   :  { %6170 = vmatmul.mubr.msk.f32.gmra.mxu0 %vm1277_vm7, %v6529_v23  ;;  %1766 = vmatprep.subr.mxu0 %v7609_v11 }
 0x413   :  { %1767 = vmatpush1.msra.mxu0 %v7615_v12  ;;  %1479 = vmatprep.mubr.f32.mxu0 %v7281_v26  ;;  %v1570_v28 = vpop.f32.mrf.mxu1 }
 0x414   :  { %1768 = vmatprep.subr.mxu0 %v7621_v13 }
 0x415   :  { %1769 = vmatpush1.msra.mxu0 %v7627_v14  ;;  %v1572_v30 = vpop.f32.mrf.mxu1 }
 0x416   :  { %6171 = vmatmul.mubr.msk.f32.gmra.mxu0 %vm1277_vm7, %v1366_v27  ;;  %1770 = vmatprep.subr.mxu0 %v7633_v15 }
 0x417   :  { %1771 = vmatpush1.msra.mxu0 %v7639_v16  ;;  %1485 = vmatprep.mubr.f32.mxu0 %v7281_v26  ;;  %v1576_v32 = vpop.f32.mrf.mxu1 }
 0x418   :  { %1772 = vmatprep.subr.mxu0 %v7645_v17 }
 0x419   :  { %1773 = vmatpush1.msra.mxu0 %v7651_v18  ;;  %v1578_v37 = vpop.f32.mrf.mxu1 }
 0x41a   :  { %6172 = vmatmul.mubr.msk.f32.gmra.mxu0 %vm1277_vm7, %v6532_v25  ;;  %1774 = vmatprep.subr.mxu0 %v7657_v19 }
 0x41b   :  { %1775 = vmatpush1.msra.mxu0 %v7663_v20  ;;  %1810 = vmatprep.mubr.f32.mxu0 %v7281_v26  ;;  %v1582_v44 = vpop.f32.mrf.mxu1 }
 0x41c   :  { %1776 = vmatprep.subr.mxu0 %v7669_v21 }
 0x41d   :  { %1777 = vmatpush1.msra.mxu0 %v7675_v22  ;;  %v1584_v52 = vpop.f32.mrf.mxu1 }
 0x41e   :  { %1811 = vmatmul.mubr.f32.vlgmr.msra.gmra.mxu0 %v7281_v26  ;;  %1992 = vmatprep.subr.mxu0 %v7585_v7 }
 0x41f   :  { %1993 = vmatpush1.msra.mxu0 %v7591_v8  ;;  %2040 = vmatprep.mubr.f32.mxu0 %v7281_v26  ;;  %v1588_v62 = vpop.f32.mrf.mxu1 }
 0x420   :  { %1994 = vmatprep.subr.mxu0 %v7597_v9 }
 0x421   :  { %1995 = vmatpush1.msra.mxu0 %v7603_v10  ;;  %v1590_v27 = vpop.f32.mrf.mxu1 }
 0x422   :  { %1996 = vmatprep.subr.mxu0 %v7609_v11 }
 0x423   :  { %1997 = vmatpush1.msra.mxu0 %v7615_v12 }
 0x424   :  { %1998 = vmatprep.subr.mxu0 %v7621_v13 }
 0x425   :  { %1999 = vmatpush1.msra.mxu0 %v7627_v14 }
 0x426   :  { %2000 = vmatprep.subr.mxu0 %v7633_v15 }
 0x427   :  { %2001 = vmatpush1.msra.mxu0 %v7639_v16 }
 0x428   :  { %2002 = vmatprep.subr.mxu0 %v7645_v17 }
 0x429   :  { %2003 = vmatpush1.msra.mxu0 %v7651_v18 }
 0x42a   :  { %2004 = vmatprep.subr.mxu0 %v7657_v19 }
 0x42b   :  { %2005 = vmatpush1.msra.mxu0 %v7663_v20 }
 0x42c   :  { %2006 = vmatprep.subr.mxu0 %v7669_v21 }
 0x42d   :  { %2007 = vmatpush1.msra.mxu0 %v7675_v22 }
 0x42e   :  { %2222 = vmatprep.subr.mxu0 %v7585_v7 }
 0x4ce   :  { %v1469_v39 = vpop.f32.mrf.mxu0 }
 0x4cf   :  { %v1571_v40 = vadd.f32 %v1570_v28, %v1469_v39 }
 0x4d0   :  { %v1471_v45 = vpop.f32.mrf.mxu0 }
 0x4d1   :  { %v1573_v46 = vadd.f32 %v1572_v30, %v1471_v45  ;;  %v1605_v48 = vadd.f32 %v1598_v41, %v1571_v40 }
 0x4d2   :  { %v1475_v47 = vpop.f32.mrf.mxu0 }
 0x4d3   :  { %v1606_v50 = vadd.f32 %v1602_v43, %v1573_v46  ;;  %v1577_v51 = vadd.f32 %v1576_v32, %v1475_v47 }
 0x4d4   :  { %v1477_v53 = vpop.f32.mrf.mxu0 }
 0x4d5   :  { %v1621_v54 = vcombine.low %v1605_v48, %v1606_v50  ;;  %v1622_v55 = vcombine.high %v1605_v48, %v1606_v50  ;;  %v1579_v56 = vadd.f32 %v1578_v37, %v1477_v53  ;;  %v1607_v60 = vadd.f32 %v1598_v41, %v1577_v51 }
 0x4d6   :  { %v1481_v57 = vpop.f32.mrf.mxu0 }
 0x4d7   :  { %v1629_v58 = vrot.slane %v1621_v54, %v7722_v49  ;;  %v1636_v59 = vrot.slane %v1622_v55, %v7722_v49  ;;  %6177 = vst.sshfl [vmem:[#allocation4] sm:$0x33 pattern:$0x76325410] %v1621_v54  ;;  %v1608_v61 = vadd.f32 %v1602_v43, %v1579_v56  ;;  %v1583_v63 = vadd.f32 %v1582_v44, %v1481_v57 }
 0x4d8   :  { %6178 = vst.sshfl [vmem:[#allocation4 + $0x8] sm:$0x33 pattern:$0x76325410] %v1622_v55  ;;  %v1483_v0 = vpop.f32.mrf.mxu0 }
 0x4d9   :  { %v1637_v1 = vcombine.high %v1629_v58, %v1629_v58  ;;  %v1638_v2 = vcombine.high %v1636_v59, %v1636_v59  ;;  %v1639_v3 = vcombine.low %v1607_v60, %v1608_v61  ;;  %v1640_v4 = vcombine.high %v1607_v60, %v1608_v61 }
 0x4da   :  { %v1585_v5 = vadd.f32 %v1584_v52, %v1483_v0  ;;  %v1487_v6 = vpop.f32.mrf.mxu0  ;;  %v1609_v28 = vadd.f32 %v1598_v41, %v1583_v63 }
 0x4db   :  { %1710 = vst [vmem:[#allocation4 + $0x4] sm:$0xf] %v1637_v1  ;;  %1712 = vst [vmem:[#allocation4 + $0xc] sm:$0xf] %v1638_v2  ;;  %v1647_v23 = vrot.slane %v1639_v3, %v7722_v49  ;;  %v1654_v24 = vrot.slane %v1640_v4, %v7722_v49  ;;  %v1589_v25 = vadd.f32 %v1588_v62, %v1487_v6 }
 0x4dc   :  { %6179 = vst.sshfl [vmem:[#allocation4 + $0x10] sm:$0x33 pattern:$0x76325410] %v1639_v3  ;;  %v1610_v29 = vadd.f32 %v1602_v43, %v1585_v5  ;;  %v1489_v30 = vpop.f32.mrf.mxu0 }
 0x4dd   :  { %6180 = vst.sshfl [vmem:[#allocation4 + $0x18] sm:$0x33 pattern:$0x76325410] %v1640_v4  ;;  %v1655_v31 = vcombine.high %v1647_v23, %v1647_v23  ;;  %v1656_v32 = vcombine.high %v1654_v24, %v1654_v24  ;;  %v1591_v33 = vadd.f32 %v1590_v27, %v1489_v30  ;;  %v1611_v37 = vadd.f32 %v1598_v41, %v1589_v25 }
 0x4de   :  { %v1657_v34 = vcombine.low %v1609_v28, %v1610_v29  ;;  %v1658_v35 = vcombine.high %v1609_v28, %v1610_v29  ;;  %v1812_v36 = vpop.f32.mrf.mxu0 }
 0x4df   :  { %1714 = vst [vmem:[#allocation4 + $0x14] sm:$0xf] %v1655_v31  ;;  %1716 = vst [vmem:[#allocation4 + $0x1c] sm:$0xf] %v1656_v32  ;;  %v1612_v38 = vadd.f32 %v1602_v43, %v1591_v33  ;;  %v1741_v43 = vld [vmem:[#allocation4] sm:$0xf] }
 0x4e0   :  { %v1665_v39 = vrot.slane %v1657_v34, %v7722_v49  ;;  %v1672_v40 = vrot.slane %v1658_v35, %v7722_v49  ;;  %6181 = vst.sshfl [vmem:[#allocation4 + $0x20] sm:$0x33 pattern:$0x76325410] %v1657_v34  ;;  %v1814_v42 = vpop.f32.mrf.mxu0 }
 0x4e1   :  { %6182 = vst.sshfl [vmem:[#allocation4 + $0x28] sm:$0x33 pattern:$0x76325410] %v1658_v35  ;;  %v1675_v44 = vcombine.low %v1611_v37, %v1612_v38  ;;  %v1676_v45 = vcombine.high %v1611_v37, %v1612_v38  ;;  %v1819_v46 = vcombine.low %v1812_v36, %v1814_v42 }
 0x4e2   :  { %v1673_v47 = vcombine.high %v1665_v39, %v1665_v39  ;;  %v1674_v48 = vcombine.high %v1672_v40, %v1672_v40  ;;  %v1857_v27 = vld [vmem:[#allocation4 + $0x4] sm:$0xf] }
 0x4e3   :  { %v1683_v50 = vrot.slane %v1675_v44, %v7722_v49  ;;  %v1690_v51 = vrot.slane %v1676_v45, %v7722_v49  ;;  %6183 = vst.sshfl [vmem:[#allocation4 + $0x30] sm:$0x33 pattern:$0x76325410] %v1675_v44  ;;  %v1826_v41 = vrot.slane %v1819_v46, %v7722_v49 }
 0x4e4   :  { %6184 = vst.sshfl [vmem:[#allocation4 + $0x38] sm:$0x33 pattern:$0x76325410] %v1676_v45  ;;  %1718 = vst [vmem:[#allocation4 + $0x24] sm:$0xf] %v1673_v47 }
 0x4e5   :  { %1720 = vst [vmem:[#allocation4 + $0x2c] sm:$0xf] %v1674_v48  ;;  %v1691_v52 = vcombine.high %v1683_v50, %v1683_v50  ;;  %v1692_v53 = vcombine.high %v1690_v51, %v1690_v51  ;;  %v1828_v54 = vadd.f32 %v1826_v41, %v1741_v43  ;;  %v1972_v51 = vld [vmem:[#allocation4 + $0x8] sm:$0xf] }
 0x4e7   :  { %1722 = vst [vmem:[#allocation4 + $0x34] sm:$0xf] %v1691_v52  ;;  %1724 = vst [vmem:[#allocation4 + $0x3c] sm:$0xf] %v1692_v53  ;;  %6832 = vtanh.f32 %v1828_v54 }
 0x4f4   :  { %v6833_v55 = vpop.eup %6832 }
 0x4f5   :  { %v1830_v56 = vmul.f32 0.5, %v6833_v55  ;;  %v1840_v58 = vrot.slane %v6833_v55, 2 }
 0x4f7   :  { %v1831_v57 = vadd.f32 0.5, %v1830_v56 }
 0x4f9   :  { %v1842_v59 = vmul.f32 %v1840_v58, %v1831_v57  ;;  %v1839_v60 = vmul.f32 0.0, %v1831_v57 }
 0x4fb   :  { %1844 = vrot.lane.b32.xlu0 %v1842_v59, %s7274_s7 }
 0x4ff   :  { %1833 = vrot.lane.b32.xlu0 %v6833_v55, %s7274_s7 }
 0x56d   :  { %v1845_v61 = vpop.permute.xlu0 %1844 }
 0x56e   :  { %v1847_v62 = vadd.f32 %v1845_v61, %v1839_v60 }
 0x570   :  { %6834 = vtanh.f32 %v1847_v62 }
 0x571   :  { %v1834_v0 = vpop.permute.xlu0 %1833 }
 0x572   :  { %v1835_v1 = vrot.slane %v1834_v0, 2 }
 0x574   :  { %v1837_v2 = vmul.f32 0.5, %v1835_v1 }
 0x576   :  { %v1838_v3 = vadd.f32 0.5, %v1837_v2 }
 0x57d   :  { %v6835_v63 = vpop.eup %6834 }
 0x57e   :  { %1850 = vrot.lane.b32.xlu1 %v6835_v63, %s7274_s7 }
 0x5f0   :  { %v1851_v4 = vpop.permute.xlu1 %1850 }
 0x5f1   :  { %v1853_v5 = vmul.f32 %v1851_v4, %v1838_v3 }
 0x5f3   :  { %1855 = vst.msk [vmem:[#allocation5] sm:$0x3] %vm1854_vm8, %v1853_v5  ;;  %6185 = vmatmul.mubr.msk.f32.vlgmr.msra.gmra.mxu1 %vm1742_vm9, %v1853_v5 }
 0x5f4   :  { %2108 = vmatpush1.msra.mxu1 %v7591_v8  ;;  %2155 = vmatprep.mubr.f32.mxu1 %v7281_v26 }
 0x5f5   :  { %2109 = vmatprep.subr.mxu1 %v7597_v9 }
 0x5f6   :  { %2110 = vmatpush1.msra.mxu1 %v7603_v10 }
 0x5f7   :  { %2111 = vmatprep.subr.mxu1 %v7609_v11 }
 0x5f8   :  { %2112 = vmatpush1.msra.mxu1 %v7615_v12 }
 0x5f9   :  { %2113 = vmatprep.subr.mxu1 %v7621_v13 }
 0x5fa   :  { %2114 = vmatpush1.msra.mxu1 %v7627_v14 }
 0x5fb   :  { %2115 = vmatprep.subr.mxu1 %v7633_v15 }
 0x5fc   :  { %2116 = vmatpush1.msra.mxu1 %v7639_v16 }
 0x5fd   :  { %2117 = vmatprep.subr.mxu1 %v7645_v17 }
 0x5fe   :  { %2118 = vmatpush1.msra.mxu1 %v7651_v18 }
 0x5ff   :  { %2119 = vmatprep.subr.mxu1 %v7657_v19 }
 0x600   :  { %2120 = vmatpush1.msra.mxu1 %v7663_v20 }
 0x601   :  { %2121 = vmatprep.subr.mxu1 %v7669_v21 }
 0x602   :  { %2122 = vmatpush1.msra.mxu1 %v7675_v22 }
 0x603   :  { %2337 = vmatprep.subr.mxu1 %v7585_v7 }
 0x6b3   :  { %v1927_v6 = vpop.f32.mrf.mxu1 }
 0x6b5   :  { %v1929_v23 = vpop.f32.mrf.mxu1 }
 0x6b6   :  { %v1934_v24 = vcombine.low %v1927_v6, %v1929_v23  ;;  %v2087_v6 = vld [vmem:[#allocation4 + $0xc] sm:$0xf] }
 0x6b8   :  { %v1941_v25 = vrot.slane %v1934_v24, %v7722_v49 }
 0x6ba   :  { %v1943_v28 = vadd.f32 %v1941_v25, %v1857_v27 }
 0x6bc   :  { %6836 = vtanh.f32 %v1943_v28 }
 0x6c9   :  { %v6837_v29 = vpop.eup %6836 }
 0x6ca   :  { %1948 = vrot.lane.b32.xlu0 %v6837_v29, %s7274_s7  ;;  %v1945_v30 = vmul.f32 0.5, %v6837_v29  ;;  %v1955_v32 = vrot.slane %v6837_v29, 2 }
 0x6cc   :  { %v1946_v31 = vadd.f32 0.5, %v1945_v30 }
 0x6ce   :  { %v1957_v33 = vmul.f32 %v1955_v32, %v1946_v31  ;;  %v1954_v34 = vmul.f32 %v1946_v31, %v1847_v62 }
 0x6d0   :  { %1959 = vrot.lane.b32.xlu1 %v1957_v33, %s7274_s7 }
 0x73c   :  { %v1949_v38 = vpop.permute.xlu0 %1948 }
 0x73d   :  { %v1950_v39 = vrot.slane %v1949_v38, 2 }
 0x73f   :  { %v1952_v40 = vmul.f32 0.5, %v1950_v39 }
 0x741   :  { %v1953_v42 = vadd.f32 0.5, %v1952_v40 }
 0x742   :  { %v1960_v35 = vpop.permute.xlu1 %1959 }
 0x743   :  { %v1962_v36 = vadd.f32 %v1960_v35, %v1954_v34 }
 0x745   :  { %6838 = vtanh.f32 %v1962_v36 }
 0x752   :  { %v6839_v37 = vpop.eup %6838 }
 0x753   :  { %1965 = vrot.lane.b32.xlu1 %v6839_v37, %s7274_s7 }
 0x7c5   :  { %v1966_v44 = vpop.permute.xlu1 %1965 }
 0x7c6   :  { %v1968_v45 = vmul.f32 %v1966_v44, %v1953_v42 }
 0x7c8   :  { %1970 = vst.msk [vmem:[#allocation5 + $0x2] sm:$0x3] %vm1854_vm8, %v1968_v45  ;;  %6186 = vmatmul.mubr.msk.f32.vlgmr.msra.gmra.mxu0 %vm1742_vm9, %v1968_v45 }
 0x7c9   :  { %2223 = vmatpush1.msra.mxu0 %v7591_v8  ;;  %2270 = vmatprep.mubr.f32.mxu0 %v7281_v26 }
 0x7ca   :  { %2224 = vmatprep.subr.mxu0 %v7597_v9 }
 0x7cb   :  { %2225 = vmatpush1.msra.mxu0 %v7603_v10 }
 0x7cc   :  { %2226 = vmatprep.subr.mxu0 %v7609_v11 }
 0x7cd   :  { %2227 = vmatpush1.msra.mxu0 %v7615_v12 }
 0x7ce   :  { %2228 = vmatprep.subr.mxu0 %v7621_v13 }
 0x7cf   :  { %2229 = vmatpush1.msra.mxu0 %v7627_v14 }
 0x7d0   :  { %2230 = vmatprep.subr.mxu0 %v7633_v15 }
 0x7d1   :  { %2231 = vmatpush1.msra.mxu0 %v7639_v16 }
 0x7d2   :  { %2232 = vmatprep.subr.mxu0 %v7645_v17 }
 0x7d3   :  { %2233 = vmatpush1.msra.mxu0 %v7651_v18 }
 0x7d4   :  { %2234 = vmatprep.subr.mxu0 %v7657_v19 }
 0x7d5   :  { %2235 = vmatpush1.msra.mxu0 %v7663_v20 }
 0x7d6   :  { %2236 = vmatprep.subr.mxu0 %v7669_v21 }
 0x7d7   :  { %2237 = vmatpush1.msra.mxu0 %v7675_v22 }
 0x7d8   :  { %2452 = vmatprep.subr.mxu0 %v7585_v7 }
 0x888   :  { %v2042_v46 = vpop.f32.mrf.mxu0 }
 0x88a   :  { %v2044_v47 = vpop.f32.mrf.mxu0 }
 0x88b   :  { %v2049_v48 = vcombine.low %v2042_v46, %v2044_v47  ;;  %v2202_v46 = vld [vmem:[#allocation4 + $0x10] sm:$0xf] }
 0x88d   :  { %v2056_v50 = vrot.slane %v2049_v48, %v7722_v49 }
 0x88f   :  { %v2058_v41 = vadd.f32 %v2056_v50, %v1972_v51 }
 0x891   :  { %6840 = vtanh.f32 %v2058_v41 }
 0x89e   :  { %v6841_v43 = vpop.eup %6840 }
 0x89f   :  { %2063 = vrot.lane.b32.xlu1 %v6841_v43, %s7274_s7  ;;  %v2060_v52 = vmul.f32 0.5, %v6841_v43  ;;  %v2070_v54 = vrot.slane %v6841_v43, 2 }
 0x8a1   :  { %v2061_v53 = vadd.f32 0.5, %v2060_v52 }
 0x8a3   :  { %v2072_v55 = vmul.f32 %v2070_v54, %v2061_v53  ;;  %v2069_v56 = vmul.f32 %v2061_v53, %v1962_v36 }
 0x8a5   :  { %2074 = vrot.lane.b32.xlu0 %v2072_v55, %s7274_s7 }
 0x911   :  { %v2064_v60 = vpop.permute.xlu1 %2063 }
 0x912   :  { %v2065_v61 = vrot.slane %v2064_v60, 2 }
 0x914   :  { %v2067_v62 = vmul.f32 0.5, %v2065_v61 }
 0x916   :  { %v2068_v63 = vadd.f32 0.5, %v2067_v62 }
 0x917   :  { %v2075_v57 = vpop.permute.xlu0 %2074 }
 0x918   :  { %v2077_v58 = vadd.f32 %v2075_v57, %v2069_v56 }
 0x91a   :  { %6842 = vtanh.f32 %v2077_v58 }
 0x927   :  { %v6843_v59 = vpop.eup %6842 }
 0x928   :  { %2080 = vrot.lane.b32.xlu0 %v6843_v59, %s7274_s7 }
 0x99a   :  { %v2081_v0 = vpop.permute.xlu0 %2080 }
 0x99b   :  { %v2083_v1 = vmul.f32 %v2081_v0, %v2068_v63 }
 0x99d   :  { %2085 = vst.msk [vmem:[#allocation5 + $0x4] sm:$0x3] %vm1854_vm8, %v2083_v1  ;;  %6187 = vmatmul.mubr.msk.f32.vlgmr.msra.gmra.mxu1 %vm1742_vm9, %v2083_v1 }
 0x99e   :  { %2338 = vmatpush1.msra.mxu1 %v7591_v8  ;;  %2385 = vmatprep.mubr.f32.mxu1 %v7281_v26 }
 0x99f   :  { %2339 = vmatprep.subr.mxu1 %v7597_v9 }
 0x9a0   :  { %2340 = vmatpush1.msra.mxu1 %v7603_v10 }
 0x9a1   :  { %2341 = vmatprep.subr.mxu1 %v7609_v11 }
 0x9a2   :  { %2342 = vmatpush1.msra.mxu1 %v7615_v12 }
 0x9a3   :  { %2343 = vmatprep.subr.mxu1 %v7621_v13 }
 0x9a4   :  { %2344 = vmatpush1.msra.mxu1 %v7627_v14 }
 0x9a5   :  { %2345 = vmatprep.subr.mxu1 %v7633_v15 }
 0x9a6   :  { %2346 = vmatpush1.msra.mxu1 %v7639_v16 }
 0x9a7   :  { %2347 = vmatprep.subr.mxu1 %v7645_v17 }
 0x9a8   :  { %2348 = vmatpush1.msra.mxu1 %v7651_v18 }
 0x9a9   :  { %2349 = vmatprep.subr.mxu1 %v7657_v19 }
 0x9aa   :  { %2350 = vmatpush1.msra.mxu1 %v7663_v20 }
 0x9ab   :  { %2351 = vmatprep.subr.mxu1 %v7669_v21 }
 0x9ac   :  { %2352 = vmatpush1.msra.mxu1 %v7675_v22 }
 0x9ad   :  { %2567 = vmatprep.subr.mxu1 %v7585_v7 }
 0xa5d   :  { %v2157_v2 = vpop.f32.mrf.mxu1 }
 0xa5f   :  { %v2159_v3 = vpop.f32.mrf.mxu1 }
 0xa60   :  { %v2164_v4 = vcombine.low %v2157_v2, %v2159_v3  ;;  %v2317_v2 = vld [vmem:[#allocation4 + $0x14] sm:$0xf] }
 0xa62   :  { %v2171_v5 = vrot.slane %v2164_v4, %v7722_v49 }
 0xa64   :  { %v2173_v23 = vadd.f32 %v2171_v5, %v2087_v6 }
 0xa66   :  { %6844 = vtanh.f32 %v2173_v23 }
 0xa73   :  { %v6845_v24 = vpop.eup %6844 }
 0xa74   :  { %2178 = vrot.lane.b32.xlu0 %v6845_v24, %s7274_s7  ;;  %v2175_v25 = vmul.f32 0.5, %v6845_v24  ;;  %v2185_v28 = vrot.slane %v6845_v24, 2 }
 0xa76   :  { %v2176_v27 = vadd.f32 0.5, %v2175_v25 }
 0xa78   :  { %v2187_v29 = vmul.f32 %v2185_v28, %v2176_v27  ;;  %v2184_v30 = vmul.f32 %v2176_v27, %v2077_v58 }
 0xa7a   :  { %2189 = vrot.lane.b32.xlu1 %v2187_v29, %s7274_s7 }
 0xae6   :  { %v2179_v34 = vpop.permute.xlu0 %2178 }
 0xae7   :  { %v2180_v35 = vrot.slane %v2179_v34, 2 }
 0xae9   :  { %v2182_v36 = vmul.f32 0.5, %v2180_v35 }
 0xaeb   :  { %v2183_v37 = vadd.f32 0.5, %v2182_v36 }
 0xaec   :  { %v2190_v31 = vpop.permute.xlu1 %2189 }
 0xaed   :  { %v2192_v32 = vadd.f32 %v2190_v31, %v2184_v30 }
 0xaef   :  { %6846 = vtanh.f32 %v2192_v32 }
 0xafc   :  { %v6847_v33 = vpop.eup %6846 }
 0xafd   :  { %2195 = vrot.lane.b32.xlu1 %v6847_v33, %s7274_s7 }
 0xb6f   :  { %v2196_v38 = vpop.permute.xlu1 %2195 }
 0xb70   :  { %v2198_v39 = vmul.f32 %v2196_v38, %v2183_v37 }
 0xb72   :  { %2200 = vst.msk [vmem:[#allocation5 + $0x6] sm:$0x3] %vm1854_vm8, %v2198_v39  ;;  %6188 = vmatmul.mubr.msk.f32.vlgmr.msra.gmra.mxu0 %vm1742_vm9, %v2198_v39 }
 0xb73   :  { %2453 = vmatpush1.msra.mxu0 %v7591_v8  ;;  %2500 = vmatprep.mubr.f32.mxu0 %v7281_v26 }
 0xb74   :  { %2454 = vmatprep.subr.mxu0 %v7597_v9 }
 0xb75   :  { %2455 = vmatpush1.msra.mxu0 %v7603_v10 }
 0xb76   :  { %2456 = vmatprep.subr.mxu0 %v7609_v11 }
 0xb77   :  { %2457 = vmatpush1.msra.mxu0 %v7615_v12 }
 0xb78   :  { %2458 = vmatprep.subr.mxu0 %v7621_v13 }
 0xb79   :  { %2459 = vmatpush1.msra.mxu0 %v7627_v14 }
 0xb7a   :  { %2460 = vmatprep.subr.mxu0 %v7633_v15 }
 0xb7b   :  { %2461 = vmatpush1.msra.mxu0 %v7639_v16 }
 0xb7c   :  { %2462 = vmatprep.subr.mxu0 %v7645_v17 }
 0xb7d   :  { %2463 = vmatpush1.msra.mxu0 %v7651_v18 }
 0xb7e   :  { %2464 = vmatprep.subr.mxu0 %v7657_v19 }
 0xb7f   :  { %2465 = vmatpush1.msra.mxu0 %v7663_v20 }
 0xb80   :  { %2466 = vmatprep.subr.mxu0 %v7669_v21 }
 0xb81   :  { %2467 = vmatpush1.msra.mxu0 %v7675_v22 }
 0xb82   :  { %2682 = vmatprep.subr.mxu0 %v7585_v7 }
 0xc32   :  { %v2272_v40 = vpop.f32.mrf.mxu0 }
 0xc34   :  { %v2274_v42 = vpop.f32.mrf.mxu0 }
 0xc35   :  { %v2279_v44 = vcombine.low %v2272_v40, %v2274_v42  ;;  %v2432_v40 = vld [vmem:[#allocation4 + $0x18] sm:$0xf] }
 0xc37   :  { %v2286_v45 = vrot.slane %v2279_v44, %v7722_v49 }
 0xc39   :  { %v2288_v47 = vadd.f32 %v2286_v45, %v2202_v46 }
 0xc3b   :  { %6848 = vtanh.f32 %v2288_v47 }
 0xc48   :  { %v6849_v48 = vpop.eup %6848 }
 0xc49   :  { %2293 = vrot.lane.b32.xlu1 %v6849_v48, %s7274_s7  ;;  %v2290_v50 = vmul.f32 0.5, %v6849_v48  ;;  %v2300_v41 = vrot.slane %v6849_v48, 2 }
 0xc4b   :  { %v2291_v51 = vadd.f32 0.5, %v2290_v50 }
 0xc4d   :  { %v2302_v43 = vmul.f32 %v2300_v41, %v2291_v51  ;;  %v2299_v52 = vmul.f32 %v2291_v51, %v2192_v32 }
 0xc4f   :  { %2304 = vrot.lane.b32.xlu0 %v2302_v43, %s7274_s7 }
 0xcbb   :  { %v2294_v56 = vpop.permute.xlu1 %2293 }
 0xcbc   :  { %v2295_v57 = vrot.slane %v2294_v56, 2 }
 0xcbe   :  { %v2297_v58 = vmul.f32 0.5, %v2295_v57 }
 0xcc0   :  { %v2298_v59 = vadd.f32 0.5, %v2297_v58 }
 0xcc1   :  { %v2305_v53 = vpop.permute.xlu0 %2304 }
 0xcc2   :  { %v2307_v54 = vadd.f32 %v2305_v53, %v2299_v52 }
 0xcc4   :  { %6850 = vtanh.f32 %v2307_v54 }
 0xcd1   :  { %v6851_v55 = vpop.eup %6850 }
 0xcd2   :  { %2310 = vrot.lane.b32.xlu0 %v6851_v55, %s7274_s7 }
 0xd44   :  { %v2311_v60 = vpop.permute.xlu0 %2310 }
 0xd45   :  { %v2313_v61 = vmul.f32 %v2311_v60, %v2298_v59 }
 0xd47   :  { %2315 = vst.msk [vmem:[#allocation5 + $0x8] sm:$0x3] %vm1854_vm8, %v2313_v61  ;;  %6189 = vmatmul.mubr.msk.f32.vlgmr.msra.gmra.mxu1 %vm1742_vm9, %v2313_v61 }
 0xd48   :  { %2568 = vmatpush1.msra.mxu1 %v7591_v8  ;;  %2615 = vmatprep.mubr.f32.mxu1 %v7281_v26 }
 0xd49   :  { %2569 = vmatprep.subr.mxu1 %v7597_v9 }
 0xd4a   :  { %2570 = vmatpush1.msra.mxu1 %v7603_v10 }
 0xd4b   :  { %2571 = vmatprep.subr.mxu1 %v7609_v11 }
 0xd4c   :  { %2572 = vmatpush1.msra.mxu1 %v7615_v12 }
 0xd4d   :  { %2573 = vmatprep.subr.mxu1 %v7621_v13 }
 0xd4e   :  { %2574 = vmatpush1.msra.mxu1 %v7627_v14 }
 0xd4f   :  { %2575 = vmatprep.subr.mxu1 %v7633_v15 }
 0xd50   :  { %2576 = vmatpush1.msra.mxu1 %v7639_v16 }
 0xd51   :  { %2577 = vmatprep.subr.mxu1 %v7645_v17 }
 0xd52   :  { %2578 = vmatpush1.msra.mxu1 %v7651_v18 }
 0xd53   :  { %2579 = vmatprep.subr.mxu1 %v7657_v19 }
 0xd54   :  { %2580 = vmatpush1.msra.mxu1 %v7663_v20 }
 0xd55   :  { %2581 = vmatprep.subr.mxu1 %v7669_v21 }
 0xd56   :  { %2582 = vmatpush1.msra.mxu1 %v7675_v22 }
 0xd57   :  { %2797 = vmatprep.subr.mxu1 %v7585_v7 }
 0xe07   :  { %v2387_v62 = vpop.f32.mrf.mxu1 }
 0xe09   :  { %v2389_v63 = vpop.f32.mrf.mxu1 }
 0xe0a   :  { %v2394_v0 = vcombine.low %v2387_v62, %v2389_v63  ;;  %v2547_v62 = vld [vmem:[#allocation4 + $0x1c] sm:$0xf] }
 0xe0c   :  { %v2401_v1 = vrot.slane %v2394_v0, %v7722_v49 }
 0xe0e   :  { %v2403_v3 = vadd.f32 %v2401_v1, %v2317_v2 }
 0xe10   :  { %6852 = vtanh.f32 %v2403_v3 }
 0xe1d   :  { %v6853_v4 = vpop.eup %6852 }
 0xe1e   :  { %2408 = vrot.lane.b32.xlu0 %v6853_v4, %s7274_s7  ;;  %v2405_v5 = vmul.f32 0.5, %v6853_v4  ;;  %v2415_v23 = vrot.slane %v6853_v4, 2 }
 0xe20   :  { %v2406_v6 = vadd.f32 0.5, %v2405_v5 }
 0xe22   :  { %v2417_v24 = vmul.f32 %v2415_v23, %v2406_v6  ;;  %v2414_v25 = vmul.f32 %v2406_v6, %v2307_v54 }
 0xe24   :  { %2419 = vrot.lane.b32.xlu1 %v2417_v24, %s7274_s7 }
 0xe90   :  { %v2409_v30 = vpop.permute.xlu0 %2408 }
 0xe91   :  { %v2410_v31 = vrot.slane %v2409_v30, 2 }
 0xe93   :  { %v2412_v32 = vmul.f32 0.5, %v2410_v31 }
 0xe95   :  { %v2413_v33 = vadd.f32 0.5, %v2412_v32 }
 0xe96   :  { %v2420_v27 = vpop.permute.xlu1 %2419 }
 0xe97   :  { %v2422_v28 = vadd.f32 %v2420_v27, %v2414_v25 }
 0xe99   :  { %6854 = vtanh.f32 %v2422_v28 }
 0xea6   :  { %v6855_v29 = vpop.eup %6854 }
 0xea7   :  { %2425 = vrot.lane.b32.xlu1 %v6855_v29, %s7274_s7 }
 0xf19   :  { %v2426_v34 = vpop.permute.xlu1 %2425 }
 0xf1a   :  { %v2428_v35 = vmul.f32 %v2426_v34, %v2413_v33 }
 0xf1c   :  { %2430 = vst.msk [vmem:[#allocation5 + $0xa] sm:$0x3] %vm1854_vm8, %v2428_v35  ;;  %6190 = vmatmul.mubr.msk.f32.vlgmr.msra.gmra.mxu0 %vm1742_vm9, %v2428_v35 }
 0xf1d   :  { %2683 = vmatpush1.msra.mxu0 %v7591_v8  ;;  %2730 = vmatprep.mubr.f32.mxu0 %v7281_v26 }
 0xf1e   :  { %2684 = vmatprep.subr.mxu0 %v7597_v9 }
 0xf1f   :  { %2685 = vmatpush1.msra.mxu0 %v7603_v10 }
 0xf20   :  { %2686 = vmatprep.subr.mxu0 %v7609_v11 }
 0xf21   :  { %2687 = vmatpush1.msra.mxu0 %v7615_v12 }
 0xf22   :  { %2688 = vmatprep.subr.mxu0 %v7621_v13 }
 0xf23   :  { %2689 = vmatpush1.msra.mxu0 %v7627_v14 }
 0xf24   :  { %2690 = vmatprep.subr.mxu0 %v7633_v15 }
 0xf25   :  { %2691 = vmatpush1.msra.mxu0 %v7639_v16 }
 0xf26   :  { %2692 = vmatprep.subr.mxu0 %v7645_v17 }
 0xf27   :  { %2693 = vmatpush1.msra.mxu0 %v7651_v18 }
 0xf28   :  { %2694 = vmatprep.subr.mxu0 %v7657_v19 }
 0xf29   :  { %2695 = vmatpush1.msra.mxu0 %v7663_v20 }
 0xf2a   :  { %2696 = vmatprep.subr.mxu0 %v7669_v21 }
 0xf2b   :  { %2697 = vmatpush1.msra.mxu0 %v7675_v22 }
 0xf2c   :  { %2912 = vmatprep.subr.mxu0 %v7585_v7 }
 0xfdc   :  { %v2502_v36 = vpop.f32.mrf.mxu0 }
 0xfde   :  { %v2504_v37 = vpop.f32.mrf.mxu0 }
 0xfdf   :  { %v2509_v38 = vcombine.low %v2502_v36, %v2504_v37 }
 0xfe1   :  { %v2516_v39 = vrot.slane %v2509_v38, %v7722_v49  ;;  %v7930_v38 = vld [vmem:[%s8491_s11 + $0x70] sm:$0xff] }
 0xfe3   :  { %v2518_v42 = vadd.f32 %v2516_v39, %v2432_v40  ;;  %v7937_v39 = vld [vmem:[%s8491_s11 + $0x68] sm:$0xff]  ;;  %v7943_v40 = vld [vmem:[%s8491_s11 + $0x60] sm:$0xff] }
 0xfe5   :  { %6856 = vtanh.f32 %v2518_v42  ;;  %v7949_v42 = vld [vmem:[%s8491_s11 + $0x58] sm:$0xff] }
 0xff2   :  { %v6857_v44 = vpop.eup %6856 }
 0xff3   :  { %2523 = vrot.lane.b32.xlu1 %v6857_v44, %s7274_s7  ;;  %v2520_v45 = vmul.f32 0.5, %v6857_v44  ;;  %v2530_v47 = vrot.slane %v6857_v44, 2  ;;  %v7955_v44 = vld [vmem:[%s8491_s11 + $0x50] sm:$0xff] }
 0xff5   :  { %v2521_v46 = vadd.f32 0.5, %v2520_v45  ;;  %v7961_v45 = vld [vmem:[%s8491_s11 + $0x48] sm:$0xff] }
 0xff7   :  { %v2532_v48 = vmul.f32 %v2530_v47, %v2521_v46  ;;  %v2529_v50 = vmul.f32 %v2521_v46, %v2422_v28  ;;  %v7967_v46 = vld [vmem:[%s8491_s11 + $0x40] sm:$0xff]  ;;  %v7973_v47 = vld [vmem:[%s8491_s11 + $0x38] sm:$0xff] }
 0xff9   :  { %2534 = vrot.lane.b32.xlu0 %v2532_v48, %s7274_s7  ;;  %v7979_v48 = vld [vmem:[%s8491_s11 + $0x30] sm:$0xff] }
0x1065   :  { %v2524_v52 = vpop.permute.xlu1 %2523 }
0x1066   :  { %v2525_v53 = vrot.slane %v2524_v52, 2  ;;  %v8009_v52 = vld [vmem:[%s8491_s11 + $0x8] sm:$0xff] }
0x1068   :  { %v2527_v54 = vmul.f32 0.5, %v2525_v53  ;;  %v8015_v53 = vld [vmem:[%s8491_s11] sm:$0xff] }
0x106a   :  { %v2528_v55 = vadd.f32 0.5, %v2527_v54 }
0x106b   :  { %v2535_v51 = vpop.permute.xlu0 %2534 }
0x106c   :  { %v2537_v41 = vadd.f32 %v2535_v51, %v2529_v50  ;;  %v7985_v50 = vld [vmem:[%s8491_s11 + $0x28] sm:$0xff]  ;;  %v7991_v51 = vld [vmem:[%s8491_s11 + $0x20] sm:$0xff] }
0x106e   :  { %6858 = vtanh.f32 %v2537_v41 }
0x107b   :  { %v6859_v43 = vpop.eup %6858 }
0x107c   :  { %2540 = vrot.lane.b32.xlu0 %v6859_v43, %s7274_s7  ;;  %v8003_v43 = vld [vmem:[%s8491_s11 + $0x10] sm:$0xff] }
0x10ee   :  { %v2541_v56 = vpop.permute.xlu0 %2540 }
0x10ef   :  { %v2543_v57 = vmul.f32 %v2541_v56, %v2528_v55 }
0x10f1   :  { %2545 = vst.msk [vmem:[#allocation5 + $0xc] sm:$0x3] %vm1854_vm8, %v2543_v57  ;;  %6191 = vmatmul.mubr.msk.f32.vlgmr.msra.gmra.mxu1 %vm1742_vm9, %v2543_v57 }
0x10f2   :  { %2798 = vmatpush1.msra.mxu1 %v7591_v8  ;;  %2845 = vmatprep.mubr.f32.mxu1 %v7281_v26 }
0x10f3   :  { %2799 = vmatprep.subr.mxu1 %v7597_v9 }
0x10f4   :  { %2800 = vmatpush1.msra.mxu1 %v7603_v10 }
0x10f5   :  { %2801 = vmatprep.subr.mxu1 %v7609_v11 }
0x10f6   :  { %2802 = vmatpush1.msra.mxu1 %v7615_v12 }
0x10f7   :  { %2803 = vmatprep.subr.mxu1 %v7621_v13 }
0x10f8   :  { %2804 = vmatpush1.msra.mxu1 %v7627_v14 }
0x10f9   :  { %2805 = vmatprep.subr.mxu1 %v7633_v15 }
0x10fa   :  { %2806 = vmatpush1.msra.mxu1 %v7639_v16 }
0x10fb   :  { %2807 = vmatprep.subr.mxu1 %v7645_v17 }
0x10fc   :  { %2808 = vmatpush1.msra.mxu1 %v7651_v18 }
0x10fd   :  { %2809 = vmatprep.subr.mxu1 %v7657_v19 }
0x10fe   :  { %2810 = vmatpush1.msra.mxu1 %v7663_v20 }
0x10ff   :  { %2811 = vmatprep.subr.mxu1 %v7669_v21 }
0x1100   :  { %2812 = vmatpush1.msra.mxu1 %v7675_v22 }
0x1101   :  { %3027 = vmatprep.subr.mxu1 %v7585_v7 }
0x11b1   :  { %v2617_v58 = vpop.f32.mrf.mxu1 }
0x11b3   :  { %v2619_v59 = vpop.f32.mrf.mxu1 }
0x11b4   :  { %v2624_v60 = vcombine.low %v2617_v58, %v2619_v59  ;;  %v2777_v58 = vld [vmem:[#allocation4 + $0x24] sm:$0xf] }
0x11b6   :  { %v2631_v61 = vrot.slane %v2624_v60, %v7722_v49 }
0x11b8   :  { %v2633_v63 = vadd.f32 %v2631_v61, %v2547_v62 }
0x11ba   :  { %6860 = vtanh.f32 %v2633_v63 }
0x11c7   :  { %v6861_v0 = vpop.eup %6860 }
0x11c8   :  { %2638 = vrot.lane.b32.xlu0 %v6861_v0, %s7274_s7  ;;  %v2635_v1 = vmul.f32 0.5, %v6861_v0  ;;  %v2645_v3 = vrot.slane %v6861_v0, 2 }
0x11ca   :  { %v2636_v2 = vadd.f32 0.5, %v2635_v1 }
0x11cc   :  { %v2647_v4 = vmul.f32 %v2645_v3, %v2636_v2  ;;  %v2644_v5 = vmul.f32 %v2636_v2, %v2537_v41  ;;  %v7997_v41 = vld [vmem:[%s8491_s11 + $0x18] sm:$0xff] }
0x11ce   :  { %2649 = vrot.lane.b32.xlu1 %v2647_v4, %s7274_s7 }
0x123a   :  { %v2639_v24 = vpop.permute.xlu0 %2638 }
0x123b   :  { %v2640_v25 = vrot.slane %v2639_v24, 2 }
0x123d   :  { %v2642_v27 = vmul.f32 0.5, %v2640_v25 }
0x123f   :  { %v2643_v28 = vadd.f32 0.5, %v2642_v27 }
0x1240   :  { %v2650_v6 = vpop.permute.xlu1 %2649 }
0x1241   :  { %v2652_v7 = vadd.f32 %v2650_v6, %v2644_v5 }
0x1243   :  { %6862 = vtanh.f32 %v2652_v7 }
0x1250   :  { %v6863_v23 = vpop.eup %6862 }
0x1251   :  { %2655 = vrot.lane.b32.xlu1 %v6863_v23, %s7274_s7 }
0x12c3   :  { %v2656_v29 = vpop.permute.xlu1 %2655 }
0x12c4   :  { %v2658_v30 = vmul.f32 %v2656_v29, %v2643_v28 }
0x12c6   :  { %2660 = vst.msk [vmem:[#allocation5 + $0xe] sm:$0x3] %vm1854_vm8, %v2658_v30  ;;  %6192 = vmatmul.mubr.msk.f32.vlgmr.msra.gmra.mxu0 %vm1742_vm9, %v2658_v30 }
0x12c7   :  { %2913 = vmatpush1.msra.mxu0 %v7591_v8  ;;  %2960 = vmatprep.mubr.f32.mxu0 %v7281_v26  ;;  %v7918_v8 = vld [vmem:[%s8491_s11 + $0x78] sm:$0xff] }
0x12c8   :  { %2914 = vmatprep.subr.mxu0 %v7597_v9 }
0x12c9   :  { %2915 = vmatpush1.msra.mxu0 %v7603_v10 }
0x12ca   :  { %2916 = vmatprep.subr.mxu0 %v7609_v11 }
0x12cb   :  { %2917 = vmatpush1.msra.mxu0 %v7615_v12 }
0x12cc   :  { %2918 = vmatprep.subr.mxu0 %v7621_v13  ;;  %v2662_v13 = vld [vmem:[#allocation4 + $0x20] sm:$0xf] }
0x12cd   :  { %2919 = vmatpush1.msra.mxu0 %v7627_v14 }
0x12ce   :  { %2920 = vmatprep.subr.mxu0 %v7633_v15 }
0x12cf   :  { %2921 = vmatpush1.msra.mxu0 %v7639_v16 }
0x12d0   :  { %2922 = vmatprep.subr.mxu0 %v7645_v17 }
0x12d1   :  { %2923 = vmatpush1.msra.mxu0 %v7651_v18 }
0x12d2   :  { %2924 = vmatprep.subr.mxu0 %v7657_v19 }
0x12d3   :  { %2925 = vmatpush1.msra.mxu0 %v7663_v20 }
0x12d4   :  { %2926 = vmatprep.subr.mxu0 %v7669_v21 }
0x12d5   :  { %2927 = vmatpush1.msra.mxu0 %v7675_v22 }
0x12d6   :  { %3142 = vmatprep.subr.mxu0 %v7918_v8 }
0x1386   :  { %v2732_v9 = vpop.f32.mrf.mxu0 }
0x1388   :  { %v2734_v10 = vpop.f32.mrf.mxu0 }
0x1389   :  { %v2739_v11 = vcombine.low %v2732_v9, %v2734_v10  ;;  %v2892_v9 = vld [vmem:[#allocation4 + $0x28] sm:$0xf] }
0x138b   :  { %v2746_v12 = vrot.slane %v2739_v11, %v7722_v49 }
0x138d   :  { %v2748_v14 = vadd.f32 %v2746_v12, %v2662_v13 }
0x138f   :  { %6864 = vtanh.f32 %v2748_v14 }
0x139c   :  { %v6865_v15 = vpop.eup %6864 }
0x139d   :  { %2753 = vrot.lane.b32.xlu1 %v6865_v15, %s7274_s7  ;;  %v2750_v16 = vmul.f32 0.5, %v6865_v15  ;;  %v2760_v18 = vrot.slane %v6865_v15, 2 }
0x139f   :  { %v2751_v17 = vadd.f32 0.5, %v2750_v16 }
0x13a1   :  { %v2762_v19 = vmul.f32 %v2760_v18, %v2751_v17  ;;  %v2759_v20 = vmul.f32 %v2751_v17, %v2652_v7 }
0x13a3   :  { %2764 = vrot.lane.b32.xlu0 %v2762_v19, %s7274_s7 }
0x140f   :  { %v2754_v32 = vpop.permute.xlu1 %2753 }
0x1410   :  { %v2755_v33 = vrot.slane %v2754_v32, 2 }
0x1412   :  { %v2757_v34 = vmul.f32 0.5, %v2755_v33 }
0x1414   :  { %v2758_v35 = vadd.f32 0.5, %v2757_v34 }
0x1415   :  { %v2765_v21 = vpop.permute.xlu0 %2764 }
0x1416   :  { %v2767_v22 = vadd.f32 %v2765_v21, %v2759_v20 }
0x1418   :  { %6866 = vtanh.f32 %v2767_v22 }
0x1425   :  { %v6867_v31 = vpop.eup %6866 }
0x1426   :  { %2770 = vrot.lane.b32.xlu0 %v6867_v31, %s7274_s7 }
0x1498   :  { %v2771_v36 = vpop.permute.xlu0 %2770 }
0x1499   :  { %v2773_v37 = vmul.f32 %v2771_v36, %v2758_v35 }
0x149b   :  { %2775 = vst.msk [vmem:[#allocation5 + $0x10] sm:$0x3] %vm1854_vm8, %v2773_v37  ;;  %6193 = vmatmul.mubr.msk.f32.vlgmr.msra.gmra.mxu1 %vm1742_vm9, %v2773_v37 }
0x149c   :  { %3028 = vmatpush1.msra.mxu1 %v7930_v38  ;;  %3075 = vmatprep.mubr.f32.mxu1 %v7281_v26 }
0x149d   :  { %3029 = vmatprep.subr.mxu1 %v7937_v39 }
0x149e   :  { %3030 = vmatpush1.msra.mxu1 %v7943_v40 }
0x149f   :  { %3031 = vmatprep.subr.mxu1 %v7949_v42 }
0x14a0   :  { %3032 = vmatpush1.msra.mxu1 %v7955_v44 }
0x14a1   :  { %3033 = vmatprep.subr.mxu1 %v7961_v45 }
0x14a2   :  { %3034 = vmatpush1.msra.mxu1 %v7967_v46 }
0x14a3   :  { %3035 = vmatprep.subr.mxu1 %v7973_v47 }
0x14a4   :  { %3036 = vmatpush1.msra.mxu1 %v7979_v48 }
0x14a5   :  { %3037 = vmatprep.subr.mxu1 %v7985_v50 }
0x14a6   :  { %3038 = vmatpush1.msra.mxu1 %v7991_v51 }
0x14a7   :  { %3039 = vmatprep.subr.mxu1 %v7997_v41 }
0x14a8   :  { %3040 = vmatpush1.msra.mxu1 %v8003_v43 }
0x14a9   :  { %3041 = vmatprep.subr.mxu1 %v8009_v52 }
0x14aa   :  { %3042 = vmatpush1.msra.mxu1 %v8015_v53 }
0x14ab   :  { %3257 = vmatprep.subr.mxu1 %v7918_v8 }
0x155b   :  { %v2847_v54 = vpop.f32.mrf.mxu1 }
0x155d   :  { %v2849_v55 = vpop.f32.mrf.mxu1 }
0x155e   :  { %v2854_v56 = vcombine.low %v2847_v54, %v2849_v55  ;;  %v3007_v54 = vld [vmem:[#allocation4 + $0x2c] sm:$0xf] }
0x1560   :  { %v2861_v57 = vrot.slane %v2854_v56, %v7722_v49 }
0x1562   :  { %v2863_v59 = vadd.f32 %v2861_v57, %v2777_v58 }
0x1564   :  { %6868 = vtanh.f32 %v2863_v59 }
0x1571   :  { %v6869_v60 = vpop.eup %6868 }
0x1572   :  { %2868 = vrot.lane.b32.xlu0 %v6869_v60, %s7274_s7  ;;  %v2865_v61 = vmul.f32 0.5, %v6869_v60  ;;  %v2875_v63 = vrot.slane %v6869_v60, 2 }
0x1574   :  { %v2866_v62 = vadd.f32 0.5, %v2865_v61 }
0x1576   :  { %v2877_v0 = vmul.f32 %v2875_v63, %v2866_v62  ;;  %v2874_v1 = vmul.f32 %v2866_v62, %v2767_v22 }
0x1578   :  { %2879 = vrot.lane.b32.xlu1 %v2877_v0, %s7274_s7 }
0x15e4   :  { %v2869_v5 = vpop.permute.xlu0 %2868 }
0x15e5   :  { %v2870_v6 = vrot.slane %v2869_v5, 2 }
0x15e7   :  { %v2872_v7 = vmul.f32 0.5, %v2870_v6 }
0x15e9   :  { %v2873_v23 = vadd.f32 0.5, %v2872_v7 }
0x15ea   :  { %v2880_v2 = vpop.permute.xlu1 %2879 }
0x15eb   :  { %v2882_v3 = vadd.f32 %v2880_v2, %v2874_v1 }
0x15ed   :  { %6870 = vtanh.f32 %v2882_v3 }
0x15fa   :  { %v6871_v4 = vpop.eup %6870 }
0x15fb   :  { %2885 = vrot.lane.b32.xlu1 %v6871_v4, %s7274_s7 }
0x166d   :  { %v2886_v24 = vpop.permute.xlu1 %2885 }
0x166e   :  { %v2888_v25 = vmul.f32 %v2886_v24, %v2873_v23 }
0x1670   :  { %2890 = vst.msk [vmem:[#allocation5 + $0x12] sm:$0x3] %vm1854_vm8, %v2888_v25  ;;  %6194 = vmatmul.mubr.msk.f32.vlgmr.msra.gmra.mxu0 %vm1742_vm9, %v2888_v25  ;;  %v3122_v25 = vld [vmem:[#allocation4 + $0x30] sm:$0xf] }
0x1671   :  { %3143 = vmatpush1.msra.mxu0 %v7930_v38  ;;  %3190 = vmatprep.mubr.f32.mxu0 %v7281_v26 }
0x1672   :  { %3144 = vmatprep.subr.mxu0 %v7937_v39 }
0x1673   :  { %3145 = vmatpush1.msra.mxu0 %v7943_v40 }
0x1674   :  { %3146 = vmatprep.subr.mxu0 %v7949_v42 }
0x1675   :  { %3147 = vmatpush1.msra.mxu0 %v7955_v44 }
0x1676   :  { %3148 = vmatprep.subr.mxu0 %v7961_v45 }
0x1677   :  { %3149 = vmatpush1.msra.mxu0 %v7967_v46 }
0x1678   :  { %3150 = vmatprep.subr.mxu0 %v7973_v47 }
0x1679   :  { %3151 = vmatpush1.msra.mxu0 %v7979_v48 }
0x167a   :  { %3152 = vmatprep.subr.mxu0 %v7985_v50 }
0x167b   :  { %3153 = vmatpush1.msra.mxu0 %v7991_v51 }
0x167c   :  { %3154 = vmatprep.subr.mxu0 %v7997_v41 }
0x167d   :  { %3155 = vmatpush1.msra.mxu0 %v8003_v43 }
0x167e   :  { %3156 = vmatprep.subr.mxu0 %v8009_v52 }
0x167f   :  { %3157 = vmatpush1.msra.mxu0 %v8015_v53 }
0x1680   :  { %3372 = vmatprep.subr.mxu0 %v7918_v8 }
0x1730   :  { %v2962_v27 = vpop.f32.mrf.mxu0 }
0x1732   :  { %v2964_v28 = vpop.f32.mrf.mxu0 }
0x1733   :  { %v2969_v29 = vcombine.low %v2962_v27, %v2964_v28 }
0x1735   :  { %v2976_v30 = vrot.slane %v2969_v29, %v7722_v49 }
0x1737   :  { %v2978_v10 = vadd.f32 %v2976_v30, %v2892_v9 }
0x1739   :  { %6872 = vtanh.f32 %v2978_v10 }
0x1746   :  { %v6873_v11 = vpop.eup %6872 }
0x1747   :  { %2983 = vrot.lane.b32.xlu1 %v6873_v11, %s7274_s7  ;;  %v2980_v12 = vmul.f32 0.5, %v6873_v11  ;;  %v2990_v14 = vrot.slane %v6873_v11, 2 }
0x1749   :  { %v2981_v13 = vadd.f32 0.5, %v2980_v12 }
0x174b   :  { %v2992_v15 = vmul.f32 %v2990_v14, %v2981_v13  ;;  %v2989_v16 = vmul.f32 %v2981_v13, %v2882_v3 }
0x174d   :  { %2994 = vrot.lane.b32.xlu0 %v2992_v15, %s7274_s7 }
0x17b9   :  { %v2984_v20 = vpop.permute.xlu1 %2983 }
0x17ba   :  { %v2985_v21 = vrot.slane %v2984_v20, 2 }
0x17bc   :  { %v2987_v22 = vmul.f32 0.5, %v2985_v21 }
0x17be   :  { %v2988_v31 = vadd.f32 0.5, %v2987_v22 }
0x17bf   :  { %v2995_v17 = vpop.permute.xlu0 %2994 }
0x17c0   :  { %v2997_v18 = vadd.f32 %v2995_v17, %v2989_v16 }
0x17c2   :  { %6874 = vtanh.f32 %v2997_v18 }
0x17cf   :  { %v6875_v19 = vpop.eup %6874 }
0x17d0   :  { %3000 = vrot.lane.b32.xlu0 %v6875_v19, %s7274_s7 }
0x1842   :  { %v3001_v32 = vpop.permute.xlu0 %3000 }
0x1843   :  { %v3003_v33 = vmul.f32 %v3001_v32, %v2988_v31 }
0x1845   :  { %3005 = vst.msk [vmem:[#allocation5 + $0x14] sm:$0x3] %vm1854_vm8, %v3003_v33  ;;  %6195 = vmatmul.mubr.msk.f32.vlgmr.msra.gmra.mxu1 %vm1742_vm9, %v3003_v33 }
0x1846   :  { %3258 = vmatpush1.msra.mxu1 %v7930_v38  ;;  %3305 = vmatprep.mubr.f32.mxu1 %v7281_v26 }
0x1847   :  { %3259 = vmatprep.subr.mxu1 %v7937_v39 }
0x1848   :  { %3260 = vmatpush1.msra.mxu1 %v7943_v40 }
0x1849   :  { %3261 = vmatprep.subr.mxu1 %v7949_v42 }
0x184a   :  { %3262 = vmatpush1.msra.mxu1 %v7955_v44 }
0x184b   :  { %3263 = vmatprep.subr.mxu1 %v7961_v45 }
0x184c   :  { %3264 = vmatpush1.msra.mxu1 %v7967_v46 }
0x184d   :  { %3265 = vmatprep.subr.mxu1 %v7973_v47 }
0x184e   :  { %3266 = vmatpush1.msra.mxu1 %v7979_v48 }
0x184f   :  { %3267 = vmatprep.subr.mxu1 %v7985_v50 }
0x1850   :  { %3268 = vmatpush1.msra.mxu1 %v7991_v51 }
0x1851   :  { %3269 = vmatprep.subr.mxu1 %v7997_v41 }
0x1852   :  { %3270 = vmatpush1.msra.mxu1 %v8003_v43 }
0x1853   :  { %3271 = vmatprep.subr.mxu1 %v8009_v52 }
0x1854   :  { %3272 = vmatpush1.msra.mxu1 %v8015_v53 }
0x1855   :  { %3487 = vmatprep.subr.mxu1 %v7918_v8 }
0x1905   :  { %v3077_v34 = vpop.f32.mrf.mxu1 }
0x1907   :  { %v3079_v35 = vpop.f32.mrf.mxu1 }
0x1908   :  { %v3084_v36 = vcombine.low %v3077_v34, %v3079_v35  ;;  %v6976_v35 = vld [vmem:[#allocation8] sm:$0xff] }
0x190a   :  { %v3091_v37 = vrot.slane %v3084_v36, %v7722_v49 }
0x190c   :  { %v3093_v55 = vadd.f32 %v3091_v37, %v3007_v54 }
0x190e   :  { %6876 = vtanh.f32 %v3093_v55 }
0x191b   :  { %v6877_v56 = vpop.eup %6876 }
0x191c   :  { %3098 = vrot.lane.b32.xlu0 %v6877_v56, %s7274_s7  ;;  %v3095_v57 = vmul.f32 0.5, %v6877_v56  ;;  %v3105_v59 = vrot.slane %v6877_v56, 2  ;;  %v3352_v56 = vld [vmem:[#allocation4 + $0x38] sm:$0xf] }
0x191e   :  { %v3096_v58 = vadd.f32 0.5, %v3095_v57 }
0x1920   :  { %v3107_v60 = vmul.f32 %v3105_v59, %v3096_v58  ;;  %v3104_v61 = vmul.f32 %v3096_v58, %v2997_v18 }
0x1922   :  { %3109 = vrot.lane.b32.xlu1 %v3107_v60, %s7274_s7 }
0x198e   :  { %v3099_v0 = vpop.permute.xlu0 %3098 }
0x198f   :  { %v3100_v1 = vrot.slane %v3099_v0, 2 }
0x1991   :  { %v3102_v2 = vmul.f32 0.5, %v3100_v1 }
0x1993   :  { %v3103_v3 = vadd.f32 0.5, %v3102_v2 }
0x1994   :  { %v3110_v62 = vpop.permute.xlu1 %3109 }
0x1995   :  { %v3112_v8 = vadd.f32 %v3110_v62, %v3104_v61 }
0x1997   :  { %6878 = vtanh.f32 %v3112_v8 }
0x19a4   :  { %v6879_v63 = vpop.eup %6878 }
0x19a5   :  { %3115 = vrot.lane.b32.xlu1 %v6879_v63, %s7274_s7 }
0x1a17   :  { %v3116_v4 = vpop.permute.xlu1 %3115 }
0x1a18   :  { %v3118_v5 = vmul.f32 %v3116_v4, %v3103_v3 }
0x1a1a   :  { %3120 = vst.msk [vmem:[#allocation5 + $0x16] sm:$0x3] %vm1854_vm8, %v3118_v5  ;;  %6196 = vmatmul.mubr.msk.f32.vlgmr.msra.gmra.mxu0 %vm1742_vm9, %v3118_v5 }
0x1a1b   :  { %3373 = vmatpush1.msra.mxu0 %v7930_v38  ;;  %3420 = vmatprep.mubr.f32.mxu0 %v7281_v26 }
0x1a1c   :  { %3374 = vmatprep.subr.mxu0 %v7937_v39 }
0x1a1d   :  { %3375 = vmatpush1.msra.mxu0 %v7943_v40 }
0x1a1e   :  { %3376 = vmatprep.subr.mxu0 %v7949_v42 }
0x1a1f   :  { %3377 = vmatpush1.msra.mxu0 %v7955_v44 }
0x1a20   :  { %3378 = vmatprep.subr.mxu0 %v7961_v45 }
0x1a21   :  { %3379 = vmatpush1.msra.mxu0 %v7967_v46 }
0x1a22   :  { %3380 = vmatprep.subr.mxu0 %v7973_v47 }
0x1a23   :  { %3381 = vmatpush1.msra.mxu0 %v7979_v48 }
0x1a24   :  { %3382 = vmatprep.subr.mxu0 %v7985_v50 }
0x1a25   :  { %3383 = vmatpush1.msra.mxu0 %v7991_v51 }
0x1a26   :  { %3384 = vmatprep.subr.mxu0 %v7997_v41 }
0x1a27   :  { %3385 = vmatpush1.msra.mxu0 %v8003_v43 }
0x1a28   :  { %3386 = vmatprep.subr.mxu0 %v8009_v52 }
0x1a29   :  { %3387 = vmatpush1.msra.mxu0 %v8015_v53 }
0x1ada   :  { %v3192_v6 = vpop.f32.mrf.mxu0 }
0x1adc   :  { %v3194_v7 = vpop.f32.mrf.mxu0 }
0x1add   :  { %v3199_v23 = vcombine.low %v3192_v6, %v3194_v7 }
0x1adf   :  { %v3206_v24 = vrot.slane %v3199_v23, %v7722_v49 }
0x1ae1   :  { %v3208_v27 = vadd.f32 %v3206_v24, %v3122_v25 }
0x1ae3   :  { %6880 = vtanh.f32 %v3208_v27 }
0x1af0   :  { %v6881_v28 = vpop.eup %6880 }
0x1af1   :  { %3213 = vrot.lane.b32.xlu1 %v6881_v28, %s7274_s7  ;;  %v3210_v29 = vmul.f32 0.5, %v6881_v28  ;;  %v3220_v9 = vrot.slane %v6881_v28, 2  ;;  %v3467_v28 = vld [vmem:[#allocation4 + $0x3c] sm:$0xf] }
0x1af3   :  { %v3211_v30 = vadd.f32 0.5, %v3210_v29 }
0x1af5   :  { %v3222_v10 = vmul.f32 %v3220_v9, %v3211_v30  ;;  %v3219_v11 = vmul.f32 %v3211_v30, %v3112_v8 }
0x1af7   :  { %3224 = vrot.lane.b32.xlu0 %v3222_v10, %s7274_s7 }
0x1b63   :  { %v3214_v15 = vpop.permute.xlu1 %3213 }
0x1b64   :  { %v3215_v16 = vrot.slane %v3214_v15, 2 }
0x1b66   :  { %v3217_v17 = vmul.f32 0.5, %v3215_v16 }
0x1b68   :  { %v3218_v18 = vadd.f32 0.5, %v3217_v17  ;;  %v3785_v17 = vld [vmem:[#allocation25 + $0x38] sm:$0xff] }
0x1b69   :  { %v3225_v12 = vpop.permute.xlu0 %3224 }
0x1b6a   :  { %v3227_v13 = vadd.f32 %v3225_v12, %v3219_v11 }
0x1b6c   :  { %6882 = vtanh.f32 %v3227_v13 }
0x1b79   :  { %v6883_v14 = vpop.eup %6882 }
0x1b7a   :  { %3230 = vrot.lane.b32.xlu0 %v6883_v14, %s7274_s7 }
0x1bec   :  { %v3231_v19 = vpop.permute.xlu0 %3230 }
0x1bed   :  { %v3233_v20 = vmul.f32 %v3231_v19, %v3218_v18  ;;  %v3784_v18 = vld [vmem:[#allocation25 + $0x30] sm:$0xff]  ;;  %v3783_v19 = vld [vmem:[#allocation25 + $0x28] sm:$0xff] }
0x1bef   :  { %3235 = vst.msk [vmem:[#allocation5 + $0x18] sm:$0x3] %vm1854_vm8, %v3233_v20  ;;  %6197 = vmatmul.mubr.msk.f32.vlgmr.msra.gmra.mxu1 %vm1742_vm9, %v3233_v20  ;;  %v3782_v20 = vld [vmem:[#allocation25 + $0x20] sm:$0xff] }
0x1bf0   :  { %3488 = vmatpush1.msra.mxu1 %v7930_v38  ;;  %3535 = vmatprep.mubr.f32.mxu1 %v7281_v26 }
0x1bf1   :  { %3489 = vmatprep.subr.mxu1 %v7937_v39 }
0x1bf2   :  { %3490 = vmatpush1.msra.mxu1 %v7943_v40 }
0x1bf3   :  { %3491 = vmatprep.subr.mxu1 %v7949_v42 }
0x1bf4   :  { %3492 = vmatpush1.msra.mxu1 %v7955_v44  ;;  %v3237_v44 = vld [vmem:[#allocation4 + $0x34] sm:$0xf] }
0x1bf5   :  { %3493 = vmatprep.subr.mxu1 %v7961_v45 }
0x1bf6   :  { %3494 = vmatpush1.msra.mxu1 %v7967_v46 }
0x1bf7   :  { %3495 = vmatprep.subr.mxu1 %v7973_v47 }
0x1bf8   :  { %3496 = vmatpush1.msra.mxu1 %v7979_v48 }
0x1bf9   :  { %3497 = vmatprep.subr.mxu1 %v7985_v50 }
0x1bfa   :  { %3498 = vmatpush1.msra.mxu1 %v7991_v51 }
0x1bfb   :  { %3499 = vmatprep.subr.mxu1 %v7997_v41 }
0x1bfc   :  { %3500 = vmatpush1.msra.mxu1 %v8003_v43 }
0x1bfd   :  { %3501 = vmatprep.subr.mxu1 %v8009_v52 }
0x1bfe   :  { %3502 = vmatpush1.msra.mxu1 %v8015_v53 }
0x1bff   :  { %6547 = vmatprep.subr.mxu1 %v3785_v17 }
0x1caf   :  { %v3307_v38 = vpop.f32.mrf.mxu1 }
0x1cb1   :  { %v3309_v39 = vpop.f32.mrf.mxu1 }
0x1cb2   :  { %v3314_v40 = vcombine.low %v3307_v38, %v3309_v39  ;;  %v3781_v38 = vld [vmem:[#allocation25 + $0x18] sm:$0xff]  ;;  %v3780_v39 = vld [vmem:[#allocation25 + $0x10] sm:$0xff] }
0x1cb4   :  { %v3321_v42 = vrot.slane %v3314_v40, %v7722_v49 }
0x1cb6   :  { %v3323_v45 = vadd.f32 %v3321_v42, %v3237_v44 }
0x1cb8   :  { %6884 = vtanh.f32 %v3323_v45 }
0x1cc5   :  { %v6885_v46 = vpop.eup %6884 }
0x1cc6   :  { %3328 = vrot.lane.b32.xlu0 %v6885_v46, %s7274_s7  ;;  %v3325_v47 = vmul.f32 0.5, %v6885_v46  ;;  %v3335_v50 = vrot.slane %v6885_v46, 2 }
0x1cc8   :  { %v3326_v48 = vadd.f32 0.5, %v3325_v47 }
0x1cca   :  { %v3337_v51 = vmul.f32 %v3335_v50, %v3326_v48  ;;  %v3334_v41 = vmul.f32 %v3326_v48, %v3227_v13  ;;  %v3592_v50 = vld [vmem:[#allocation5 + $0x16] sm:$0x3] }
0x1ccc   :  { %3339 = vrot.lane.b32.xlu1 %v3337_v51, %s7274_s7  ;;  %v3588_v51 = vld [vmem:[#allocation5 + $0xe] sm:$0x3] }
0x1d38   :  { %v3329_v21 = vpop.permute.xlu0 %3328 }
0x1d39   :  { %v3330_v22 = vrot.slane %v3329_v21, 2 }
0x1d3b   :  { %v3332_v31 = vmul.f32 0.5, %v3330_v22  ;;  %v3586_v22 = vld [vmem:[#allocation5 + $0xa] sm:$0x3] }
0x1d3d   :  { %v3333_v32 = vadd.f32 0.5, %v3332_v31  ;;  %v3587_v31 = vld [vmem:[#allocation5 + $0xc] sm:$0x3] }
0x1d3e   :  { %v3340_v43 = vpop.permute.xlu1 %3339 }
0x1d3f   :  { %v3342_v52 = vadd.f32 %v3340_v43, %v3334_v41  ;;  %v3593_v41 = vld [vmem:[#allocation5 + $0x18] sm:$0x3]  ;;  %v3590_v43 = vld [vmem:[#allocation5 + $0x12] sm:$0x3] }
0x1d41   :  { %6886 = vtanh.f32 %v3342_v52 }
0x1d4e   :  { %v6887_v53 = vpop.eup %6886 }
0x1d4f   :  { %3345 = vrot.lane.b32.xlu1 %v6887_v53, %s7274_s7 }
0x1dc1   :  { %v3346_v33 = vpop.permute.xlu1 %3345 }
0x1dc2   :  { %v3348_v34 = vmul.f32 %v3346_v33, %v3333_v32  ;;  %v3584_v32 = vld [vmem:[#allocation5 + $0x6] sm:$0x3] }
0x1dc4   :  { %3350 = vst.msk [vmem:[#allocation5 + $0x1a] sm:$0x3] %vm1854_vm8, %v3348_v34  ;;  %6198 = vmatmul.mubr.msk.f32.vlgmr.msra.gmra.mxu0 %vm1742_vm9, %v3348_v34 }
0x1dc5   :  { %6541 = vmatprep.mubr.msk.f32.mxu0 %vm1277_vm7, %v6976_v35  ;;  %v3589_v35 = vld [vmem:[#allocation5 + $0x10] sm:$0x3] }
0x1dcb   :  { %v3594_v48 = vld [vmem:[#allocation5 + $0x1a] sm:$0x3] }
0x1dcc   :  { %v3664_v53 = vcombine.low %v3593_v41, %v3594_v48 }
0x1e84   :  { %v3422_v36 = vpop.f32.mrf.mxu0 }
0x1e86   :  { %v3424_v37 = vpop.f32.mrf.mxu0 }
0x1e87   :  { %v3429_v54 = vcombine.low %v3422_v36, %v3424_v37  ;;  %v3647_v37 = vcombine.low %v3589_v35, %v3590_v43 }
0x1e89   :  { %v3436_v55 = vrot.slane %v3429_v54, %v7722_v49  ;;  %v3631_v54 = vcombine.low %v3587_v31, %v3588_v51 }
0x1e8b   :  { %v3438_v57 = vadd.f32 %v3436_v55, %v3352_v56  ;;  %v3583_v55 = vld [vmem:[#allocation5 + $0x4] sm:$0x3]  ;;  %v3585_v56 = vld [vmem:[#allocation5 + $0x8] sm:$0x3] }
0x1e8d   :  { %6888 = vtanh.f32 %v3438_v57  ;;  %v3582_v57 = vld [vmem:[#allocation5 + $0x2] sm:$0x3] }
0x1e9a   :  { %v6889_v58 = vpop.eup %6888 }
0x1e9b   :  { %3443 = vrot.lane.b32.xlu1 %v6889_v58, %s7274_s7  ;;  %v3440_v59 = vmul.f32 0.5, %v6889_v58  ;;  %v3450_v61 = vrot.slane %v6889_v58, 2  ;;  %v3614_v58 = vcombine.low %v3583_v55, %v3584_v32 }
0x1e9d   :  { %v3441_v60 = vadd.f32 0.5, %v3440_v59  ;;  %v3672_v59 = vrot.slane %v3664_v53, %v7722_v49 }
0x1e9f   :  { %v3452_v62 = vmul.f32 %v3450_v61, %v3441_v60  ;;  %v3449_v8 = vmul.f32 %v3441_v60, %v3342_v52  ;;  %v3591_v52 = vld [vmem:[#allocation5 + $0x14] sm:$0x3] }
0x1ea0   :  { %v3648_v21 = vcombine.low %v3591_v52, %v3592_v50 }
0x1ea1   :  { %3454 = vrot.lane.b32.xlu0 %v3452_v62, %s7274_s7  ;;  %v3630_v62 = vcombine.low %v3585_v56, %v3586_v22 }
0x1ea2   :  { %v3662_v61 = vrot.slane %v3648_v21, %v7722_v49 }
0x1f0d   :  { %v3444_v2 = vpop.permute.xlu1 %3443 }
0x1f0e   :  { %v3445_v3 = vrot.slane %v3444_v2, 2 }
0x1f10   :  { %v3447_v4 = vmul.f32 0.5, %v3445_v3 }
0x1f12   :  { %v3448_v5 = vadd.f32 0.5, %v3447_v4  ;;  %v3638_v4 = vrot.slane %v3630_v62, %v7722_v49 }
0x1f13   :  { %v3455_v63 = vpop.permute.xlu0 %3454 }
0x1f14   :  { %v3457_v0 = vadd.f32 %v3455_v63, %v3449_v8  ;;  %v3581_v8 = vld [vmem:[#allocation5] sm:$0x3] }
0x1f15   :  { %v3613_v2 = vcombine.low %v3581_v8, %v3582_v57 }
0x1f16   :  { %6890 = vtanh.f32 %v3457_v0 }
0x1f23   :  { %v6891_v1 = vpop.eup %6890 }
0x1f24   :  { %3460 = vrot.lane.b32.xlu0 %v6891_v1, %s7274_s7  ;;  %v3645_v1 = vrot.slane %v3631_v54, %v7722_v49 }
0x1f96   :  { %v3461_v6 = vpop.permute.xlu0 %3460 }
0x1f97   :  { %v3463_v7 = vmul.f32 %v3461_v6, %v3448_v5  ;;  %v3628_v5 = vrot.slane %v3614_v58, %v7722_v49  ;;  %v3646_v6 = vcombine.low %v3638_v4, %v3645_v1 }
0x1f99   :  { %3465 = vst.msk [vmem:[#allocation5 + $0x1c] sm:$0x3] %vm1854_vm8, %v3463_v7  ;;  %6199 = vmatmul.mubr.msk.f32.vlgmr.msra.gmra.mxu1 %vm1742_vm9, %v3463_v7  ;;  %v3621_v7 = vrot.slane %v3613_v2, %v7722_v49 }
0x1f9a   :  { %6548 = vmatpush3.msra.mxu1 %v3785_v17  ;;  %v8147_v17 = vld [vmem:[#allocation27 + $0x10] sm:$0xff] }
0x1f9b   :  { %6549 = vmatprep.subr.mxu1 %v3784_v18 }
0x1f9c   :  { %6550 = vmatpush3.msra.mxu1 %v3784_v18  ;;  %v8151_v18 = vld [vmem:[#allocation27 + $0x8] sm:$0xff] }
0x1f9d   :  { %6551 = vmatprep.subr.mxu1 %v3783_v19 }
0x1f9e   :  { %6552 = vmatpush3.msra.mxu1 %v3783_v19  ;;  %v8156_v19 = vld [vmem:[#allocation27] sm:$0xff] }
0x1f9f   :  { %6553 = vmatprep.subr.mxu1 %v3782_v20 }
0x1fa0   :  { %6554 = vmatpush3.msra.mxu1 %v3782_v20  ;;  %v3595_v33 = vld [vmem:[#allocation5 + $0x1c] sm:$0x3] }
0x1fa1   :  { %6555 = vmatprep.subr.mxu1 %v3781_v38 }
0x1fa2   :  { %6556 = vmatpush3.msra.mxu1 %v3781_v38 }
0x1fa3   :  { %6557 = vmatprep.subr.mxu1 %v3780_v39 }
0x1fa4   :  { %6558 = vmatpush3.msra.mxu1 %v3780_v39 }
0x2059   :  { %v3537_v23 = vpop.f32.mrf.mxu1 }
0x205b   :  { %v3539_v24 = vpop.f32.mrf.mxu1 }
0x205c   :  { %v3544_v25 = vcombine.low %v3537_v23, %v3539_v24  ;;  %v3629_v23 = vcombine.low %v3621_v7, %v3628_v5  ;;  %v3777_v24 = vld [vmem:[#allocation24 + $0x38] sm:$0xff] }
0x205e   :  { %v3551_v27 = vrot.slane %v3544_v25, %v7722_v49  ;;  %v3776_v25 = vld [vmem:[#allocation24 + $0x30] sm:$0xff] }
0x2060   :  { %v3553_v29 = vadd.f32 %v3551_v27, %v3467_v28  ;;  %v6977_v27 = vld [vmem:[#allocation8 + $0x8] sm:$0xff]  ;;  %v6978_v28 = vld [vmem:[#allocation8 + $0x10] sm:$0xff] }
0x2062   :  { %6892 = vtanh.f32 %v3553_v29  ;;  %v3775_v29 = vld [vmem:[#allocation24 + $0x28] sm:$0xff] }
0x206f   :  { %v6893_v30 = vpop.eup %6892 }
0x2070   :  { %3558 = vrot.lane.b32.xlu0 %v6893_v30, %s7274_s7  ;;  %v3555_v9 = vmul.f32 0.5, %v6893_v30  ;;  %v3565_v11 = vrot.slane %v6893_v30, 2  ;;  %v3774_v30 = vld [vmem:[#allocation24 + $0x20] sm:$0xff] }
0x2072   :  { %v3556_v10 = vadd.f32 0.5, %v3555_v9  ;;  %v6979_v9 = vld [vmem:[#allocation8 + $0x18] sm:$0xff] }
0x2074   :  { %v3567_v12 = vmul.f32 %v3565_v11, %v3556_v10  ;;  %v3564_v13 = vmul.f32 %v3556_v10, %v3457_v0  ;;  %v3655_v0 = vrot.slane %v3647_v37, %v7722_v49  ;;  %v3773_v10 = vld [vmem:[#allocation24 + $0x18] sm:$0xff]  ;;  %v3772_v11 = vld [vmem:[#allocation24 + $0x10] sm:$0xff] }
0x2076   :  { %3569 = vrot.lane.b32.xlu1 %v3567_v12, %s7274_s7  ;;  %v3663_v3 = vcombine.low %v3655_v0, %v3662_v61  ;;  %v3771_v12 = vld [vmem:[#allocation24 + $0x8] sm:$0xff] }
0x20e2   :  { %v3559_v40 = vpop.permute.xlu0 %3558 }
0x20e3   :  { %v3560_v42 = vrot.slane %v3559_v40, 2 }
0x20e5   :  { %v3562_v44 = vmul.f32 0.5, %v3560_v42 }
0x20e7   :  { %v3563_v45 = vadd.f32 0.5, %v3562_v44 }
0x20e8   :  { %v3570_v14 = vpop.permute.xlu1 %3569 }
0x20e9   :  { %v3572_v15 = vadd.f32 %v3570_v14, %v3564_v13  ;;  %v3770_v13 = vld [vmem:[#allocation24] sm:$0xff]  ;;  %v3779_v14 = vld [vmem:[#allocation25 + $0x8] sm:$0xff] }
0x20ea   :  { %6559 = vmatprep.subr.mxu1 %v3779_v14 }
0x20eb   :  { %6894 = vtanh.f32 %v3572_v15  ;;  %6560 = vmatpush3.msra.mxu1 %v3779_v14  ;;  %v3778_v15 = vld [vmem:[#allocation25] sm:$0xff] }
0x20ec   :  { %6561 = vmatprep.subr.mxu1 %v3778_v15 }
0x20ed   :  { %6562 = vmatpush3.msra.mxu1 %v3778_v15 }
0x20ee   :  { %6591 = vmatprep.subr.mxu1 %v7281_v26 }
0x20f8   :  { %v6895_v16 = vpop.eup %6894 }
0x20f9   :  { %3575 = vrot.lane.b32.xlu1 %v6895_v16, %s7274_s7  ;;  %v8144_v16 = vld [vmem:[#allocation27 + $0x18] sm:$0xff] }
0x216b   :  { %v3576_v46 = vpop.permute.xlu1 %3575 }
0x216c   :  { %v3578_v47 = vmul.f32 %v3576_v46, %v3563_v45  ;;  %v6212_v46 = vld [vmem:[%s8496_s16] ss:$0 sm:$0xff]  ;;  %s7284_s16 = smov 32  }
0x216e   :  { %3580 = vst.msk [vmem:[#allocation5 + $0x1e] sm:$0x3] %vm1854_vm8, %v3578_v47 }
0x2175   :  { %v3596_v34 = vld [vmem:[#allocation5 + $0x1e] sm:$0x3] }
0x2176   :  { %v3665_v36 = vcombine.low %v3595_v33, %v3596_v34 }
0x2178   :  { %v3679_v60 = vrot.slane %v3665_v36, %v7722_v49 }
0x217a   :  { %v3680_v63 = vcombine.low %v3672_v59, %v3679_v60 }
0x217c   :  { %6533 = vmatprep.subr.mxu0 %v3680_v63 }
0x217d   :  { %6534 = vmatpush3.msra.mxu0 %v3680_v63 }
0x217e   :  { %6535 = vmatprep.subr.mxu0 %v3663_v3 }
0x217f   :  { %6536 = vmatpush3.msra.mxu0 %v3663_v3 }
0x2180   :  { %6537 = vmatprep.subr.mxu0 %v3646_v6 }
0x2181   :  { %6538 = vmatpush3.msra.mxu0 %v3646_v6 }
0x2182   :  { %6539 = vmatprep.subr.mxu0 %v3629_v23 }
0x2183   :  { %6540 = vmatpush3.msra.mxu0 %v3629_v23 }
0x2184   :  { %6542 = vmatmul.mubr.msk.f32.vlgmr.msra.gmra.mxu0 %vm1277_vm7, %v6977_v27  ;;  %6569 = vmatprep.subr.mxu0 %v3777_v24 }
0x2185   :  { %6570 = vmatpush3.msra.mxu0 %v3777_v24  ;;  %6544 = vmatprep.mubr.msk.f32.mxu0 %vm1277_vm7, %v6978_v28 }
0x2186   :  { %6571 = vmatprep.subr.mxu0 %v3776_v25 }
0x2187   :  { %6572 = vmatpush3.msra.mxu0 %v3776_v25 }
0x2188   :  { %6545 = vmatmul.mubr.msk.f32.gmra.mxu0 %vm1277_vm7, %v6979_v9  ;;  %6573 = vmatprep.subr.mxu0 %v3775_v29 }
0x2189   :  { %6574 = vmatpush3.msra.mxu0 %v3775_v29  ;;  %6585 = vmatprep.mubr.msk.f32.mxu0 %vm1742_vm9, %v3629_v23 }
0x218a   :  { %6575 = vmatprep.subr.mxu0 %v3774_v30 }
0x218b   :  { %6576 = vmatpush3.msra.mxu0 %v3774_v30 }
0x218c   :  { %6577 = vmatprep.subr.mxu0 %v3773_v10 }
0x218d   :  { %6578 = vmatpush3.msra.mxu0 %v3773_v10 }
0x218e   :  { %6579 = vmatprep.subr.mxu0 %v3772_v11 }
0x218f   :  { %6580 = vmatpush3.msra.mxu0 %v3772_v11 }
0x2190   :  { %6581 = vmatprep.subr.mxu0 %v3771_v12 }
0x2191   :  { %6582 = vmatpush3.msra.mxu0 %v3771_v12 }
0x2192   :  { %6583 = vmatprep.subr.mxu0 %v3770_v13 }
0x2193   :  { %6584 = vmatpush3.msra.mxu0 %v3770_v13 }
0x2194   :  { %6586 = vmatmul.mubr.msk.f32.vlgmr.msra.gmra.mxu0 %vm1742_vm9, %v3646_v6  ;;  %6602 = vmatprep.subr.mxu0 %v7281_v26 }
0x2195   :  { %6588 = vmatprep.mubr.msk.f32.mxu0 %vm1742_vm9, %v3663_v3  ;;  %6603 = vmatpush3.msra.mxu0 %v8144_v16 }
0x2196   :  { %6604 = vmatprep.subr.mxu0 %v7281_v26 }
0x2197   :  { %6605 = vmatpush3.msra.mxu0 %v8147_v17 }
0x2198   :  { %6589 = vmatmul.mubr.msk.f32.gmra.mxu0 %vm1742_vm9, %v3680_v63  ;;  %6606 = vmatprep.subr.mxu0 %v7281_v26 }
0x2199   :  { %6607 = vmatpush3.msra.mxu0 %v8151_v18  ;;  %6610 = vmatprep.mubr.msk.f32.mxu0 %vm7283_vm10, %v7281_v26 }
0x219a   :  { %6608 = vmatprep.subr.mxu0 %v7281_v26 }
0x219b   :  { %6609 = vmatpush3.msra.mxu0 %v8156_v19 }
0x219c   :  { %6624 = vmatprep.subr.mxu0 %v7281_v26 }
0x2244   :  { %v6543_v20 = vpop.f32.mrf.mxu0 }
0x2246   :  { %v3751_v38 = vpop.f32.mrf.mxu0 }
0x2247   :  { %6563 = vmatprep.mubr.msk.f32.mxu1 %vm1742_vm9, %v3751_v38 }
0x2248   :  { %v6546_v39 = vpop.f32.mrf.mxu0  ;;  %6564 = vmatmul.mubr.msk.f32.vlgmr.msra.gmra.mxu1 %vm1742_vm9, %v6543_v20 }
0x2249   :  { %6592 = vmatpush3.msra.mxu1 %v8144_v16 }
0x224a   :  { %v3761_v40 = vpop.f32.mrf.mxu0  ;;  %6593 = vmatprep.subr.mxu1 %v7281_v26 }
0x224b   :  { %6566 = vmatprep.mubr.msk.f32.mxu1 %vm1742_vm9, %v3761_v40  ;;  %6594 = vmatpush3.msra.mxu1 %v8147_v17 }
0x224c   :  { %6567 = vmatmul.mubr.msk.f32.gmra.mxu1 %vm1742_vm9, %v6546_v39  ;;  %6595 = vmatprep.subr.mxu1 %v7281_v26 }
0x224d   :  { %6596 = vmatpush3.msra.mxu1 %v8151_v18  ;;  %6599 = vmatprep.mubr.msk.f32.mxu1 %vm7283_vm10, %v7281_v26 }
0x224e   :  { %6597 = vmatprep.subr.mxu1 %v7281_v26 }
0x224f   :  { %6598 = vmatpush3.msra.mxu1 %v8156_v19 }
0x2250   :  { %6600 = vmatmul.mubr.f32.vlgmr.msra.gmra.mxu1 %v7281_v26  ;;  %6613 = vmatprep.subr.mxu1 %v7281_v26 }
0x2251   :  { %6614 = vmatpush3.msra.mxu1 %v8144_v16  ;;  %6621 = vmatprep.mubr.msk.f32.mxu1 %vm7283_vm10, %v7281_v26 }
0x2252   :  { %6615 = vmatprep.subr.mxu1 %v7281_v26 }
0x2253   :  { %6616 = vmatpush3.msra.mxu1 %v8147_v17 }
0x2254   :  { %6617 = vmatprep.subr.mxu1 %v7281_v26  ;;  %v6587_v42 = vpop.f32.mrf.mxu0 }
0x2255   :  { %6618 = vmatpush3.msra.mxu1 %v8151_v18 }
0x2256   :  { %6619 = vmatprep.subr.mxu1 %v7281_v26  ;;  %v3957_v44 = vpop.f32.mrf.mxu0 }
0x2257   :  { %6620 = vmatpush3.msra.mxu1 %v8156_v19 }
0x2258   :  { %6635 = vmatprep.subr.mxu1 %v7281_v26  ;;  %v6590_v50 = vpop.f32.mrf.mxu0 }
0x225a   :  { %v3967_v32 = vpop.f32.mrf.mxu0 }
0x2308   :  { %v6565_v45 = vpop.f32.mrf.mxu1 }
0x2309   :  { %v3963_v47 = vadd.f32 %v6587_v42, %v6565_v45 }
0x230a   :  { %v3864_v48 = vpop.f32.mrf.mxu1 }
0x230b   :  { %v3984_v51 = vadd.f32 %v6212_v46, %v3963_v47  ;;  %v3958_v41 = vadd.f32 %v3957_v44, %v3864_v48 }
0x230c   :  { %v6568_v43 = vpop.f32.mrf.mxu1 }
0x230d   :  { %v4008_v52 = vcombine.high %v3984_v51, %v3984_v51  ;;  %v4015_v53 = vrot.slane %v3984_v51, %v7722_v49  ;;  %6215 = vst.sshfl [vmem:[#allocation6 + $0x8] sm:$0x3 pattern:$0x76325410] %v3984_v51  ;;  %v3983_v21 = vadd.f32 %v6212_v46, %v3958_v41  ;;  %v3973_v22 = vadd.f32 %v6590_v50, %v6568_v43 }
0x230e   :  { %v3874_v31 = vpop.f32.mrf.mxu1 }
0x230f   :  { %v4022_v33 = vrot.slane %v4008_v52, %v7722_v49  ;;  %v4023_v34 = vcombine.high %v4015_v53, %v4015_v53  ;;  %6216 = vst.sshfl [vmem:[#allocation6 + $0xc] sm:$0x3 pattern:$0x76325410] %v4008_v52  ;;  %v3991_v35 = vcombine.high %v3983_v21, %v3983_v21  ;;  %v3998_v36 = vrot.slane %v3983_v21, %v7722_v49 }
0x2310   :  { %6213 = vst.sshfl [vmem:[#allocation6] sm:$0x3 pattern:$0x76325410] %v3983_v21  ;;  %v3986_v37 = vadd.f32 %v6212_v46, %v3973_v22  ;;  %v3968_v54 = vadd.f32 %v3967_v32, %v3874_v31  ;;  %v4164_v55 = vpop.f32.mrf.mxu1 }
0x2311   :  { %v4024_v56 = vcombine.high %v4022_v33, %v4022_v33  ;;  %4080 = vst [vmem:[#allocation6 + $0xa] sm:$0x3] %v4023_v34  ;;  %v4005_v57 = vrot.slane %v3991_v35, %v7722_v49  ;;  %v4006_v58 = vcombine.high %v3998_v36, %v3998_v36  ;;  %6214 = vst.sshfl [vmem:[#allocation6 + $0x4] sm:$0x3 pattern:$0x76325410] %v3991_v35 }
0x2312   :  { %v4042_v59 = vcombine.high %v3986_v37, %v3986_v37  ;;  %v4049_v60 = vrot.slane %v3986_v37, %v7722_v49  ;;  %6219 = vst.sshfl [vmem:[#allocation6 + $0x18] sm:$0x3 pattern:$0x76325410] %v3986_v37  ;;  %v3985_v61 = vadd.f32 %v6212_v46, %v3968_v54  ;;  %v6601_v62 = vpop.f32.mrf.mxu1 }
0x2313   :  { %4082 = vst [vmem:[#allocation6 + $0xe] sm:$0x3] %v4024_v56  ;;  %v4007_v8 = vcombine.high %v4005_v57, %v4005_v57  ;;  %4076 = vst [vmem:[#allocation6 + $0x2] sm:$0x3] %v4006_v58 }
0x2314   :  { %v4056_v63 = vrot.slane %v4042_v59, %v7722_v49  ;;  %v4057_v0 = vcombine.high %v4049_v60, %v4049_v60  ;;  %6220 = vst.sshfl [vmem:[#allocation6 + $0x1c] sm:$0x3 pattern:$0x76325410] %v4042_v59  ;;  %v4025_v1 = vcombine.high %v3985_v61, %v3985_v61  ;;  %v4032_v2 = vrot.slane %v3985_v61, %v7722_v49 }
0x2315   :  { %6217 = vst.sshfl [vmem:[#allocation6 + $0x10] sm:$0x3 pattern:$0x76325410] %v3985_v61  ;;  %4078 = vst [vmem:[#allocation6 + $0x6] sm:$0x3] %v4007_v8 }
0x2316   :  { %v4058_v3 = vcombine.high %v4056_v63, %v4056_v63  ;;  %4088 = vst [vmem:[#allocation6 + $0x1a] sm:$0x3] %v4057_v0  ;;  %v4039_v4 = vrot.slane %v4025_v1, %v7722_v49  ;;  %v4040_v5 = vcombine.high %v4032_v2, %v4032_v2  ;;  %6218 = vst.sshfl [vmem:[#allocation6 + $0x14] sm:$0x3 pattern:$0x76325410] %v4025_v1 }
0x2317   :  { %v4095_v6 = vld [vmem:[#allocation6] sm:$0x3] }
0x2318   :  { %v4168_v7 = vadd.f32 %v4164_v55, %v4095_v6  ;;  %4090 = vst [vmem:[#allocation6 + $0x1e] sm:$0x3] %v4058_v3  ;;  %v4041_v23 = vcombine.high %v4039_v4, %v4039_v4  ;;  %4084 = vst [vmem:[#allocation6 + $0x12] sm:$0x3] %v4040_v5  ;;  %v4297_v53 = vld [vmem:[#allocation6 + $0x4] sm:$0x3] }
0x231a   :  { %6896 = vtanh.f32 %v4168_v7  ;;  %4086 = vst [vmem:[#allocation6 + $0x16] sm:$0x3] %v4041_v23  ;;  %v4196_v15 = vld [vmem:[#allocation6 + $0x2] sm:$0x3] }
0x231c   :  { %v4398_v60 = vld [vmem:[#allocation6 + $0x6] sm:$0x3] }
0x2327   :  { %v6897_v24 = vpop.eup %6896 }
0x2328   :  { %4174 = vrot.lane.b32.xlu0 %v6897_v24, %s7274_s7  ;;  %v4170_v25 = vmul.f32 0.5, %v6897_v24 }
0x232a   :  { %v4171_v27 = vadd.f32 0.5, %v4170_v25 }
0x232c   :  { %v4172_v30 = vmul.f32 0.0, %v4171_v27 }
0x239a   :  { %v4175_v28 = vpop.permute.xlu0 %4174 }
0x239b   :  { %v4177_v29 = vmul.f32 %v4175_v28, %v4171_v27 }
0x239d   :  { %4179 = vrot.lane.b32.xlu1 %v4177_v29, %s7284_s16 }
0x240f   :  { %v4180_v9 = vpop.permute.xlu1 %4179 }
0x2410   :  { %v4182_v10 = vadd.f32 %v4180_v9, %v4172_v30 }
0x2412   :  { %6898 = vtanh.f32 %v4182_v10 }
0x241f   :  { %v6899_v11 = vpop.eup %6898 }
0x2420   :  { %4185 = vrot.lane.b32.xlu0 %v6899_v11, %s7274_s7 }
0x2492   :  { %v4186_v12 = vpop.permute.xlu0 %4185 }
0x2493   :  { %v4188_v13 = vmul.f32 %v4186_v12, %v4171_v27  ;;  %v4499_v27 = vld [vmem:[#allocation6 + $0x8] sm:$0x3] }
0x2495   :  { %4190 = vrot.lane.b32.xlu1 %v4188_v13, %s7284_s16 }
0x2507   :  { %v4191_v14 = vpop.permute.xlu1 %4190 }
0x2508   :  { %4194 = vst.msk [vmem:[#allocation7] sm:$0x3] %vm4193_vm11, %v4191_v14  ;;  %6611 = vmatmul.mubr.msk.f32.vlgmr.msra.gmra.mxu0 %vm1277_vm7, %v4191_v14 }
0x2509   :  { %6625 = vmatpush3.msra.mxu0 %v8144_v16  ;;  %6632 = vmatprep.mubr.msk.f32.mxu0 %vm7283_vm10, %v7281_v26 }
0x250a   :  { %6626 = vmatprep.subr.mxu0 %v7281_v26 }
0x250b   :  { %6627 = vmatpush3.msra.mxu0 %v8147_v17 }
0x250c   :  { %6628 = vmatprep.subr.mxu0 %v7281_v26 }
0x250d   :  { %6629 = vmatpush3.msra.mxu0 %v8151_v18 }
0x250e   :  { %6630 = vmatprep.subr.mxu0 %v7281_v26 }
0x250f   :  { %6631 = vmatpush3.msra.mxu0 %v8156_v19 }
0x2510   :  { %6646 = vmatprep.subr.mxu0 %v7281_v26 }
0x25c8   :  { %v4265_v20 = vpop.f32.mrf.mxu0 }
0x25c9   :  { %v4269_v38 = vadd.f32 %v4265_v20, %v4196_v15 }
0x25ca   :  { %v6612_v39 = vpop.f32.mrf.mxu0 }
0x25cb   :  { %6900 = vtanh.f32 %v4269_v38 }
0x25d8   :  { %v6901_v40 = vpop.eup %6900 }
0x25d9   :  { %4275 = vrot.lane.b32.xlu0 %v6901_v40, %s7274_s7  ;;  %v4271_v42 = vmul.f32 0.5, %v6901_v40 }
0x25db   :  { %v4272_v44 = vadd.f32 0.5, %v4271_v42 }
0x25dd   :  { %v4273_v47 = vmul.f32 %v4272_v44, %v4182_v10 }
0x264b   :  { %v4276_v45 = vpop.permute.xlu0 %4275 }
0x264c   :  { %v4278_v46 = vmul.f32 %v4276_v45, %v4272_v44 }
0x264e   :  { %4280 = vrot.lane.b32.xlu1 %v4278_v46, %s7284_s16 }
0x26c0   :  { %v4281_v48 = vpop.permute.xlu1 %4280 }
0x26c1   :  { %v4283_v50 = vadd.f32 %v4281_v48, %v4273_v47 }
0x26c3   :  { %6902 = vtanh.f32 %v4283_v50 }
0x26d0   :  { %v6903_v51 = vpop.eup %6902 }
0x26d1   :  { %4286 = vrot.lane.b32.xlu0 %v6903_v51, %s7274_s7 }
0x2743   :  { %v4287_v41 = vpop.permute.xlu0 %4286 }
0x2744   :  { %v4289_v43 = vmul.f32 %v4287_v41, %v4272_v44  ;;  %v4600_v44 = vld [vmem:[#allocation6 + $0xa] sm:$0x3] }
0x2746   :  { %4291 = vrot.lane.b32.xlu1 %v4289_v43, %s7284_s16 }
0x27b8   :  { %v4292_v52 = vpop.permute.xlu1 %4291 }
0x27b9   :  { %4295 = vst.msk [vmem:[#allocation7 + $0x2] sm:$0x3] %vm4193_vm11, %v4292_v52  ;;  %6622 = vmatmul.mubr.msk.f32.vlgmr.msra.gmra.mxu1 %vm1277_vm7, %v4292_v52 }
0x27ba   :  { %6636 = vmatpush3.msra.mxu1 %v8144_v16  ;;  %6643 = vmatprep.mubr.msk.f32.mxu1 %vm7283_vm10, %v7281_v26 }
0x27bb   :  { %6637 = vmatprep.subr.mxu1 %v7281_v26 }
0x27bc   :  { %6638 = vmatpush3.msra.mxu1 %v8147_v17 }
0x27bd   :  { %6639 = vmatprep.subr.mxu1 %v7281_v26 }
0x27be   :  { %6640 = vmatpush3.msra.mxu1 %v8151_v18 }
0x27bf   :  { %6641 = vmatprep.subr.mxu1 %v7281_v26 }
0x27c0   :  { %6642 = vmatpush3.msra.mxu1 %v8156_v19 }
0x27c1   :  { %6657 = vmatprep.subr.mxu1 %v7281_v26 }
0x2879   :  { %v4366_v21 = vpop.f32.mrf.mxu1 }
0x287a   :  { %v4370_v22 = vadd.f32 %v4366_v21, %v4297_v53 }
0x287b   :  { %v6623_v31 = vpop.f32.mrf.mxu1 }
0x287c   :  { %6904 = vtanh.f32 %v4370_v22 }
0x2889   :  { %v6905_v32 = vpop.eup %6904 }
0x288a   :  { %4376 = vrot.lane.b32.xlu0 %v6905_v32, %s7274_s7  ;;  %v4372_v33 = vmul.f32 0.5, %v6905_v32 }
0x288c   :  { %v4373_v34 = vadd.f32 0.5, %v4372_v33 }
0x288e   :  { %v4374_v37 = vmul.f32 %v4373_v34, %v4283_v50 }
0x28fc   :  { %v4377_v35 = vpop.permute.xlu0 %4376 }
0x28fd   :  { %v4379_v36 = vmul.f32 %v4377_v35, %v4373_v34 }
0x28ff   :  { %4381 = vrot.lane.b32.xlu1 %v4379_v36, %s7284_s16 }
0x2971   :  { %v4382_v54 = vpop.permute.xlu1 %4381 }
0x2972   :  { %v4384_v55 = vadd.f32 %v4382_v54, %v4374_v37 }
0x2974   :  { %6906 = vtanh.f32 %v4384_v55 }
0x2981   :  { %v6907_v56 = vpop.eup %6906 }
0x2982   :  { %4387 = vrot.lane.b32.xlu0 %v6907_v56, %s7274_s7 }
0x29f4   :  { %v4388_v57 = vpop.permute.xlu0 %4387 }
0x29f5   :  { %v4390_v58 = vmul.f32 %v4388_v57, %v4373_v34  ;;  %v4701_v34 = vld [vmem:[#allocation6 + $0xc] sm:$0x3] }
0x29f7   :  { %4392 = vrot.lane.b32.xlu1 %v4390_v58, %s7284_s16 }
0x2a69   :  { %v4393_v59 = vpop.permute.xlu1 %4392 }
0x2a6a   :  { %4396 = vst.msk [vmem:[#allocation7 + $0x4] sm:$0x3] %vm4193_vm11, %v4393_v59  ;;  %6633 = vmatmul.mubr.msk.f32.vlgmr.msra.gmra.mxu0 %vm1277_vm7, %v4393_v59 }
0x2a6b   :  { %6647 = vmatpush3.msra.mxu0 %v8144_v16  ;;  %6654 = vmatprep.mubr.msk.f32.mxu0 %vm7283_vm10, %v7281_v26 }
0x2a6c   :  { %6648 = vmatprep.subr.mxu0 %v7281_v26 }
0x2a6d   :  { %6649 = vmatpush3.msra.mxu0 %v8147_v17 }
0x2a6e   :  { %6650 = vmatprep.subr.mxu0 %v7281_v26 }
0x2a6f   :  { %6651 = vmatpush3.msra.mxu0 %v8151_v18 }
0x2a70   :  { %6652 = vmatprep.subr.mxu0 %v7281_v26 }
0x2a71   :  { %6653 = vmatpush3.msra.mxu0 %v8156_v19 }
0x2a72   :  { %6668 = vmatprep.subr.mxu0 %v7281_v26 }
0x2b2a   :  { %v4467_v61 = vpop.f32.mrf.mxu0 }
0x2b2b   :  { %v4471_v62 = vadd.f32 %v4467_v61, %v4398_v60 }
0x2b2c   :  { %v6634_v8 = vpop.f32.mrf.mxu0 }
0x2b2d   :  { %6908 = vtanh.f32 %v4471_v62 }
0x2b3a   :  { %v6909_v63 = vpop.eup %6908 }
0x2b3b   :  { %4477 = vrot.lane.b32.xlu0 %v6909_v63, %s7274_s7  ;;  %v4473_v0 = vmul.f32 0.5, %v6909_v63 }
0x2b3d   :  { %v4474_v1 = vadd.f32 0.5, %v4473_v0 }
0x2b3f   :  { %v4475_v4 = vmul.f32 %v4474_v1, %v4384_v55 }
0x2bad   :  { %v4478_v2 = vpop.permute.xlu0 %4477 }
0x2bae   :  { %v4480_v3 = vmul.f32 %v4478_v2, %v4474_v1 }
0x2bb0   :  { %4482 = vrot.lane.b32.xlu1 %v4480_v3, %s7284_s16 }
0x2c22   :  { %v4483_v5 = vpop.permute.xlu1 %4482 }
0x2c23   :  { %v4485_v6 = vadd.f32 %v4483_v5, %v4475_v4 }
0x2c25   :  { %6910 = vtanh.f32 %v4485_v6 }
0x2c32   :  { %v6911_v7 = vpop.eup %6910 }
0x2c33   :  { %4488 = vrot.lane.b32.xlu0 %v6911_v7, %s7274_s7 }
0x2ca5   :  { %v4489_v23 = vpop.permute.xlu0 %4488 }
0x2ca6   :  { %v4491_v24 = vmul.f32 %v4489_v23, %v4474_v1  ;;  %v4802_v1 = vld [vmem:[#allocation6 + $0xe] sm:$0x3] }
0x2ca8   :  { %4493 = vrot.lane.b32.xlu1 %v4491_v24, %s7284_s16 }
0x2d1a   :  { %v4494_v25 = vpop.permute.xlu1 %4493 }
0x2d1b   :  { %4497 = vst.msk [vmem:[#allocation7 + $0x6] sm:$0x3] %vm4193_vm11, %v4494_v25  ;;  %6644 = vmatmul.mubr.msk.f32.vlgmr.msra.gmra.mxu1 %vm1277_vm7, %v4494_v25 }
0x2d1c   :  { %6658 = vmatpush3.msra.mxu1 %v8144_v16  ;;  %6665 = vmatprep.mubr.msk.f32.mxu1 %vm7283_vm10, %v7281_v26 }
0x2d1d   :  { %6659 = vmatprep.subr.mxu1 %v7281_v26 }
0x2d1e   :  { %6660 = vmatpush3.msra.mxu1 %v8147_v17 }
0x2d1f   :  { %6661 = vmatprep.subr.mxu1 %v7281_v26 }
0x2d20   :  { %6662 = vmatpush3.msra.mxu1 %v8151_v18 }
0x2d21   :  { %6663 = vmatprep.subr.mxu1 %v7281_v26 }
0x2d22   :  { %6664 = vmatpush3.msra.mxu1 %v8156_v19 }
0x2d23   :  { %6679 = vmatprep.subr.mxu1 %v7281_v26 }
0x2ddb   :  { %v4568_v28 = vpop.f32.mrf.mxu1 }
0x2ddc   :  { %v4572_v29 = vadd.f32 %v4568_v28, %v4499_v27 }
0x2ddd   :  { %v6645_v30 = vpop.f32.mrf.mxu1 }
0x2dde   :  { %6912 = vtanh.f32 %v4572_v29 }
0x2deb   :  { %v6913_v9 = vpop.eup %6912 }
0x2dec   :  { %4578 = vrot.lane.b32.xlu0 %v6913_v9, %s7274_s7  ;;  %v4574_v10 = vmul.f32 0.5, %v6913_v9 }
0x2dee   :  { %v4575_v11 = vadd.f32 0.5, %v4574_v10 }
0x2df0   :  { %v4576_v14 = vmul.f32 %v4575_v11, %v4485_v6 }
0x2e5e   :  { %v4579_v12 = vpop.permute.xlu0 %4578 }
0x2e5f   :  { %v4581_v13 = vmul.f32 %v4579_v12, %v4575_v11 }
0x2e61   :  { %4583 = vrot.lane.b32.xlu1 %v4581_v13, %s7284_s16 }
0x2ed3   :  { %v4584_v15 = vpop.permute.xlu1 %4583 }
0x2ed4   :  { %v4586_v20 = vadd.f32 %v4584_v15, %v4576_v14 }
0x2ed6   :  { %6914 = vtanh.f32 %v4586_v20 }
0x2ee3   :  { %v6915_v38 = vpop.eup %6914 }
0x2ee4   :  { %4589 = vrot.lane.b32.xlu0 %v6915_v38, %s7274_s7 }
0x2f56   :  { %v4590_v39 = vpop.permute.xlu0 %4589 }
0x2f57   :  { %v4592_v40 = vmul.f32 %v4590_v39, %v4575_v11  ;;  %v4903_v11 = vld [vmem:[#allocation6 + $0x10] sm:$0x3] }
0x2f59   :  { %4594 = vrot.lane.b32.xlu1 %v4592_v40, %s7284_s16 }
0x2fcb   :  { %v4595_v42 = vpop.permute.xlu1 %4594 }
0x2fcc   :  { %4598 = vst.msk [vmem:[#allocation7 + $0x8] sm:$0x3] %vm4193_vm11, %v4595_v42  ;;  %6655 = vmatmul.mubr.msk.f32.vlgmr.msra.gmra.mxu0 %vm1277_vm7, %v4595_v42 }
0x2fcd   :  { %6669 = vmatpush3.msra.mxu0 %v8144_v16  ;;  %6676 = vmatprep.mubr.msk.f32.mxu0 %vm7283_vm10, %v7281_v26 }
0x2fce   :  { %6670 = vmatprep.subr.mxu0 %v7281_v26 }
0x2fcf   :  { %6671 = vmatpush3.msra.mxu0 %v8147_v17 }
0x2fd0   :  { %6672 = vmatprep.subr.mxu0 %v7281_v26 }
0x2fd1   :  { %6673 = vmatpush3.msra.mxu0 %v8151_v18 }
0x2fd2   :  { %6674 = vmatprep.subr.mxu0 %v7281_v26 }
0x2fd3   :  { %6675 = vmatpush3.msra.mxu0 %v8156_v19 }
0x2fd4   :  { %6690 = vmatprep.subr.mxu0 %v7281_v26 }
0x308c   :  { %v4669_v45 = vpop.f32.mrf.mxu0 }
0x308d   :  { %v4673_v46 = vadd.f32 %v4669_v45, %v4600_v44 }
0x308e   :  { %v6656_v47 = vpop.f32.mrf.mxu0 }
0x308f   :  { %6916 = vtanh.f32 %v4673_v46 }
0x309c   :  { %v6917_v48 = vpop.eup %6916 }
0x309d   :  { %4679 = vrot.lane.b32.xlu0 %v6917_v48, %s7274_s7  ;;  %v4675_v50 = vmul.f32 0.5, %v6917_v48 }
0x309f   :  { %v4676_v51 = vadd.f32 0.5, %v4675_v50 }
0x30a1   :  { %v4677_v52 = vmul.f32 %v4676_v51, %v4586_v20 }
0x310f   :  { %v4680_v41 = vpop.permute.xlu0 %4679 }
0x3110   :  { %v4682_v43 = vmul.f32 %v4680_v41, %v4676_v51 }
0x3112   :  { %4684 = vrot.lane.b32.xlu1 %v4682_v43, %s7284_s16 }
0x3184   :  { %v4685_v53 = vpop.permute.xlu1 %4684 }
0x3185   :  { %v4687_v21 = vadd.f32 %v4685_v53, %v4677_v52 }
0x3187   :  { %6918 = vtanh.f32 %v4687_v21 }
0x3194   :  { %v6919_v22 = vpop.eup %6918 }
0x3195   :  { %4690 = vrot.lane.b32.xlu0 %v6919_v22, %s7274_s7 }
0x3207   :  { %v4691_v31 = vpop.permute.xlu0 %4690 }
0x3208   :  { %v4693_v32 = vmul.f32 %v4691_v31, %v4676_v51  ;;  %v5004_v51 = vld [vmem:[#allocation6 + $0x12] sm:$0x3] }
0x320a   :  { %4695 = vrot.lane.b32.xlu1 %v4693_v32, %s7284_s16 }
0x327c   :  { %v4696_v33 = vpop.permute.xlu1 %4695 }
0x327d   :  { %4699 = vst.msk [vmem:[#allocation7 + $0xa] sm:$0x3] %vm4193_vm11, %v4696_v33  ;;  %6666 = vmatmul.mubr.msk.f32.vlgmr.msra.gmra.mxu1 %vm1277_vm7, %v4696_v33 }
0x327e   :  { %6680 = vmatpush3.msra.mxu1 %v8144_v16  ;;  %6687 = vmatprep.mubr.msk.f32.mxu1 %vm7283_vm10, %v7281_v26 }
0x327f   :  { %6681 = vmatprep.subr.mxu1 %v7281_v26 }
0x3280   :  { %6682 = vmatpush3.msra.mxu1 %v8147_v17 }
0x3281   :  { %6683 = vmatprep.subr.mxu1 %v7281_v26 }
0x3282   :  { %6684 = vmatpush3.msra.mxu1 %v8151_v18 }
0x3283   :  { %6685 = vmatprep.subr.mxu1 %v7281_v26 }
0x3284   :  { %6686 = vmatpush3.msra.mxu1 %v8156_v19 }
0x3285   :  { %6701 = vmatprep.subr.mxu1 %v7281_v26 }
0x333d   :  { %v4770_v35 = vpop.f32.mrf.mxu1 }
0x333e   :  { %v4774_v36 = vadd.f32 %v4770_v35, %v4701_v34 }
0x333f   :  { %v6667_v37 = vpop.f32.mrf.mxu1 }
0x3340   :  { %6920 = vtanh.f32 %v4774_v36 }
0x334d   :  { %v6921_v54 = vpop.eup %6920 }
0x334e   :  { %4780 = vrot.lane.b32.xlu0 %v6921_v54, %s7274_s7  ;;  %v4776_v55 = vmul.f32 0.5, %v6921_v54 }
0x3350   :  { %v4777_v56 = vadd.f32 0.5, %v4776_v55 }
0x3352   :  { %v4778_v59 = vmul.f32 %v4777_v56, %v4687_v21 }
0x33c0   :  { %v4781_v57 = vpop.permute.xlu0 %4780 }
0x33c1   :  { %v4783_v58 = vmul.f32 %v4781_v57, %v4777_v56 }
0x33c3   :  { %4785 = vrot.lane.b32.xlu1 %v4783_v58, %s7284_s16 }
0x3435   :  { %v4786_v60 = vpop.permute.xlu1 %4785 }
0x3436   :  { %v4788_v61 = vadd.f32 %v4786_v60, %v4778_v59 }
0x3438   :  { %6922 = vtanh.f32 %v4788_v61 }
0x3445   :  { %v6923_v62 = vpop.eup %6922 }
0x3446   :  { %4791 = vrot.lane.b32.xlu0 %v6923_v62, %s7274_s7 }
0x34b8   :  { %v4792_v8 = vpop.permute.xlu0 %4791 }
0x34b9   :  { %v4794_v63 = vmul.f32 %v4792_v8, %v4777_v56  ;;  %v5105_v56 = vld [vmem:[#allocation6 + $0x14] sm:$0x3] }
0x34bb   :  { %4796 = vrot.lane.b32.xlu1 %v4794_v63, %s7284_s16 }
0x352d   :  { %v4797_v0 = vpop.permute.xlu1 %4796 }
0x352e   :  { %4800 = vst.msk [vmem:[#allocation7 + $0xc] sm:$0x3] %vm4193_vm11, %v4797_v0  ;;  %6677 = vmatmul.mubr.msk.f32.vlgmr.msra.gmra.mxu0 %vm1277_vm7, %v4797_v0 }
0x352f   :  { %6691 = vmatpush3.msra.mxu0 %v8144_v16  ;;  %6698 = vmatprep.mubr.msk.f32.mxu0 %vm7283_vm10, %v7281_v26 }
0x3530   :  { %6692 = vmatprep.subr.mxu0 %v7281_v26 }
0x3531   :  { %6693 = vmatpush3.msra.mxu0 %v8147_v17 }
0x3532   :  { %6694 = vmatprep.subr.mxu0 %v7281_v26 }
0x3533   :  { %6695 = vmatpush3.msra.mxu0 %v8151_v18 }
0x3534   :  { %6696 = vmatprep.subr.mxu0 %v7281_v26 }
0x3535   :  { %6697 = vmatpush3.msra.mxu0 %v8156_v19 }
0x3536   :  { %6712 = vmatprep.subr.mxu0 %v7281_v26 }
0x35ee   :  { %v4871_v2 = vpop.f32.mrf.mxu0 }
0x35ef   :  { %v4875_v3 = vadd.f32 %v4871_v2, %v4802_v1 }
0x35f0   :  { %v6678_v4 = vpop.f32.mrf.mxu0 }
0x35f1   :  { %6924 = vtanh.f32 %v4875_v3 }
0x35fe   :  { %v6925_v5 = vpop.eup %6924 }
0x35ff   :  { %4881 = vrot.lane.b32.xlu0 %v6925_v5, %s7274_s7  ;;  %v4877_v6 = vmul.f32 0.5, %v6925_v5 }
0x3601   :  { %v4878_v7 = vadd.f32 0.5, %v4877_v6 }
0x3603   :  { %v4879_v25 = vmul.f32 %v4878_v7, %v4788_v61 }
0x3671   :  { %v4882_v23 = vpop.permute.xlu0 %4881 }
0x3672   :  { %v4884_v24 = vmul.f32 %v4882_v23, %v4878_v7 }
0x3674   :  { %4886 = vrot.lane.b32.xlu1 %v4884_v24, %s7284_s16 }
0x36e6   :  { %v4887_v27 = vpop.permute.xlu1 %4886 }
0x36e7   :  { %v4889_v28 = vadd.f32 %v4887_v27, %v4879_v25 }
0x36e9   :  { %6926 = vtanh.f32 %v4889_v28 }
0x36f6   :  { %v6927_v29 = vpop.eup %6926 }
0x36f7   :  { %4892 = vrot.lane.b32.xlu0 %v6927_v29, %s7274_s7 }
0x3769   :  { %v4893_v30 = vpop.permute.xlu0 %4892 }
0x376a   :  { %v4895_v9 = vmul.f32 %v4893_v30, %v4878_v7  ;;  %v5206_v7 = vld [vmem:[#allocation6 + $0x16] sm:$0x3] }
0x376c   :  { %4897 = vrot.lane.b32.xlu1 %v4895_v9, %s7284_s16 }
0x37de   :  { %v4898_v10 = vpop.permute.xlu1 %4897 }
0x37df   :  { %4901 = vst.msk [vmem:[#allocation7 + $0xe] sm:$0x3] %vm4193_vm11, %v4898_v10  ;;  %6688 = vmatmul.mubr.msk.f32.vlgmr.msra.gmra.mxu1 %vm1277_vm7, %v4898_v10 }
0x37e0   :  { %6702 = vmatpush3.msra.mxu1 %v8144_v16  ;;  %6709 = vmatprep.mubr.msk.f32.mxu1 %vm7283_vm10, %v7281_v26 }
0x37e1   :  { %6703 = vmatprep.subr.mxu1 %v7281_v26 }
0x37e2   :  { %6704 = vmatpush3.msra.mxu1 %v8147_v17 }
0x37e3   :  { %6705 = vmatprep.subr.mxu1 %v7281_v26 }
0x37e4   :  { %6706 = vmatpush3.msra.mxu1 %v8151_v18 }
0x37e5   :  { %6707 = vmatprep.subr.mxu1 %v7281_v26 }
0x37e6   :  { %6708 = vmatpush3.msra.mxu1 %v8156_v19 }
0x37e7   :  { %6723 = vmatprep.subr.mxu1 %v7281_v26 }
0x389f   :  { %v4972_v12 = vpop.f32.mrf.mxu1 }
0x38a0   :  { %v4976_v13 = vadd.f32 %v4972_v12, %v4903_v11 }
0x38a1   :  { %v6689_v14 = vpop.f32.mrf.mxu1 }
0x38a2   :  { %6928 = vtanh.f32 %v4976_v13 }
0x38af   :  { %v6929_v15 = vpop.eup %6928 }
0x38b0   :  { %4982 = vrot.lane.b32.xlu0 %v6929_v15, %s7274_s7  ;;  %v4978_v20 = vmul.f32 0.5, %v6929_v15 }
0x38b2   :  { %v4979_v38 = vadd.f32 0.5, %v4978_v20 }
0x38b4   :  { %v4980_v42 = vmul.f32 %v4979_v38, %v4889_v28 }
0x3922   :  { %v4983_v39 = vpop.permute.xlu0 %4982 }
0x3923   :  { %v4985_v40 = vmul.f32 %v4983_v39, %v4979_v38 }
0x3925   :  { %4987 = vrot.lane.b32.xlu1 %v4985_v40, %s7284_s16 }
0x3997   :  { %v4988_v44 = vpop.permute.xlu1 %4987 }
0x3998   :  { %v4990_v45 = vadd.f32 %v4988_v44, %v4980_v42 }
0x399a   :  { %6930 = vtanh.f32 %v4990_v45 }
0x39a7   :  { %v6931_v46 = vpop.eup %6930 }
0x39a8   :  { %4993 = vrot.lane.b32.xlu0 %v6931_v46, %s7274_s7 }
0x3a1a   :  { %v4994_v47 = vpop.permute.xlu0 %4993 }
0x3a1b   :  { %v4996_v48 = vmul.f32 %v4994_v47, %v4979_v38  ;;  %v5307_v38 = vld [vmem:[#allocation6 + $0x18] sm:$0x3] }
0x3a1d   :  { %4998 = vrot.lane.b32.xlu1 %v4996_v48, %s7284_s16 }
0x3a8f   :  { %v4999_v50 = vpop.permute.xlu1 %4998 }
0x3a90   :  { %5002 = vst.msk [vmem:[#allocation7 + $0x10] sm:$0x3] %vm4193_vm11, %v4999_v50  ;;  %6699 = vmatmul.mubr.msk.f32.vlgmr.msra.gmra.mxu0 %vm1277_vm7, %v4999_v50 }
0x3a91   :  { %6713 = vmatpush3.msra.mxu0 %v8144_v16  ;;  %6720 = vmatprep.mubr.msk.f32.mxu0 %vm7283_vm10, %v7281_v26 }
0x3a92   :  { %6714 = vmatprep.subr.mxu0 %v7281_v26 }
0x3a93   :  { %6715 = vmatpush3.msra.mxu0 %v8147_v17 }
0x3a94   :  { %6716 = vmatprep.subr.mxu0 %v7281_v26 }
0x3a95   :  { %6717 = vmatpush3.msra.mxu0 %v8151_v18 }
0x3a96   :  { %6718 = vmatprep.subr.mxu0 %v7281_v26 }
0x3a97   :  { %6719 = vmatpush3.msra.mxu0 %v8156_v19 }
0x3a98   :  { %6734 = vmatprep.subr.mxu0 %v7281_v26 }
0x3b50   :  { %v5073_v41 = vpop.f32.mrf.mxu0 }
0x3b51   :  { %v5077_v43 = vadd.f32 %v5073_v41, %v5004_v51 }
0x3b52   :  { %v6700_v52 = vpop.f32.mrf.mxu0 }
0x3b53   :  { %6932 = vtanh.f32 %v5077_v43  ;;  %v6980_v43 = vld [vmem:[#allocation27 + $0x18] sm:$0xff]  ;;  %v6981_v52 = vld [vmem:[#allocation27 + $0x10] sm:$0xff] }
0x3b60   :  { %v6933_v53 = vpop.eup %6932 }
0x3b61   :  { %5083 = vrot.lane.b32.xlu0 %v6933_v53, %s7274_s7  ;;  %v5079_v21 = vmul.f32 0.5, %v6933_v53  ;;  %v6982_v53 = vld [vmem:[#allocation27 + $0x8] sm:$0xff] }
0x3b63   :  { %v5080_v22 = vadd.f32 0.5, %v5079_v21  ;;  %v6983_v21 = vld [vmem:[#allocation27] sm:$0xff] }
0x3b65   :  { %v5081_v33 = vmul.f32 %v5080_v22, %v4990_v45 }
0x3bd3   :  { %v5084_v31 = vpop.permute.xlu0 %5083 }
0x3bd4   :  { %v5086_v32 = vmul.f32 %v5084_v31, %v5080_v22 }
0x3bd6   :  { %5088 = vrot.lane.b32.xlu1 %v5086_v32, %s7284_s16 }
0x3c48   :  { %v5089_v34 = vpop.permute.xlu1 %5088 }
0x3c49   :  { %v5091_v35 = vadd.f32 %v5089_v34, %v5081_v33 }
0x3c4b   :  { %6934 = vtanh.f32 %v5091_v35 }
0x3c58   :  { %v6935_v36 = vpop.eup %6934 }
0x3c59   :  { %5094 = vrot.lane.b32.xlu0 %v6935_v36, %s7274_s7 }
0x3ccb   :  { %v5095_v37 = vpop.permute.xlu0 %5094 }
0x3ccc   :  { %v5097_v54 = vmul.f32 %v5095_v37, %v5080_v22  ;;  %v5408_v22 = vld [vmem:[#allocation6 + $0x1a] sm:$0x3] }
0x3cce   :  { %5099 = vrot.lane.b32.xlu1 %v5097_v54, %s7284_s16 }
0x3d40   :  { %v5100_v55 = vpop.permute.xlu1 %5099 }
0x3d41   :  { %5103 = vst.msk [vmem:[#allocation7 + $0x12] sm:$0x3] %vm4193_vm11, %v5100_v55  ;;  %6710 = vmatmul.mubr.msk.f32.vlgmr.msra.gmra.mxu1 %vm1277_vm7, %v5100_v55 }
0x3d42   :  { %6724 = vmatpush3.msra.mxu1 %v8144_v16  ;;  %6731 = vmatprep.mubr.msk.f32.mxu1 %vm7283_vm10, %v7281_v26 }
0x3d43   :  { %6725 = vmatprep.subr.mxu1 %v7281_v26 }
0x3d44   :  { %6726 = vmatpush3.msra.mxu1 %v8147_v17 }
0x3d45   :  { %6727 = vmatprep.subr.mxu1 %v7281_v26 }
0x3d46   :  { %6728 = vmatpush3.msra.mxu1 %v8151_v18 }
0x3d47   :  { %6729 = vmatprep.subr.mxu1 %v7281_v26 }
0x3d48   :  { %6730 = vmatpush3.msra.mxu1 %v8156_v19 }
0x3d49   :  { %6745 = vmatprep.subr.mxu1 %v7281_v26 }
0x3e01   :  { %v5174_v57 = vpop.f32.mrf.mxu1 }
0x3e02   :  { %v5178_v58 = vadd.f32 %v5174_v57, %v5105_v56 }
0x3e03   :  { %v6711_v59 = vpop.f32.mrf.mxu1 }
0x3e04   :  { %6936 = vtanh.f32 %v5178_v58 }
0x3e11   :  { %v6937_v60 = vpop.eup %6936 }
0x3e12   :  { %5184 = vrot.lane.b32.xlu0 %v6937_v60, %s7274_s7  ;;  %v5180_v61 = vmul.f32 0.5, %v6937_v60 }
0x3e14   :  { %v5181_v62 = vadd.f32 0.5, %v5180_v61  ;;  %v6984_v61 = vld [vmem:[#allocation8] sm:$0xff] }
0x3e16   :  { %v5182_v0 = vmul.f32 %v5181_v62, %v5091_v35 }
0x3e84   :  { %v5185_v8 = vpop.permute.xlu0 %5184 }
0x3e85   :  { %v5187_v63 = vmul.f32 %v5185_v8, %v5181_v62 }
0x3e87   :  { %5189 = vrot.lane.b32.xlu1 %v5187_v63, %s7284_s16 }
0x3ef9   :  { %v5190_v1 = vpop.permute.xlu1 %5189 }
0x3efa   :  { %v5192_v2 = vadd.f32 %v5190_v1, %v5182_v0 }
0x3efc   :  { %6938 = vtanh.f32 %v5192_v2 }
0x3f09   :  { %v6939_v3 = vpop.eup %6938 }
0x3f0a   :  { %5195 = vrot.lane.b32.xlu0 %v6939_v3, %s7274_s7 }
0x3f7c   :  { %v5196_v4 = vpop.permute.xlu0 %5195 }
0x3f7d   :  { %v5198_v5 = vmul.f32 %v5196_v4, %v5181_v62  ;;  %v5509_v62 = vld [vmem:[#allocation6 + $0x1c] sm:$0x3] }
0x3f7f   :  { %5200 = vrot.lane.b32.xlu1 %v5198_v5, %s7284_s16 }
0x3ff1   :  { %v5201_v6 = vpop.permute.xlu1 %5200 }
0x3ff2   :  { %5204 = vst.msk [vmem:[#allocation7 + $0x14] sm:$0x3] %vm4193_vm11, %v5201_v6  ;;  %6721 = vmatmul.mubr.msk.f32.vlgmr.msra.gmra.mxu0 %vm1277_vm7, %v5201_v6 }
0x3ff3   :  { %6735 = vmatpush3.msra.mxu0 %v8144_v16  ;;  %6742 = vmatprep.mubr.msk.f32.mxu0 %vm7283_vm10, %v7281_v26 }
0x3ff4   :  { %6736 = vmatprep.subr.mxu0 %v7281_v26 }
0x3ff5   :  { %6737 = vmatpush3.msra.mxu0 %v8147_v17 }
0x3ff6   :  { %6738 = vmatprep.subr.mxu0 %v7281_v26 }
0x3ff7   :  { %6739 = vmatpush3.msra.mxu0 %v8151_v18 }
0x3ff8   :  { %6740 = vmatprep.subr.mxu0 %v7281_v26 }
0x3ff9   :  { %6741 = vmatpush3.msra.mxu0 %v8156_v19 }
0x3ffa   :  { %6756 = vmatprep.subr.mxu0 %v7281_v26 }
0x40b2   :  { %v5275_v23 = vpop.f32.mrf.mxu0 }
0x40b3   :  { %v5279_v24 = vadd.f32 %v5275_v23, %v5206_v7 }
0x40b4   :  { %v6722_v25 = vpop.f32.mrf.mxu0 }
0x40b5   :  { %6940 = vtanh.f32 %v5279_v24 }
0x40c2   :  { %v6941_v27 = vpop.eup %6940 }
0x40c3   :  { %5285 = vrot.lane.b32.xlu0 %v6941_v27, %s7274_s7  ;;  %v5281_v28 = vmul.f32 0.5, %v6941_v27 }
0x40c5   :  { %v5282_v29 = vadd.f32 0.5, %v5281_v28 }
0x40c7   :  { %v5283_v10 = vmul.f32 %v5282_v29, %v5192_v2 }
0x4135   :  { %v5286_v30 = vpop.permute.xlu0 %5285 }
0x4136   :  { %v5288_v9 = vmul.f32 %v5286_v30, %v5282_v29 }
0x4138   :  { %5290 = vrot.lane.b32.xlu1 %v5288_v9, %s7284_s16 }
0x41aa   :  { %v5291_v11 = vpop.permute.xlu1 %5290 }
0x41ab   :  { %v5293_v12 = vadd.f32 %v5291_v11, %v5283_v10 }
0x41ad   :  { %6942 = vtanh.f32 %v5293_v12 }
0x41ba   :  { %v6943_v13 = vpop.eup %6942 }
0x41bb   :  { %5296 = vrot.lane.b32.xlu0 %v6943_v13, %s7274_s7 }
0x422d   :  { %v5297_v14 = vpop.permute.xlu0 %5296 }
0x422e   :  { %v5299_v15 = vmul.f32 %v5297_v14, %v5282_v29  ;;  %v5610_v29 = vld [vmem:[#allocation6 + $0x1e] sm:$0x3] }
0x4230   :  { %5301 = vrot.lane.b32.xlu1 %v5299_v15, %s7284_s16 }
0x42a2   :  { %v5302_v20 = vpop.permute.xlu1 %5301 }
0x42a3   :  { %5305 = vst.msk [vmem:[#allocation7 + $0x16] sm:$0x3] %vm4193_vm11, %v5302_v20  ;;  %6732 = vmatmul.mubr.msk.f32.vlgmr.msra.gmra.mxu1 %vm1277_vm7, %v5302_v20 }
0x42a4   :  { %6746 = vmatpush3.msra.mxu1 %v8144_v16  ;;  %6753 = vmatprep.mubr.msk.f32.mxu1 %vm7283_vm10, %v7281_v26 }
0x42a5   :  { %6747 = vmatprep.subr.mxu1 %v7281_v26 }
0x42a6   :  { %6748 = vmatpush3.msra.mxu1 %v8147_v17 }
0x42a7   :  { %6749 = vmatprep.subr.mxu1 %v7281_v26 }
0x42a8   :  { %6750 = vmatpush3.msra.mxu1 %v8151_v18 }
0x42a9   :  { %6751 = vmatprep.subr.mxu1 %v7281_v26 }
0x42aa   :  { %6752 = vmatpush3.msra.mxu1 %v8156_v19 }
0x4363   :  { %v5376_v39 = vpop.f32.mrf.mxu1 }
0x4364   :  { %v5380_v40 = vadd.f32 %v5376_v39, %v5307_v38 }
0x4365   :  { %v6733_v42 = vpop.f32.mrf.mxu1 }
0x4366   :  { %6944 = vtanh.f32 %v5380_v40 }
0x4373   :  { %v6945_v16 = vpop.eup %6944 }
0x4374   :  { %5386 = vrot.lane.b32.xlu0 %v6945_v16, %s7274_s7  ;;  %v5382_v44 = vmul.f32 0.5, %v6945_v16 }
0x4376   :  { %v5383_v45 = vadd.f32 0.5, %v5382_v44  ;;  %v5906_v44 = vld [vmem:[%s8498_s18 + $0x18] sm:$0xff] }
0x4378   :  { %v5384_v47 = vmul.f32 %v5383_v45, %v5293_v12 }
0x43e6   :  { %v5387_v46 = vpop.permute.xlu0 %5386 }
0x43e7   :  { %v5389_v17 = vmul.f32 %v5387_v46, %v5383_v45 }
0x43e9   :  { %5391 = vrot.lane.b32.xlu1 %v5389_v17, %s7284_s16 }
0x445b   :  { %v5392_v18 = vpop.permute.xlu1 %5391 }
0x445c   :  { %v5394_v48 = vadd.f32 %v5392_v18, %v5384_v47  ;;  %v5721_v47 = vld [vmem:[#allocation7 + $0x16] sm:$0x3]  ;;  %v5717_v18 = vld [vmem:[#allocation7 + $0xe] sm:$0x3] }
0x445e   :  { %6946 = vtanh.f32 %v5394_v48 }
0x446b   :  { %v6947_v50 = vpop.eup %6946 }
0x446c   :  { %5397 = vrot.lane.b32.xlu0 %v6947_v50, %s7274_s7  ;;  %v5719_v50 = vld [vmem:[#allocation7 + $0x12] sm:$0x3] }
0x44de   :  { %v5398_v19 = vpop.permute.xlu0 %5397 }
0x44df   :  { %v5400_v51 = vmul.f32 %v5398_v19, %v5383_v45  ;;  %v5905_v45 = vld [vmem:[%s8498_s18 + $0x10] sm:$0xff]  ;;  %v5720_v19 = vld [vmem:[#allocation7 + $0x14] sm:$0x3] }
0x44e1   :  { %5402 = vrot.lane.b32.xlu1 %v5400_v51, %s7284_s16 }
0x4553   :  { %v5403_v41 = vpop.permute.xlu1 %5402 }
0x4554   :  { %5406 = vst.msk [vmem:[#allocation7 + $0x18] sm:$0x3] %vm4193_vm11, %v5403_v41  ;;  %6743 = vmatmul.mubr.msk.f32.vlgmr.msra.gmra.mxu0 %vm1277_vm7, %v5403_v41  ;;  %v5777_v41 = vcombine.low %v5720_v19, %v5721_v47 }
0x4555   :  { %6757 = vmatpush3.msra.mxu0 %v6980_v43  ;;  %6764 = vmatprep.mubr.msk.f32.mxu0 %vm7283_vm10, %v7281_v26  ;;  %v5715_v43 = vld [vmem:[#allocation7 + $0xa] sm:$0x3] }
0x4556   :  { %6758 = vmatprep.subr.mxu0 %v7281_v26 }
0x4557   :  { %6759 = vmatpush3.msra.mxu0 %v6981_v52  ;;  %v5716_v52 = vld [vmem:[#allocation7 + $0xc] sm:$0x3] }
0x4558   :  { %6760 = vmatprep.subr.mxu0 %v7281_v26 }
0x4559   :  { %6761 = vmatpush3.msra.mxu0 %v6982_v53  ;;  %v5713_v53 = vld [vmem:[#allocation7 + $0x6] sm:$0x3] }
0x455a   :  { %6762 = vmatprep.subr.mxu0 %v7281_v26 }
0x455b   :  { %6763 = vmatpush3.msra.mxu0 %v6983_v21 }
0x455c   :  { %6781 = vmatprep.subr.mxu0 %v5906_v44 }
0x4614   :  { %v5477_v31 = vpop.f32.mrf.mxu0 }
0x4615   :  { %v5481_v32 = vadd.f32 %v5477_v31, %v5408_v22  ;;  %v5718_v31 = vld [vmem:[#allocation7 + $0x10] sm:$0x3] }
0x4616   :  { %v6744_v33 = vpop.f32.mrf.mxu0 }
0x4617   :  { %6948 = vtanh.f32 %v5481_v32  ;;  %v5776_v33 = vcombine.low %v5718_v31, %v5719_v50 }
0x4624   :  { %v6949_v34 = vpop.eup %6948 }
0x4625   :  { %5487 = vrot.lane.b32.xlu0 %v6949_v34, %s7274_s7  ;;  %v5483_v35 = vmul.f32 0.5, %v6949_v34  ;;  %v5760_v34 = vcombine.low %v5716_v52, %v5717_v18 }
0x4627   :  { %v5484_v36 = vadd.f32 0.5, %v5483_v35  ;;  %v5712_v35 = vld [vmem:[#allocation7 + $0x4] sm:$0x3] }
0x4629   :  { %v5485_v55 = vmul.f32 %v5484_v36, %v5394_v48  ;;  %v5722_v48 = vld [vmem:[#allocation7 + $0x18] sm:$0x3] }
0x4697   :  { %v5488_v37 = vpop.permute.xlu0 %5487 }
0x4698   :  { %v5490_v54 = vmul.f32 %v5488_v37, %v5484_v36  ;;  %v5711_v37 = vld [vmem:[#allocation7 + $0x2] sm:$0x3] }
0x469a   :  { %5492 = vrot.lane.b32.xlu1 %v5490_v54, %s7284_s16  ;;  %v5743_v54 = vcombine.low %v5712_v35, %v5713_v53 }
0x470c   :  { %v5493_v56 = vpop.permute.xlu1 %5492 }
0x470d   :  { %v5495_v57 = vadd.f32 %v5493_v56, %v5485_v55 }
0x470f   :  { %6950 = vtanh.f32 %v5495_v57 }
0x471c   :  { %v6951_v26 = vpop.eup %6950 }
0x471d   :  { %5498 = vrot.lane.b32.xlu0 %v6951_v26, %s7274_s7 }
0x478f   :  { %v5499_v58 = vpop.permute.xlu0 %5498 }
0x4790   :  { %v5501_v59 = vmul.f32 %v5499_v58, %v5484_v36  ;;  %v5714_v36 = vld [vmem:[#allocation7 + $0x8] sm:$0x3]  ;;  %v5710_v58 = vld [vmem:[#allocation7] sm:$0x3] }
0x4791   :  { %v5759_v26 = vcombine.low %v5714_v36, %v5715_v43 }
0x4792   :  { %5503 = vrot.lane.b32.xlu1 %v5501_v59, %s7284_s16 }
0x4804   :  { %v5504_v60 = vpop.permute.xlu1 %5503 }
0x4805   :  { %5507 = vst.msk [vmem:[#allocation7 + $0x1a] sm:$0x3] %vm4193_vm11, %v5504_v60  ;;  %6754 = vmatmul.mubr.msk.f32.vlgmr.msra.gmra.mxu1 %vm1277_vm7, %v5504_v60  ;;  %v5784_v60 = vrot.slane %v5776_v33, %v7722_v49 }
0x4806   :  { %6775 = vmatprep.mubr.msk.f32.mxu1 %vm1277_vm7, %v6984_v61  ;;  %v5774_v61 = vrot.slane %v5760_v34, %v7722_v49 }
0x480c   :  { %v5723_v17 = vld [vmem:[#allocation7 + $0x1a] sm:$0x3] }
0x480d   :  { %v5793_v51 = vcombine.low %v5722_v48, %v5723_v17 }
0x480f   :  { %v5801_v55 = vrot.slane %v5793_v51, %v7722_v49 }
0x48c5   :  { %v5578_v8 = vpop.f32.mrf.mxu1 }
0x48c6   :  { %v5582_v63 = vadd.f32 %v5578_v8, %v5509_v62  ;;  %v5742_v62 = vcombine.low %v5710_v58, %v5711_v37 }
0x48c7   :  { %v6755_v0 = vpop.f32.mrf.mxu1 }
0x48c8   :  { %6952 = vtanh.f32 %v5582_v63  ;;  %v5767_v63 = vrot.slane %v5759_v26, %v7722_v49  ;;  %v5757_v0 = vrot.slane %v5743_v54, %v7722_v49 }
0x48d5   :  { %v6953_v1 = vpop.eup %6952 }
0x48d6   :  { %5588 = vrot.lane.b32.xlu0 %v6953_v1, %s7274_s7  ;;  %v5584_v2 = vmul.f32 0.5, %v6953_v1  ;;  %v5775_v1 = vcombine.low %v5767_v63, %v5774_v61 }
0x48d8   :  { %v5585_v3 = vadd.f32 0.5, %v5584_v2  ;;  %v5750_v2 = vrot.slane %v5742_v62, %v7722_v49 }
0x48da   :  { %v5586_v6 = vmul.f32 %v5585_v3, %v5495_v57  ;;  %v5791_v57 = vrot.slane %v5777_v41, %v7722_v49 }
0x48dc   :  { %v5792_v8 = vcombine.low %v5784_v60, %v5791_v57 }
0x4948   :  { %v5589_v4 = vpop.permute.xlu0 %5588 }
0x4949   :  { %v5591_v5 = vmul.f32 %v5589_v4, %v5585_v3  ;;  %v5902_v4 = vld [vmem:[%s8497_s17 + $0x18] sm:$0xff] }
0x494b   :  { %5593 = vrot.lane.b32.xlu1 %v5591_v5, %s7284_s16  ;;  %v5901_v5 = vld [vmem:[%s8497_s17 + $0x10] sm:$0xff] }
0x49bd   :  { %v5594_v7 = vpop.permute.xlu1 %5593 }
0x49be   :  { %v5596_v23 = vadd.f32 %v5594_v7, %v5586_v6  ;;  %v6985_v6 = vld [vmem:[#allocation8 + $0x8] sm:$0xff]  ;;  %v5900_v7 = vld [vmem:[%s8497_s17 + $0x8] sm:$0xff] }
0x49c0   :  { %6954 = vtanh.f32 %v5596_v23 }
0x49cd   :  { %v6955_v24 = vpop.eup %6954 }
0x49ce   :  { %5599 = vrot.lane.b32.xlu0 %v6955_v24, %s7274_s7  ;;  %v6987_v24 = vld [vmem:[#allocation8 + $0x18] sm:$0xff] }
0x4a40   :  { %v5600_v25 = vpop.permute.xlu0 %5599 }
0x4a41   :  { %v5602_v27 = vmul.f32 %v5600_v25, %v5585_v3  ;;  %v5758_v3 = vcombine.low %v5750_v2, %v5757_v0  ;;  %v5904_v25 = vld [vmem:[%s8498_s18 + $0x8] sm:$0xff] }
0x4a43   :  { %5604 = vrot.lane.b32.xlu1 %v5602_v27, %s7284_s16  ;;  %v5903_v27 = vld [vmem:[%s8498_s18] sm:$0xff] }
0x4ab5   :  { %v5605_v28 = vpop.permute.xlu1 %5604 }
0x4ab6   :  { %5608 = vst.msk [vmem:[#allocation7 + $0x1c] sm:$0x3] %vm4193_vm11, %v5605_v28  ;;  %6765 = vmatmul.mubr.msk.f32.vlgmr.msra.gmra.mxu0 %vm1277_vm7, %v5605_v28 }
0x4ab7   :  { %6782 = vmatpush3.msra.mxu0 %v5906_v44 }
0x4ab8   :  { %6783 = vmatprep.subr.mxu0 %v5905_v45 }
0x4ab9   :  { %6784 = vmatpush3.msra.mxu0 %v5905_v45 }
0x4aba   :  { %6785 = vmatprep.subr.mxu0 %v5904_v25 }
0x4abb   :  { %6786 = vmatpush3.msra.mxu0 %v5904_v25 }
0x4abc   :  { %6787 = vmatprep.subr.mxu0 %v5903_v27 }
0x4abd   :  { %v5724_v21 = vld [vmem:[#allocation7 + $0x1c] sm:$0x3]  ;;  %6788 = vmatpush3.msra.mxu0 %v5903_v27 }
0x4b76   :  { %v5679_v30 = vpop.f32.mrf.mxu0 }
0x4b77   :  { %v5683_v9 = vadd.f32 %v5679_v30, %v5610_v29 }
0x4b78   :  { %v6766_v10 = vpop.f32.mrf.mxu0 }
0x4b79   :  { %6956 = vtanh.f32 %v5683_v9 }
0x4b86   :  { %v6957_v11 = vpop.eup %6956 }
0x4b87   :  { %5689 = vrot.lane.b32.xlu0 %v6957_v11, %s7274_s7  ;;  %v5685_v12 = vmul.f32 0.5, %v6957_v11 }
0x4b89   :  { %v5686_v13 = vadd.f32 0.5, %v5685_v12 }
0x4b8b   :  { %v5687_v20 = vmul.f32 %v5686_v13, %v5596_v23  ;;  %v5899_v23 = vld [vmem:[%s8497_s17] sm:$0xff] }
0x4bf9   :  { %v5690_v14 = vpop.permute.xlu0 %5689 }
0x4bfa   :  { %v5692_v15 = vmul.f32 %v5690_v14, %v5686_v13 }
0x4bfc   :  { %5694 = vrot.lane.b32.xlu1 %v5692_v15, %s7284_s16 }
0x4c6e   :  { %v5695_v38 = vpop.permute.xlu1 %5694 }
0x4c6f   :  { %v5697_v39 = vadd.f32 %v5695_v38, %v5687_v20 }
0x4c71   :  { %6958 = vtanh.f32 %v5697_v39 }
0x4c7e   :  { %v6959_v40 = vpop.eup %6958 }
0x4c7f   :  { %5700 = vrot.lane.b32.xlu0 %v6959_v40, %s7274_s7 }
0x4cf1   :  { %v5701_v42 = vpop.permute.xlu0 %5700 }
0x4cf2   :  { %v5703_v16 = vmul.f32 %v5701_v42, %v5686_v13  ;;  %v6248_v13 = vld [vmem:[%s8499_s19] ss:$0 sm:$0xff] }
0x4cf4   :  { %5705 = vrot.lane.b32.xlu1 %v5703_v16, %s7284_s16 }
0x4d66   :  { %v5706_v46 = vpop.permute.xlu1 %5705 }
0x4d67   :  { %5709 = vst.msk [vmem:[#allocation7 + $0x1e] sm:$0x3] %vm4193_vm11, %v5706_v46 }
0x4d6e   :  { %v5725_v22 = vld [vmem:[#allocation7 + $0x1e] sm:$0x3] }
0x4d6f   :  { %v5794_v32 = vcombine.low %v5724_v21, %v5725_v22 }
0x4d71   :  { %v5808_v56 = vrot.slane %v5794_v32, %v7722_v49  ;;  %v6986_v49 = vld [vmem:[#allocation8 + $0x10] sm:$0xff] }
0x4d73   :  { %v5809_v59 = vcombine.low %v5801_v55, %v5808_v56 }
0x4d75   :  { %6767 = vmatprep.subr.mxu1 %v5809_v59 }
0x4d76   :  { %6768 = vmatpush3.msra.mxu1 %v5809_v59 }
0x4d77   :  { %6769 = vmatprep.subr.mxu1 %v5792_v8 }
0x4d78   :  { %6770 = vmatpush3.msra.mxu1 %v5792_v8 }
0x4d79   :  { %6771 = vmatprep.subr.mxu1 %v5775_v1 }
0x4d7a   :  { %6772 = vmatpush3.msra.mxu1 %v5775_v1 }
0x4d7b   :  { %6773 = vmatprep.subr.mxu1 %v5758_v3 }
0x4d7c   :  { %6774 = vmatpush3.msra.mxu1 %v5758_v3 }
0x4d7d   :  { %6776 = vmatmul.mubr.msk.f32.vlgmr.msra.gmra.mxu1 %vm1277_vm7, %v6985_v6  ;;  %6795 = vmatprep.subr.mxu1 %v5902_v4 }
0x4d7e   :  { %6796 = vmatpush3.msra.mxu1 %v5902_v4  ;;  %6778 = vmatprep.mubr.msk.f32.mxu1 %vm1277_vm7, %v6986_v49 }
0x4d7f   :  { %6797 = vmatprep.subr.mxu1 %v5901_v5 }
0x4d80   :  { %6798 = vmatpush3.msra.mxu1 %v5901_v5 }
0x4d81   :  { %6779 = vmatmul.mubr.msk.f32.gmra.mxu1 %vm1277_vm7, %v6987_v24  ;;  %6799 = vmatprep.subr.mxu1 %v5900_v7 }
0x4d82   :  { %6800 = vmatpush3.msra.mxu1 %v5900_v7  ;;  %6803 = vmatprep.mubr.msk.f32.mxu1 %vm1277_vm7, %v5758_v3 }
0x4d83   :  { %6801 = vmatprep.subr.mxu1 %v5899_v23 }
0x4d84   :  { %6802 = vmatpush3.msra.mxu1 %v5899_v23 }
0x4d85   :  { %6804 = vmatmul.mubr.msk.f32.vlgmr.msra.gmra.mxu1 %vm1277_vm7, %v5775_v1 }
0x4d86   :  { %6806 = vmatprep.mubr.msk.f32.mxu1 %vm1277_vm7, %v5792_v8 }
0x4d89   :  { %6807 = vmatmul.mubr.msk.f32.gmra.mxu1 %vm1277_vm7, %v5809_v59 }
0x4e3d   :  { %v6777_v28 = vpop.f32.mrf.mxu1 }
0x4e3f   :  { %v5880_v29 = vpop.f32.mrf.mxu1 }
0x4e40   :  { %6789 = vmatprep.mubr.msk.f32.mxu0 %vm1277_vm7, %v5880_v29 }
0x4e41   :  { %v6780_v30 = vpop.f32.mrf.mxu1  ;;  %6790 = vmatmul.mubr.msk.f32.vlgmr.msra.gmra.mxu0 %vm1277_vm7, %v6777_v28 }
0x4e43   :  { %v5890_v9 = vpop.f32.mrf.mxu1 }
0x4e44   :  { %6792 = vmatprep.mubr.msk.f32.mxu0 %vm1277_vm7, %v5890_v9 }
0x4e45   :  { %6793 = vmatmul.mubr.msk.f32.gmra.mxu0 %vm1277_vm7, %v6780_v30  ;;  %v6805_v10 = vpop.f32.mrf.mxu1 }
0x4e47   :  { %v6078_v11 = vpop.f32.mrf.mxu1 }
0x4e49   :  { %v6808_v15 = vpop.f32.mrf.mxu1 }
0x4e4b   :  { %v6088_v44 = vpop.f32.mrf.mxu1 }
0x4f01   :  { %v6791_v12 = vpop.f32.mrf.mxu0 }
0x4f02   :  { %v6084_v14 = vadd.f32 %v6805_v10, %v6791_v12 }
0x4f03   :  { %v5985_v20 = vpop.f32.mrf.mxu0 }
0x4f04   :  { %v6105_v38 = vadd.f32 %v6248_v13, %v6084_v14  ;;  %v6079_v39 = vadd.f32 %v6078_v11, %v5985_v20 }
0x4f05   :  { %v6794_v40 = vpop.f32.mrf.mxu0 }
0x4f06   :  { %6109 = vst.msk [vmem:[%s8500_s20 + $0x8] sm:$0xff] %vm258_vm1, %v6105_v38  ;;  %v6104_v42 = vadd.f32 %v6248_v13, %v6079_v39  ;;  %v6094_v16 = vadd.f32 %v6808_v15, %v6794_v40 }
0x4f07   :  { %v5995_v45 = vpop.f32.mrf.mxu0 }
0x4f08   :  { %6108 = vst.msk [vmem:[%s8500_s20] sm:$0xff] %vm258_vm1, %v6104_v42  ;;  %v6107_v46 = vadd.f32 %v6248_v13, %v6094_v16  ;;  %v6089_v17 = vadd.f32 %v6088_v44, %v5995_v45 }
0x4f0a   :  { %6111 = vst.msk [vmem:[%s8500_s20 + $0x18] sm:$0xff] %vm258_vm1, %v6107_v46  ;;  %v6106_v47 = vadd.f32 %v6248_v13, %v6089_v17 }
0x4f0c   :  { %6110 = vst.msk [vmem:[%s8500_s20 + $0x10] sm:$0xff] %vm258_vm1, %v6106_v47 }
0x4f0d   :  { %6116 = vsyncpa [#allocation9], 1 }
0x4f0e   :  { %6117 = vsyncpa [#allocation11], 1 }
0x4f0f   :  { %6118 = vsyncpa [#allocation14], 1 }
0x4f10   :  { %6119 = vsyncpa [#allocation17], 1 }
0x4f11   :  { %6120 = vsyncpa [#allocation20], 1 }
0x4f12   :  { %6121 = vsyncpa [#allocation23], 1 }
0x4f13   :  { %6122 = vsyncpa [#allocation26], 1 }

</bundles_post_ra>
